<compile_context>
chip_gen: v6e
topology: v6e:2x2x1
jax: 0.10.0
libtpu: 0.0.40
codegen_flags: <defaults>
</compile_context>

<pallas_src>
import jax
import jax.numpy as jnp
from jax.experimental import pallas as pl
from jax.experimental.pallas import tpu as pltpu


# ----------------------------- Pallas kernel -------------------------------

def primary_capsule_kernel(w_ref, b_ref, msk_ref, seg_ref, segt_ref, p_ref, o_ref):
    # w_ref   : (C_out, K)   conv weight, K = C_in*k*k
    # b_ref   : (C_out, 1)   conv bias (column; broadcast along lanes)
    # msk_ref : (C_out, F)   msk[c, j] = 1.0 iff c == j // P   (channel select)
    # seg_ref : (F, N)       seg[j, n] = 1.0 iff j // D == n   (capsule segments)
    # segt_ref: (N, F)       seg transposed (broadcast scale back to elements)
    # p_ref   : (1, K, F)    per-image im2col patches tiled so column j <-> p = j % P
    # o_ref   : (1, 1, F)    squashed capsules, flat PyTorch order, lane-dense
    #
    # Conv as an MXU matmul with a lane-dense N dimension (F = 1568).
    conv = jnp.dot(w_ref[...], p_ref[0],
                   preferred_element_type=jnp.float32) + b_ref[...]     # (C_out, F)

    # Keep only conv[c(j), p(j)] in each column -> one nonzero row per column.
    gm = msk_ref[...] * conv                                            # (C_out, F)
    # Flat conv output in PyTorch x.view(B, -1, D) order, as one lane-dense row.
    flat = jnp.sum(gm, axis=0, keepdims=True)                           # (1, F)

    # Per-capsule squared norm via a 0/1 segment-sum matmul (8 lanes -> 1).
    # (msk*conv)^2 == msk*conv^2, so summing the (C_out, N) partials is exact.
    sq32 = jnp.dot(gm * gm, seg_ref[...],
                   preferred_element_type=jnp.float32)                  # (C_out, N)
    sq = jnp.sum(sq32, axis=0, keepdims=True)                           # (1, N)

    # squash scale with a single reciprocal (EUP) instead of two divisions.
    denom = (1.0 + sq) * (jnp.sqrt(sq) + 1e-8)
    scale = sq * pl.reciprocal(denom, approx=False)                     # (1, N)

    # Broadcast each capsule's scale back to its 8 flat lanes via the transposed
    # segment matrix (M padded to one sublane tile to keep the matmul well-shaped).
    scale8 = jnp.broadcast_to(scale, (8, scale.shape[-1]))              # (8, N)
    sf = jnp.dot(scale8, segt_ref[...],
                 preferred_element_type=jnp.float32)                    # (8, F) identical rows

    o_ref[0] = flat * sf[0:1, :]                                        # (1, F) lane-dense store


# ------------------------------ JAX wrapper --------------------------------

def _im2col_nchw(x, k, stride):
    """Plain-JAX glue: conv patches in PyTorch weight-flatten order (c, kh, kw).

    Returns (B, C_in*k*k, P) with P = Ho*Wo in row-major (h, w) order."""
    B, C, H, W = x.shape
    Ho = (H - k) // stride + 1
    Wo = (W - k) // stride + 1
    cols = []
    for kh in range(k):
        for kw in range(k):
            cols.append(
                x[:, :, kh:kh + stride * (Ho - 1) + 1:stride,
                        kw:kw + stride * (Wo - 1) + 1:stride])  # (B, C, Ho, Wo)
    patches = jnp.stack(cols, axis=2).reshape(B, C * k * k, Ho * Wo)
    return patches, Ho, Wo


def primary_capsule_forward(x, weight, bias, dim_capsule, kernel_size, stride,
                            use_bf16_matmul=False):
    """x: (B, C_in, H, W) f32 NCHW; weight: (C_out, C_in, k, k); bias: (C_out,).

    Returns squash(conv(x)).view(B, -1, dim_capsule), shape (B, N, dim_capsule)."""
    B, C_in, H, W = x.shape
    C_out = weight.shape[0]
    k = kernel_size

    # TODO(synk): at production CapsNet sizes (C_in=256, k=9) build the patches
    # inside the kernel from a VMEM-resident input tile and K-tile the
    # contraction with a VMEM f32 accumulator ("arbitrary" trailing grid axis)
    # instead of this HBM im2col; the segment-matmul regroup should also be
    # revisited there since its size grows with (C_out*P)^2 / dim_capsule.
    patches, Ho, Wo = _im2col_nchw(x, k, stride)       # (B, K, P)
    K = C_in * k * k
    P = Ho * Wo
    F = C_out * P                                      # flat conv size per image
    assert F % dim_capsule == 0
    N = F // dim_capsule                               # number of capsules per image

    w_mat = weight.reshape(C_out, K).astype(jnp.float32)   # (C_out, K)
    b_col = bias.reshape(C_out, 1).astype(jnp.float32)     # (C_out, 1)

    # Column j of the fused matmul corresponds to flat output index j = c*P + p,
    # so tile the P patch columns C_out times (column j -> p = j % P).
    bigp = jnp.tile(patches, (1, 1, C_out))                             # (B, K, F)

    # Small 0/1 helper matrices (fetched into VMEM once; index_map is constant).
    j_idx = jnp.arange(F, dtype=jnp.int32)
    msk = (jnp.arange(C_out, dtype=jnp.int32)[:, None]
           == (j_idx[None, :] // P)).astype(jnp.float32)                # (C_out, F)
    seg = ((j_idx[:, None] // dim_capsule)
           == jnp.arange(N, dtype=jnp.int32)[None, :]).astype(jnp.float32)  # (F, N)
    segt = jnp.transpose(seg)                                           # (N, F)

    if use_bf16_matmul:
        # v6e/v7x MXU option: bf16 operands, f32 accumulate.
        # NOTE: relaxes accuracy vs the f32 reference to ~1e-2 relative.
        w_mm = w_mat.astype(jnp.bfloat16)
        p_mm = bigp.astype(jnp.bfloat16)
    else:
        w_mm = w_mat
        p_mm = bigp

    out_flat = pl.pallas_call(
        primary_capsule_kernel,
        out_shape=jax.ShapeDtypeStruct((B, 1, F), jnp.float32),
        grid=(B,),
        in_specs=[
            pl.BlockSpec((C_out, K), lambda b: (0, 0)),     # weights (resident)
            pl.BlockSpec((C_out, 1), lambda b: (0, 0)),     # bias
            pl.BlockSpec((C_out, F), lambda b: (0, 0)),     # channel-select mask
            pl.BlockSpec((F, N), lambda b: (0, 0)),         # capsule segment matrix
            pl.BlockSpec((N, F), lambda b: (0, 0)),         # its transpose
            pl.BlockSpec((1, K, F), lambda b: (b, 0, 0)),   # per-image tiled patches
        ],
        out_specs=pl.BlockSpec((1, 1, F), lambda b: (b, 0, 0)),
        compiler_params=pltpu.CompilerParams(
            # v7x: one image per TensorCore; v5e/v6e: cheap 2-step serial loop.
            dimension_semantics=("parallel",)),
    )(w_mm, b_col, msk, seg, segt, p_mm)                                # (B, 1, F)

    # Free row-major reshape to the PyTorch capsule view.
    return out_flat.reshape(B, N, dim_capsule)


# --------------------------- pure-JAX reference -----------------------------

def _reference(x, weight, bias, dim_capsule, kernel_size, stride):
    conv = jax.lax.conv_general_dilated(
        x, weight, window_strides=(stride, stride), padding="VALID",
        dimension_numbers=("NCHW", "OIHW", "NCHW"))
    conv = conv + bias.reshape(1, -1, 1, 1)
    B = conv.shape[0]
    caps = conv.reshape(B, -1, dim_capsule)
    sq = jnp.sum(caps * caps, axis=-1, keepdims=True)
    scale = sq / (1.0 + sq) / (jnp.sqrt(sq) + 1e-8)
    return scale * caps


# --------------------------------- main -------------------------------------

if __name__ == "__main__":
    # Module config (small, consistent with PrimaryCapsule.__init__)
    in_channels = 4
    num_capsule_channels = 4
    dim_capsule = 8
    kernel_size = 3
    stride = 2
    C_out = num_capsule_channels * dim_capsule  # 32

    B, H, W = 2, 16, 16

    key = jax.random.PRNGKey(0)
    kx, kw, kb = jax.random.split(key, 3)
    x = jax.random.normal(kx, (B, in_channels, H, W), dtype=jnp.float32)
    # Deterministic synthetic parameters (not a checkpoint load).
    weight = 0.1 * jax.random.normal(
        kw, (C_out, in_channels, kernel_size, kernel_size), dtype=jnp.float32)
    bias = 0.1 * jax.random.normal(kb, (C_out,), dtype=jnp.float32)

    out = primary_capsule_forward(x, weight, bias, dim_capsule, kernel_size, stride)
    out = jax.block_until_ready(out)

    ref = _reference(x, weight, bias, dim_capsule, kernel_size, stride)
    assert out.shape == ref.shape, (out.shape, ref.shape)
    # f32 pipeline; small slack for MXU pass decomposition / summation order.
    assert jnp.allclose(out, ref, atol=1e-4, rtol=1e-4), float(
        jnp.max(jnp.abs(out - ref)))

    print("KERNEL_OK")
</pallas_src>

<mosaic_0001>
module attributes {stable_mosaic.version = 11 : i64} {
  func.func @primary_capsule_kernel(%arg0: i32, %arg1: memref<32x36xf32, #tpu.memory_space<vmem>>, %arg2: memref<32x1xf32, #tpu.memory_space<vmem>>, %arg3: memref<32x1568xf32, #tpu.memory_space<vmem>>, %arg4: memref<1568x196xf32, #tpu.memory_space<vmem>>, %arg5: memref<196x1568xf32, #tpu.memory_space<vmem>>, %arg6: memref<1x36x1568xf32, #tpu.memory_space<vmem>>, %arg7: memref<1x1x1568xf32, #tpu.memory_space<vmem>>) attributes {dimension_semantics = [#tpu.dimension_semantics<parallel>], iteration_bounds = array<i64: 2>, scalar_prefetch = 0 : i64, scratch_operands = 0 : i64, tpu.core_type = #tpu.core_type<tc>, window_params = [{pipeline_mode = #tpu.pipeline_mode<synchronous>, transform_indices = @transform_0, window_bounds = array<i64: 32, 36>}, {pipeline_mode = #tpu.pipeline_mode<synchronous>, transform_indices = @transform_1, window_bounds = array<i64: 32, 1>}, {pipeline_mode = #tpu.pipeline_mode<synchronous>, transform_indices = @transform_2, window_bounds = array<i64: 32, 1568>}, {pipeline_mode = #tpu.pipeline_mode<synchronous>, transform_indices = @transform_3, window_bounds = array<i64: 1568, 196>}, {pipeline_mode = #tpu.pipeline_mode<synchronous>, transform_indices = @transform_4, window_bounds = array<i64: 196, 1568>}, {transform_indices = @transform_5, window_bounds = array<i64: 1, 36, 1568>}, {transform_indices = @transform_6, window_bounds = array<i64: 1, 1, 1568>}]} {
    %c0 = arith.constant 0 : index
    %c0_0 = arith.constant 0 : index
    %0 = vector.load %arg1[%c0, %c0_0] : memref<32x36xf32, #tpu.memory_space<vmem>>, vector<32x36xf32>
    %c0_1 = arith.constant 0 : index
    %c0_2 = arith.constant 0 : index
    %c0_3 = arith.constant 0 : index
    %1 = vector.load %arg6[%c0_1, %c0_2, %c0_3] : memref<1x36x1568xf32, #tpu.memory_space<vmem>>, vector<1x36x1568xf32>
    %2 = vector.shape_cast %1 : vector<1x36x1568xf32> to vector<36x1568xf32>
    %cst = arith.constant dense<0.000000e+00> : vector<32x1568xf32>
    %3 = tpu.matmul %0, %2, %cst {dimension_numbers = #tpu.dot_dimension_numbers<[1], [0], [0], [1], [0, 0, 1, 1], [], []>} : vector<32x36xf32>, vector<36x1568xf32>, vector<32x1568xf32> -> vector<32x1568xf32>
    %c0_4 = arith.constant 0 : index
    %c0_5 = arith.constant 0 : index
    %4 = vector.load %arg2[%c0_4, %c0_5] : memref<32x1xf32, #tpu.memory_space<vmem>>, vector<32x1xf32>
    %5 = vector.broadcast %4 : vector<32x1xf32> to vector<32x1568xf32>
    %6 = arith.addf %3, %5 : vector<32x1568xf32>
    %c0_6 = arith.constant 0 : index
    %c0_7 = arith.constant 0 : index
    %7 = vector.load %arg3[%c0_6, %c0_7] : memref<32x1568xf32, #tpu.memory_space<vmem>>, vector<32x1568xf32>
    %8 = arith.mulf %7, %6 : vector<32x1568xf32>
    %cst_8 = arith.constant dense<0.000000e+00> : vector<1568xf32>
    %9 = vector.multi_reduction <add>, %8, %cst_8 [0] : vector<32x1568xf32> to vector<1568xf32>
    %10 = vector.shape_cast %9 : vector<1568xf32> to vector<1x1568xf32>
    %11 = arith.mulf %8, %8 : vector<32x1568xf32>
    %c0_9 = arith.constant 0 : index
    %c0_10 = arith.constant 0 : index
    %12 = vector.load %arg4[%c0_9, %c0_10] : memref<1568x196xf32, #tpu.memory_space<vmem>>, vector<1568x196xf32>
    %cst_11 = arith.constant dense<0.000000e+00> : vector<32x196xf32>
    %13 = tpu.matmul %11, %12, %cst_11 {dimension_numbers = #tpu.dot_dimension_numbers<[1], [0], [0], [1], [0, 0, 1, 1], [], []>} : vector<32x1568xf32>, vector<1568x196xf32>, vector<32x196xf32> -> vector<32x196xf32>
    %cst_12 = arith.constant dense<0.000000e+00> : vector<196xf32>
    %14 = vector.multi_reduction <add>, %13, %cst_12 [0] : vector<32x196xf32> to vector<196xf32>
    %15 = vector.shape_cast %14 : vector<196xf32> to vector<1x196xf32>
    %cst_13 = arith.constant 1.000000e+00 : f32
    %16 = vector.broadcast %cst_13 : f32 to vector<1x196xf32>
    %17 = arith.addf %16, %15 : vector<1x196xf32>
    %18 = math.sqrt %15 : vector<1x196xf32>
    %cst_14 = arith.constant 9.99999993E-9 : f32
    %19 = vector.broadcast %cst_14 : f32 to vector<1x196xf32>
    %20 = arith.addf %18, %19 : vector<1x196xf32>
    %21 = arith.mulf %17, %20 : vector<1x196xf32>
    %22 = tpu.reciprocal %21 : vector<1x196xf32> -> vector<1x196xf32>
    %23 = arith.mulf %15, %22 : vector<1x196xf32>
    %24 = vector.shape_cast %23 : vector<1x196xf32> to vector<1x196xf32>
    %25 = vector.broadcast %24 : vector<1x196xf32> to vector<8x196xf32>
    %c0_15 = arith.constant 0 : index
    %c0_16 = arith.constant 0 : index
    %26 = vector.load %arg5[%c0_15, %c0_16] : memref<196x1568xf32, #tpu.memory_space<vmem>>, vector<196x1568xf32>
    %cst_17 = arith.constant dense<0.000000e+00> : vector<8x1568xf32>
    %27 = tpu.matmul %25, %26, %cst_17 {dimension_numbers = #tpu.dot_dimension_numbers<[1], [0], [0], [1], [0, 0, 1, 1], [], []>} : vector<8x196xf32>, vector<196x1568xf32>, vector<8x1568xf32> -> vector<8x1568xf32>
    %28 = vector.extract_strided_slice %27 {offsets = [0, 0], sizes = [1, 1568], strides = [1, 1]} : vector<8x1568xf32> to vector<1x1568xf32>
    %29 = arith.mulf %10, %28 : vector<1x1568xf32>
    %c0_18 = arith.constant 0 : index
    %c0_19 = arith.constant 0 : index
    %c0_20 = arith.constant 0 : index
    %30 = vector.load %arg7[%c0_18, %c0_19, %c0_20] : memref<1x1x1568xf32, #tpu.memory_space<vmem>>, vector<1x1x1568xf32>
    %31 = vector.shape_cast %30 : vector<1x1x1568xf32> to vector<1x1568xf32>
    %32 = vector.shape_cast %29 : vector<1x1568xf32> to vector<1x1x1568xf32>
    tpu.vector_store %arg7[%c0_18, %c0_19, %c0_20], %32 {strides = array<i32>} : memref<1x1x1568xf32, #tpu.memory_space<vmem>>, vector<1x1x1568xf32>,
    return
  }
  func.func @transform_0(%arg0: i32) -> (i32, i32) {
    %c0_i32 = arith.constant 0 : i32
    %c0_i32_0 = arith.constant 0 : i32
    %c0_i32_1 = arith.constant 0 : i32
    return %c0_i32, %c0_i32_0 : i32, i32
  }
  func.func @transform_1(%arg0: i32) -> (i32, i32) {
    %c0_i32 = arith.constant 0 : i32
    %c0_i32_0 = arith.constant 0 : i32
    %c0_i32_1 = arith.constant 0 : i32
    return %c0_i32, %c0_i32_0 : i32, i32
  }
  func.func @transform_2(%arg0: i32) -> (i32, i32) {
    %c0_i32 = arith.constant 0 : i32
    %c0_i32_0 = arith.constant 0 : i32
    %c0_i32_1 = arith.constant 0 : i32
    return %c0_i32, %c0_i32_0 : i32, i32
  }
  func.func @transform_3(%arg0: i32) -> (i32, i32) {
    %c0_i32 = arith.constant 0 : i32
    %c0_i32_0 = arith.constant 0 : i32
    %c0_i32_1 = arith.constant 0 : i32
    return %c0_i32, %c0_i32_0 : i32, i32
  }
  func.func @transform_4(%arg0: i32) -> (i32, i32) {
    %c0_i32 = arith.constant 0 : i32
    %c0_i32_0 = arith.constant 0 : i32
    %c0_i32_1 = arith.constant 0 : i32
    return %c0_i32, %c0_i32_0 : i32, i32
  }
  func.func @transform_5(%arg0: i32) -> (i32, i32, i32) {
    %c0_i32 = arith.constant 0 : i32
    %c0_i32_0 = arith.constant 0 : i32
    %c0_i32_1 = arith.constant 0 : i32
    return %arg0, %c0_i32, %c0_i32_0 : i32, i32, i32
  }
  func.func @transform_6(%arg0: i32) -> (i32, i32, i32) {
    %c0_i32 = arith.constant 0 : i32
    %c0_i32_0 = arith.constant 0 : i32
    %c0_i32_1 = arith.constant 0 : i32
    return %arg0, %c0_i32, %c0_i32_0 : i32, i32, i32
  }
}

</mosaic_0001>

<bundles_post_ra>
// kernel: tpu_custom_call.1
= control target key start
LH: loop header
LB: loop body
LE: loop exit
PB: predicated region body
PF: predicated region fallthrough
CT: control target
= control target key end

     0   :  { %11 = vsyncpa [#allocation3], 0  ;;  %s6732_s0 = inlined_call_operand.vmem [shape: f32[32,36], index: 0, kind: input, shape index: {}]   ;;  %s6733_s1 = inlined_call_operand.vmem [shape: f32[32,1], index: 1, kind: input, shape index: {}]   ;;  %s6734_s2 = inlined_call_operand.vmem [shape: f32[32,1568], index: 2, kind: input, shape index: {}]   ;;  %s6735_s3 = inlined_call_operand.vmem [shape: f32[1568,196], index: 3, kind: input, shape index: {}]   ;;  %s6736_s4 = inlined_call_operand.vmem [shape: f32[196,1568], index: 4, kind: input, shape index: {}]   ;;  %s6737_s5 = inlined_call_operand.vmem [shape: f32[2,36,1568], index: 5, kind: input, shape index: {}]   ;;  %s6738_s6 = inlined_call_operand.hbm [shape: f32[2,1,1568], index: 6, kind: output, shape index: {}]  }
   0x1   :  { %13 = vsyncpa [#allocation3 + $0x1], 0  ;;  %s3690_s21 = smov 0   ;;  %s3692_s22 = smov 0  }
   0x2   :  { %s3694_s23 = smov 0   ;;  %s3696_s24 = smov 0  }
   0x3 LB: > { %s3711_s25 = sadd.s32 4294967295, %s3649_s24   ;;  %s3426_s26 = sadd.s32 4294967294, %s3649_s24   ;;  %s3649_s24 = sphi %s3696_s24, %s6765_s24   ;;  %s3645_s23 = sphi %s3694_s23, %s6764_s23   ;;  %s3641_s22 = sphi %s3692_s22, %s6763_s22   ;;  %s3637_s21 = sphi %s3690_s21, %s6762_s21  }
   0x4   : > { %s3715_s27 = sadd.s32 1, %s3649_s24   ;;  %s157_s28 = sadd.s32 1, %s3645_s23 }
   0x5   : > { %s154_s29 = ssub.s32 %s3649_s24, %s3715_s27  ;;  %p167_p0 = scmp.ne.s32.totalorder %s3645_s23, %s3641_s22 }
   0x6   : > { %p155_p1 = scmp.eq.s32.totalorder %s154_s29, 0  ;;  %p168_p2 = scmp.eq.s32.totalorder %s3711_s25, 1 }
   0x7   : > { %p173_p3 = scmp.ne.s32.totalorder %s3641_s22, %s3637_s21  ;;  %p174_p4 = scmp.eq.s32.totalorder %s3426_s26, 1 }
   0x8   : > { %s3726_s30 = scalar_select %p155_p1, %s3645_s23, %s157_s28  }
   0x9   : > { %p3728_p5 = por %p168_p2, %p167_p0  ;;  %p3732_p6 = por %p174_p4, %p173_p3 }
   0xa   : > { %p3429_p7 = scmp.ge.s32.totalorder %s3649_s24, 1  ;;  %p215_p8 = scmp.lt.s32.totalorder %s3649_s24, 3 }
   0xc   : > { %p216_p9 = pnand %p3429_p7, %p215_p8 }
   0xe   : > { %219 = sbr.rel (%p216_p9) target bundleno = 1032 (0x408), region = 44 }
  0x13   : > { %p245_p10 = scmp.lt.s32.totalorder %s3711_s25, 1  ;;  %v6739_v0 = vmov 0.0   ;;  %v319_v1 = vld [vmem:[%s6733_s1] sm:$0xff]  ;;  %v3652_v2 = vmov 0   ;;  %v321_v3 = vld [vmem:[%s6733_s1 + $0x10] sm:$0xff]  ;;  %v320_v4 = vld [vmem:[%s6733_s1 + $0x8] sm:$0xff] }
  0x14   : > { %460 = vmatprep.mubr.f32.mxu1 %v6739_v0  ;;  %638 = vmatprep.mubr.f32.mxu0 %v6739_v0  ;;  %v322_v5 = vld [vmem:[%s6733_s1 + $0x18] sm:$0xff]  ;;  %vm356_vm0 = vcmask 1043456   ;;  %v3814_v26 = vld [vmem:[%s6732_s0] sm:$0xff]  ;;  %vm343_vm1 = vcmask 293888   ;;  %v3831_v31 = vld [vmem:[%s6732_s0 + $0x8] sm:$0xff]  ;;  %vm1227_vm2 = vcmask 261120  }
  0x15   : > { %s246_s11 = scalar_select %p245_p10, %s3711_s25, 1  ;;  %3579 = vset.pattern.permute.xlu0 %v3652_v2  ;;  %3580 = vset.pattern.permute.xlu1 %v3652_v2  ;;  %v3851_v39 = vld [vmem:[%s6732_s0 + $0x10] sm:$0xff]  ;;  %v3870_v47 = vld [vmem:[%s6732_s0 + $0x18] sm:$0xff]  ;;  %v1386_v63 = vld [vmem:[%s6735_s3 + $0x2e8] sm:$0xff]  ;;  %vm2329_vm3 = vcmask 556032  }
  0x16   : > { %325 = vperm.xlu0 %3579, %v319_v1   ;;  %335 = vperm.xlu1 %3580, %v321_v3   ;;  %v1388_v59 = vld [vmem:[%s6735_s3 + $0x2f8] sm:$0xff]  ;;  %v1387_v61 = vld [vmem:[%s6735_s3 + $0x2f0] sm:$0xff]  ;;  %v1385_v2 = vld [vmem:[%s6735_s3 + $0x2e0] sm:$0xff]  ;;  %s242_s10 = sand.u32 1, %s3641_s22   ;;  %s3536_s13 = smul.u32 208, %s3711_s25 }
  0x17   : > { %s3535_s14 = smul.u32 520, %s246_s11  ;;  %s3353_s17 = scalar_lea.sflag [#allocation3], %s242_s10 }
  0x18   : > { %s3534_s11 = smul.u32 13, %s242_s10  ;;  %s3365_s16 = scalar_lea.hbm %s6738_s6, %s3536_s13 }
  0x19   : > { %s3757_s26 = scalar_lea.vmem %s6737_s5, %s3535_s14  ;;  %s3654_s25 = smov [#allocation2]  }
  0x1a   : > { %v307_v6 = vld [vmem:[%s3757_s26 + $0x1a8] sm:$0xf]  ;;  %v306_v8 = vld [vmem:[%s3757_s26 + $0x1a0] sm:$0xf]  ;;  %330 = vperm.xlu0 %3579, %v320_v4   ;;  %340 = vperm.xlu1 %3580, %v322_v5   ;;  %v293_v12 = vld [vmem:[%s3757_s26 + $0x138] sm:$0xff]  ;;  %s6676_s12 = scalar_lea.vmem [#allocation2], %s3534_s11 }
  0x1b   : > { %v3761_v7 = vld [vmem:[%s3757_s26 + $0x1c8] sm:$0xf]  ;;  %3431 = vmatprep.subr.msk.mxu1 %vm356_vm0, %v307_v6  ;;  %v3768_v9 = vld [vmem:[%s3757_s26 + $0x1c0] sm:$0xf]  ;;  %v3779_v13 = vld [vmem:[%s3757_s26 + $0x158] sm:$0xff]  ;;  %s3367_s14 = sshll.u32 %s6676_s12, 4  ;;  %s3368_s14 = int_to_ptr.vmem [resolvable:$true] %s3367_s14 }
  0x1c   : > { %3443 = vmatprep.subr.msk.mxu0 %vm356_vm0, %v3761_v7  ;;  %v294_v10 = vld [vmem:[%s3757_s26 + $0x140] sm:$0xff]  ;;  %3432 = vmatpush1.msk.msra.mxu1 %vm356_vm0, %v306_v8  ;;  %v281_v14 = vld [vmem:[%s3757_s26 + $0xd8] sm:$0xff]  ;;  %v280_v16 = vld [vmem:[%s3757_s26 + $0xd0] sm:$0xff]  ;;  %s3589_s18 = scalar_lea.vmem %s3368_s14, 208  ;;  %s3593_s19 = sshll.u32 %s3654_s25, 4  ;;  %s3594_s19 = int_to_ptr.vmem [resolvable:$false] %s3593_s19 }
  0x1d   : > { %v3772_v11 = vld [vmem:[%s3757_s26 + $0x160] sm:$0xff]  ;;  %3444 = vmatpush1.msk.msra.mxu0 %vm356_vm0, %v3768_v9  ;;  %420 = vmatprep.subr.mxu1 %v294_v10  ;;  %v3784_v15 = vld [vmem:[%s3757_s26 + $0xf8] sm:$0xff]  ;;  %v3788_v17 = vld [vmem:[%s3757_s26 + $0xf0] sm:$0xff]  ;;  %p3590_p11 = scmp.ne.s32.totalorder %s3368_s14, %s3589_s18  ;;  %s3595_s20 = scalar_lea.vmem %s3594_s19, 416 }
  0x1e   : > { %598 = vmatprep.subr.mxu0 %v3772_v11  ;;  %421 = vmatpush1.msra.mxu1 %v293_v12  ;;  %v268_v18 = vld [vmem:[%s3757_s26 + $0x70] sm:$0xff]  ;;  %v267_v20 = vld [vmem:[%s3757_s26 + $0x68] sm:$0xff]  ;;  %v254_v24 = vld [vmem:[%s3757_s26] sm:$0xff]  ;;  %p3596_p0 = scmp.lt.s32.totalorder %s3368_s14, %s3594_s19  ;;  %p3597_p1 = scmp.lt.s32.totalorder %s3595_s20, %s3589_s18 }
  0x1f   : > { %599 = vmatpush1.msra.mxu0 %v3779_v13  ;;  %v3793_v19 = vld [vmem:[%s3757_s26 + $0x90] sm:$0xff]  ;;  %422 = vmatprep.subr.mxu1 %v281_v14  ;;  %v3798_v21 = vld [vmem:[%s3757_s26 + $0x88] sm:$0xff]  ;;  %v3808_v25 = vld [vmem:[%s3757_s26 + $0x20] sm:$0xff]  ;;  %p3591_p12 = pnand %p3590_p11, %p3728_p5 }
  0x20   : > { %600 = vmatprep.subr.mxu0 %v3784_v15  ;;  %423 = vmatpush1.msra.mxu1 %v280_v16  ;;  %v255_v22 = vld [vmem:[%s3757_s26 + $0x8] sm:$0xff]  ;;  %v309_v27 = vld [vmem:[%s3757_s26 + $0x1b8] sm:$0xf]  ;;  %v308_v28 = vld [vmem:[%s3757_s26 + $0x1b0] sm:$0xf]  ;;  %p3598_p2 = por %p3597_p1, %p3596_p0 }
  0x21   : > { %601 = vmatpush1.msra.mxu0 %v3788_v17  ;;  %v3803_v23 = vld [vmem:[%s3757_s26 + $0x28] sm:$0xff]  ;;  %424 = vmatprep.subr.mxu1 %v268_v18  ;;  %v314_v30 = vld [vmem:[%s3757_s26 + $0x1e0] sm:$0xf]  ;;  %v296_v32 = vld [vmem:[%s3757_s26 + $0x150] sm:$0xff]  ;;  %p3592_p13 = pneg %p3591_p12 }
  0x22   : > { %602 = vmatprep.subr.mxu0 %v3793_v19  ;;  %425 = vmatpush1.msra.mxu1 %v267_v20  ;;  %v315_v29 = vld [vmem:[%s3757_s26 + $0x1e8] sm:$0xf]  ;;  %v302_v33 = vld [vmem:[%s3757_s26 + $0x180] sm:$0xff]  ;;  %v301_v35 = vld [vmem:[%s3757_s26 + $0x178] sm:$0xff] }
  0x23   : > { %603 = vmatpush1.msra.mxu0 %v3798_v21  ;;  %426 = vmatprep.subr.mxu1 %v255_v22  ;;  %v295_v34 = vld [vmem:[%s3757_s26 + $0x148] sm:$0xff]  ;;  %v289_v36 = vld [vmem:[%s3757_s26 + $0x118] sm:$0xff]  ;;  %v288_v38 = vld [vmem:[%s3757_s26 + $0x110] sm:$0xff]  ;;  %p3599_p3 = pnand %p3598_p2, %p3592_p13 }
  0x24   : > { %604 = vmatprep.subr.mxu0 %v3803_v23  ;;  %427 = vmatpush1.msra.mxu1 %v254_v24  ;;  %v283_v37 = vld [vmem:[%s3757_s26 + $0xe8] sm:$0xff]  ;;  %v282_v40 = vld [vmem:[%s3757_s26 + $0xe0] sm:$0xff]  ;;  %v276_v41 = vld [vmem:[%s3757_s26 + $0xb0] sm:$0xff] }
  0x25   : > { %605 = vmatpush1.msra.mxu0 %v3808_v25  ;;  %3433 = vmatmul.mubr.msk.f32.vlgmr.msra.gmra.mxu1 %vm343_vm1, %v3814_v26  ;;  %v270_v42 = vld [vmem:[%s3757_s26 + $0x80] sm:$0xff]  ;;  %v275_v43 = vld [vmem:[%s3757_s26 + $0xa8] sm:$0xff]  ;;  %v269_v45 = vld [vmem:[%s3757_s26 + $0x78] sm:$0xff] }
  0x26   : > { %3437 = vmatprep.subr.msk.mxu1 %vm356_vm0, %v309_v27  ;;  %3445 = vmatmul.mubr.msk.f32.vlgmr.msra.gmra.mxu0 %vm343_vm1, %v3814_v26  ;;  %v263_v44 = vld [vmem:[%s3757_s26 + $0x48] sm:$0xff]  ;;  %v262_v46 = vld [vmem:[%s3757_s26 + $0x40] sm:$0xff]  ;;  %v257_v48 = vld [vmem:[%s3757_s26 + $0x18] sm:$0xff] }
  0x27   : > { %3438 = vmatpush1.msk.msra.mxu1 %vm356_vm0, %v308_v28  ;;  %3455 = vmatprep.subr.msk.mxu0 %vm356_vm0, %v315_v29  ;;  %v256_v49 = vld [vmem:[%s3757_s26 + $0x10] sm:$0xff]  ;;  %v318_v50 = vld [vmem:[%s3757_s26 + $0x200] sm:$0xf]  ;;  %v305_v51 = vld [vmem:[%s3757_s26 + $0x198] sm:$0xff] }
  0x28   : > { %466 = vmatprep.mubr.f32.mxu1 %v6739_v0  ;;  %644 = vmatprep.mubr.f32.mxu0 %v6739_v0  ;;  %v292_v52 = vld [vmem:[%s3757_s26 + $0x130] sm:$0xff]  ;;  %v279_v53 = vld [vmem:[%s3757_s26 + $0xc8] sm:$0xff]  ;;  %v266_v54 = vld [vmem:[%s3757_s26 + $0x60] sm:$0xff] }
  0x29   : > { %3456 = vmatpush1.msk.msra.mxu0 %vm356_vm0, %v314_v30  ;;  %3434 = vmatmul.mubr.msk.f32.gmra.mxu1 %vm343_vm1, %v3831_v31  ;;  %v313_v55 = vld [vmem:[%s3757_s26 + $0x1d8] sm:$0xf]  ;;  %v312_v56 = vld [vmem:[%s3757_s26 + $0x1d0] sm:$0xf]  ;;  %v299_v58 = vld [vmem:[%s3757_s26 + $0x168] sm:$0xff] }
  0x2a   : > { %509 = vmatprep.subr.mxu1 %v296_v32  ;;  %3446 = vmatmul.mubr.msk.f32.gmra.mxu0 %vm343_vm1, %v3831_v31  ;;  %v300_v57 = vld [vmem:[%s3757_s26 + $0x170] sm:$0xff]  ;;  %v287_v60 = vld [vmem:[%s3757_s26 + $0x108] sm:$0xff]  ;;  %v286_v62 = vld [vmem:[%s3757_s26 + $0x100] sm:$0xff] }
  0x2b   : > { %776 = vmatprep.subr.mxu0 %v302_v33  ;;  %510 = vmatpush1.msra.mxu1 %v295_v34  ;;  %v274_v1 = vld [vmem:[%s3757_s26 + $0xa0] sm:$0xff]  ;;  %v273_v3 = vld [vmem:[%s3757_s26 + $0x98] sm:$0xff]  ;;  %v1383_v6 = vld [vmem:[%s6735_s3 + $0x2d0] sm:$0xff] }
  0x2c   : > { %777 = vmatpush1.msra.mxu0 %v301_v35  ;;  %472 = vmatprep.mubr.f32.mxu1 %v6739_v0  ;;  %v1384_v4 = vld [vmem:[%s6735_s3 + $0x2d8] sm:$0xff]  ;;  %v1382_v8 = vld [vmem:[%s6735_s3 + $0x2c8] sm:$0xff]  ;;  %v316_v10 = vld [vmem:[%s3757_s26 + $0x1f0] sm:$0xf] }
  0x2d   : > { %778 = vmatprep.subr.mxu0 %v289_v36  ;;  %511 = vmatprep.subr.mxu1 %v283_v37  ;;  %v261_v5 = vld [vmem:[%s3757_s26 + $0x38] sm:$0xff]  ;;  %v1381_v12 = vld [vmem:[%s6735_s3 + $0x2c0] sm:$0xff]  ;;  %v1379_v18 = vld [vmem:[%s6735_s3 + $0x2b0] sm:$0xff] }
  0x2e   : > { %650 = vmatprep.mubr.f32.mxu0 %v6739_v0  ;;  %779 = vmatpush1.msra.mxu0 %v288_v38  ;;  %v1380_v14 = vld [vmem:[%s6735_s3 + $0x2b8] sm:$0xff]  ;;  %v290_v16 = vld [vmem:[%s3757_s26 + $0x120] sm:$0xff]  ;;  %v1378_v20 = vld [vmem:[%s6735_s3 + $0x2a8] sm:$0xff] }
  0x2f   : > { %3435 = vmatmul.mubr.msk.f32.gmra.mxu1 %vm343_vm1, %v3851_v39  ;;  %3447 = vmatmul.mubr.msk.f32.gmra.mxu0 %vm343_vm1, %v3851_v39  ;;  %v264_v22 = vld [vmem:[%s3757_s26 + $0x50] sm:$0xff]  ;;  %v1377_v24 = vld [vmem:[%s6735_s3 + $0x2a0] sm:$0xff]  ;;  %v1374_v28 = vld [vmem:[%s6735_s3 + $0x288] sm:$0xff] }
  0x30   : > { %512 = vmatpush1.msra.mxu1 %v282_v40  ;;  %780 = vmatprep.subr.mxu0 %v276_v41  ;;  %v1375_v27 = vld [vmem:[%s6735_s3 + $0x290] sm:$0xff]  ;;  %v1373_v29 = vld [vmem:[%s6735_s3 + $0x280] sm:$0xff]  ;;  %v1372_v30 = vld [vmem:[%s6735_s3 + $0x278] sm:$0xff] }
  0x31   : > { %513 = vmatprep.subr.mxu1 %v270_v42  ;;  %781 = vmatpush1.msra.mxu0 %v275_v43  ;;  %v1371_v32 = vld [vmem:[%s6735_s3 + $0x270] sm:$0xff]  ;;  %v1322_v34 = vld [vmem:[%s6735_s3 + $0xe8] sm:$0xff]  ;;  %v1321_v36 = vld [vmem:[%s6735_s3 + $0xe0] sm:$0xff] }
  0x32   : > { %478 = vmatprep.mubr.f32.mxu1 %v6739_v0  ;;  %782 = vmatprep.subr.mxu0 %v263_v44  ;;  %v1323_v33 = vld [vmem:[%s6735_s3 + $0xf0] sm:$0xff]  ;;  %v1370_v35 = vld [vmem:[%s6735_s3 + $0x268] sm:$0xff]  ;;  %v1369_v37 = vld [vmem:[%s6735_s3 + $0x260] sm:$0xff] }
  0x33   : > { %514 = vmatpush1.msra.mxu1 %v269_v45  ;;  %783 = vmatpush1.msra.mxu0 %v262_v46  ;;  %v1320_v38 = vld [vmem:[%s6735_s3 + $0xd8] sm:$0xff]  ;;  %v1318_v40 = vld [vmem:[%s6735_s3 + $0xc8] sm:$0xff]  ;;  %v1317_v42 = vld [vmem:[%s6735_s3 + $0xc0] sm:$0xff] }
  0x34   : > { %816 = vmatprep.mubr.f32.mxu0 %v6739_v0  ;;  %3436 = vmatmul.mubr.msk.f32.gmra.mxu1 %vm343_vm1, %v3870_v47  ;;  %v1368_v41 = vld [vmem:[%s6735_s3 + $0x258] sm:$0xff]  ;;  %v1367_v43 = vld [vmem:[%s6735_s3 + $0x250] sm:$0xff]  ;;  %v1314_v45 = vld [vmem:[%s6735_s3 + $0xa8] sm:$0xff] }
  0x35   : > { %3457 = vmatmul.mubr.msk.f32.vlgmr.msra.gmra.mxu0 %vm343_vm1, %v3814_v26  ;;  %515 = vmatprep.subr.mxu1 %v257_v48  ;;  %v1316_v44 = vld [vmem:[%s6735_s3 + $0xb8] sm:$0xff]  ;;  %v1366_v46 = vld [vmem:[%s6735_s3 + $0x248] sm:$0xff]  ;;  %v1313_v48 = vld [vmem:[%s6735_s3 + $0xa0] sm:$0xff] }
  0x36   : > { %549 = vmatprep.mubr.f32.mxu1 %v6739_v0  ;;  %516 = vmatpush1.msra.mxu1 %v256_v49  ;;  %v1365_v49 = vld [vmem:[%s6735_s3 + $0x240] sm:$0xff] }
  0x37   : > { %822 = vmatprep.mubr.f32.mxu0 %v6739_v0  ;;  %3508 = vmatprep.subr.msk.mxu0 %vm356_vm0, %v318_v50 }
  0x38   : > { %3524 = vmatprep.subr.msk.mxu1 %vm356_vm0, %v3761_v7  ;;  %3439 = vmatmul.mubr.msk.f32.vlgmr.msra.gmra.mxu1 %vm343_vm1, %v3814_v26  ;;  %v260_v7 = vld [vmem:[%s3757_s26 + $0x30] sm:$0xff] }
  0x39   : > { %3458 = vmatmul.mubr.msk.f32.gmra.mxu0 %vm343_vm1, %v3831_v31  ;;  %555 = vmatprep.mubr.f32.mxu1 %v6739_v0 }
  0x3a   : > { %828 = vmatprep.mubr.f32.mxu0 %v6739_v0  ;;  %3509 = vmatpush3.msk.msra.mxu0 %vm356_vm0, %v318_v50  ;;  %v1312_v50 = vld [vmem:[%s6735_s3 + $0x98] sm:$0xff] }
  0x3b   : > { %3529 = vmatpush1.msk.msra.mxu1 %vm356_vm0, %v3768_v9  ;;  %3510 = vmatprep.subr.mxu0 %v305_v51  ;;  %v317_v9 = vld [vmem:[%s3757_s26 + $0x1f8] sm:$0xf] }
  0x3c   : > { %3525 = vmatprep.subr.mxu1 %v3772_v11  ;;  %3440 = vmatmul.mubr.msk.f32.gmra.mxu1 %vm343_vm1, %v3831_v31  ;;  %v304_v11 = vld [vmem:[%s3757_s26 + $0x190] sm:$0xff] }
  0x3d   : > { %3459 = vmatmul.mubr.msk.f32.gmra.mxu0 %vm343_vm1, %v3851_v39  ;;  %561 = vmatprep.mubr.f32.mxu1 %v6739_v0 }
  0x3e   : > { %3511 = vmatpush3.msra.mxu0 %v305_v51  ;;  %834 = vmatprep.mubr.f32.mxu0 %v6739_v0  ;;  %v1364_v51 = vld [vmem:[%s6735_s3 + $0x238] sm:$0xff] }
  0x3f   : > { %3512 = vmatprep.subr.mxu0 %v292_v52  ;;  %3530 = vmatpush1.msra.mxu1 %v3779_v13  ;;  %v303_v13 = vld [vmem:[%s3757_s26 + $0x188] sm:$0xff] }
  0x40   : > { %3513 = vmatpush3.msra.mxu0 %v292_v52  ;;  %3441 = vmatmul.mubr.msk.f32.gmra.mxu1 %vm343_vm1, %v3851_v39  ;;  %v1310_v52 = vld [vmem:[%s6735_s3 + $0x88] sm:$0xff] }
  0x41   : > { %3460 = vmatmul.mubr.msk.f32.gmra.mxu0 %vm343_vm1, %v3870_v47  ;;  %3514 = vmatprep.subr.mxu0 %v279_v53 }
  0x42   : > { %3526 = vmatprep.subr.mxu1 %v3784_v15  ;;  %3515 = vmatpush3.msra.mxu0 %v279_v53  ;;  %v291_v15 = vld [vmem:[%s3757_s26 + $0x128] sm:$0xff]  ;;  %v1363_v53 = vld [vmem:[%s6735_s3 + $0x230] sm:$0xff] }
  0x43   : > { %3531 = vmatpush1.msra.mxu1 %v3788_v17  ;;  %3516 = vmatprep.subr.mxu0 %v266_v54  ;;  %v278_v17 = vld [vmem:[%s3757_s26 + $0xc0] sm:$0xff] }
  0x44   : > { %567 = vmatprep.mubr.f32.mxu1 %v6739_v0  ;;  %3527 = vmatprep.subr.mxu1 %v3793_v19  ;;  %v277_v19 = vld [vmem:[%s3757_s26 + $0xb8] sm:$0xff] }
  0x45   : > { %3517 = vmatpush3.msra.mxu0 %v266_v54  ;;  %3518 = vmatprep.mubr.msk.f32.mxu0 %vm343_vm1, %v3814_v26  ;;  %v1309_v54 = vld [vmem:[%s6735_s3 + $0x80] sm:$0xff] }
  0x46   : > { %3442 = vmatmul.mubr.msk.f32.gmra.mxu1 %vm343_vm1, %v3870_v47  ;;  %3519 = vmatmul.mubr.msk.f32.vlgmr.msra.gmra.mxu0 %vm343_vm1, %v3831_v31 }
  0x47   : > { %3532 = vmatpush1.msra.mxu1 %v3798_v21  ;;  %656 = vmatprep.mubr.f32.mxu1 %v6739_v0  ;;  %v265_v21 = vld [vmem:[%s3757_s26 + $0x58] sm:$0xff] }
  0x48   : > { %3528 = vmatprep.subr.mxu1 %v3803_v23  ;;  %3521 = vmatprep.mubr.msk.f32.mxu0 %vm343_vm1, %v3851_v39  ;;  %v1324_v23 = vld [vmem:[%s6735_s3 + $0xf8] sm:$0xff] }
  0x49   : > { %3533 = vmatpush1.msra.mxu1 %v3808_v25  ;;  %1786 = vmatprep.subr.mxu0 %v1388_v59  ;;  %v1376_v25 = vld [vmem:[%s6735_s3 + $0x298] sm:$0xff]  ;;  %v1306_v59 = vld [vmem:[%s6735_s3 + $0x68] sm:$0xff] }
  0x4a   : > { %3449 = vmatprep.subr.msk.mxu1 %vm356_vm0, %v313_v55  ;;  %3448 = vmatmul.mubr.msk.f32.vlgmr.msra.gmra.mxu1 %vm343_vm1, %v3870_v47  ;;  %v1362_v55 = vld [vmem:[%s6735_s3 + $0x228] sm:$0xff] }
  0x4b   : > { %3450 = vmatpush1.msk.msra.mxu1 %vm356_vm0, %v312_v56  ;;  %3522 = vmatmul.mubr.msk.f32.gmra.mxu0 %vm343_vm1, %v3870_v47  ;;  %v1308_v56 = vld [vmem:[%s6735_s3 + $0x78] sm:$0xff] }
  0x4c   : > { %687 = vmatprep.subr.mxu1 %v300_v57  ;;  %727 = vmatprep.mubr.f32.mxu1 %v6739_v0  ;;  %v1361_v57 = vld [vmem:[%s6735_s3 + $0x220] sm:$0xff] }
  0x4d   : > { %688 = vmatpush1.msra.mxu1 %v299_v58  ;;  %1787 = vmatpush1.msra.mxu0 %v1387_v61  ;;  %v1360_v58 = vld [vmem:[%s6735_s3 + $0x218] sm:$0xff]  ;;  %v1305_v61 = vld [vmem:[%s6735_s3 + $0x60] sm:$0xff] }
  0x4e   : > { %689 = vmatprep.subr.mxu1 %v287_v60  ;;  %1788 = vmatprep.subr.mxu0 %v1386_v63  ;;  %v1359_v60 = vld [vmem:[%s6735_s3 + $0x210] sm:$0xff]  ;;  %v1304_v63 = vld [vmem:[%s6735_s3 + $0x58] sm:$0xff] }
  0x4f   : > { %690 = vmatpush1.msra.mxu1 %v286_v62  ;;  %1789 = vmatpush1.msra.mxu0 %v1385_v2  ;;  %v1358_v62 = vld [vmem:[%s6735_s3 + $0x208] sm:$0xff]  ;;  %v1303_v2 = vld [vmem:[%s6735_s3 + $0x50] sm:$0xff] }
  0x50   : > { %691 = vmatprep.subr.mxu1 %v274_v1  ;;  %1790 = vmatprep.subr.mxu0 %v1384_v4  ;;  %v1357_v1 = vld [vmem:[%s6735_s3 + $0x200] sm:$0xff]  ;;  %v1302_v4 = vld [vmem:[%s6735_s3 + $0x48] sm:$0xff] }
  0x51   : > { %692 = vmatpush1.msra.mxu1 %v273_v3  ;;  %1791 = vmatpush1.msra.mxu0 %v1383_v6  ;;  %v1420_v3 = vld [vmem:[%s6735_s3 + $0x3f8] sm:$0xff]  ;;  %v1301_v6 = vld [vmem:[%s6735_s3 + $0x40] sm:$0xff] }
  0x52   : > { %693 = vmatprep.subr.mxu1 %v261_v5  ;;  %1792 = vmatprep.subr.mxu0 %v1382_v8  ;;  %v1419_v5 = vld [vmem:[%s6735_s3 + $0x3f0] sm:$0xff]  ;;  %v1300_v8 = vld [vmem:[%s6735_s3 + $0x38] sm:$0xff] }
  0x53   : > { %694 = vmatpush1.msra.mxu1 %v260_v7  ;;  %1793 = vmatpush1.msra.mxu0 %v1381_v12  ;;  %v1418_v7 = vld [vmem:[%s6735_s3 + $0x3e8] sm:$0xff] }
  0x54   : > { %3451 = vmatmul.mubr.msk.f32.vlgmr.msra.gmra.mxu1 %vm343_vm1, %v3814_v26  ;;  %3461 = vmatprep.subr.msk.mxu1 %vm356_vm0, %v317_v9  ;;  %v1417_v9 = vld [vmem:[%s6735_s3 + $0x3e0] sm:$0xff]  ;;  %v1298_v12 = vld [vmem:[%s6735_s3 + $0x28] sm:$0xff] }
  0x55   : > { %733 = vmatprep.mubr.f32.mxu1 %v6739_v0  ;;  %3462 = vmatpush1.msk.msra.mxu1 %vm356_vm0, %v316_v10  ;;  %v1299_v10 = vld [vmem:[%s6735_s3 + $0x30] sm:$0xff] }
  0x56   : > { %865 = vmatprep.subr.mxu1 %v304_v11  ;;  %1794 = vmatprep.subr.mxu0 %v1380_v14  ;;  %v1416_v11 = vld [vmem:[%s6735_s3 + $0x3d8] sm:$0xff]  ;;  %v1297_v14 = vld [vmem:[%s6735_s3 + $0x20] sm:$0xff] }
  0x57   : > { %866 = vmatpush1.msra.mxu1 %v303_v13  ;;  %1795 = vmatpush1.msra.mxu0 %v1379_v18  ;;  %v1415_v13 = vld [vmem:[%s6735_s3 + $0x3d0] sm:$0xff] }
  0x58   : > { %3452 = vmatmul.mubr.msk.f32.gmra.mxu1 %vm343_vm1, %v3831_v31  ;;  %867 = vmatprep.subr.mxu1 %v291_v15  ;;  %v1414_v15 = vld [vmem:[%s6735_s3 + $0x3c8] sm:$0xff]  ;;  %v1295_v18 = vld [vmem:[%s6735_s3 + $0x10] sm:$0xff] }
  0x59   : > { %739 = vmatprep.mubr.f32.mxu1 %v6739_v0  ;;  %868 = vmatpush1.msra.mxu1 %v290_v16  ;;  %v1296_v16 = vld [vmem:[%s6735_s3 + $0x18] sm:$0xff] }
  0x5a   : > { %869 = vmatprep.subr.mxu1 %v278_v17  ;;  %1796 = vmatprep.subr.mxu0 %v1378_v20  ;;  %v1413_v17 = vld [vmem:[%s6735_s3 + $0x3c0] sm:$0xff]  ;;  %v1294_v20 = vld [vmem:[%s6735_s3 + $0x8] sm:$0xff] }
  0x5b   : > { %870 = vmatpush1.msra.mxu1 %v277_v19  ;;  %1797 = vmatpush1.msra.mxu0 %v1377_v24  ;;  %v1412_v19 = vld [vmem:[%s6735_s3 + $0x3b8] sm:$0xff] }
  0x5c   : > { %3453 = vmatmul.mubr.msk.f32.gmra.mxu1 %vm343_vm1, %v3851_v39  ;;  %871 = vmatprep.subr.mxu1 %v265_v21  ;;  %v1411_v21 = vld [vmem:[%s6735_s3 + $0x3b0] sm:$0xff]  ;;  %v1356_v24 = vld [vmem:[%s6735_s3 + $0x1f8] sm:$0xff] }
  0x5d   : > { %745 = vmatprep.mubr.f32.mxu1 %v6739_v0  ;;  %872 = vmatpush1.msra.mxu1 %v264_v22  ;;  %v1293_v22 = vld [vmem:[%s6735_s3] sm:$0xff] }
  0x5e   : > { %1697 = vmatprep.subr.mxu1 %v1324_v23  ;;  %1798 = vmatprep.subr.mxu0 %v1376_v25  ;;  %v1410_v23 = vld [vmem:[%s6735_s3 + $0x3a8] sm:$0xff]  ;;  %v1409_v25 = vld [vmem:[%s6735_s3 + $0x3a0] sm:$0xff] }
  0x5f   : > { %1799 = vmatpush1.msra.mxu0 %v1375_v27  ;;  %v1355_v27 = vld [vmem:[%s6735_s3 + $0x1f0] sm:$0xff] }
  0x60   : > { %3454 = vmatmul.mubr.msk.f32.gmra.mxu1 %vm343_vm1, %v3870_v47  ;;  %1800 = vmatprep.subr.mxu0 %v1374_v28  ;;  %v1408_v28 = vld [vmem:[%s6735_s3 + $0x398] sm:$0xff] }
  0x61   : > { %905 = vmatprep.mubr.f32.mxu1 %v6739_v0  ;;  %1801 = vmatpush1.msra.mxu0 %v1373_v29  ;;  %v1354_v29 = vld [vmem:[%s6735_s3 + $0x1e8] sm:$0xff] }
  0x62   : > { %1802 = vmatprep.subr.mxu0 %v1372_v30  ;;  %v1407_v30 = vld [vmem:[%s6735_s3 + $0x390] sm:$0xff] }
  0x63   : > { %1803 = vmatpush1.msra.mxu0 %v1371_v32  ;;  %v1353_v32 = vld [vmem:[%s6735_s3 + $0x1e0] sm:$0xff] }
  0x64   : > { %3463 = vmatmul.mubr.msk.f32.vlgmr.msra.gmra.mxu1 %vm343_vm1, %v3814_v26  ;;  %v1319_v26 = vld [vmem:[%s6735_s3 + $0xd0] sm:$0xff]  ;;  %1804 = vmatprep.subr.mxu0 %v1370_v35  ;;  %v1405_v35 = vld [vmem:[%s6735_s3 + $0x380] sm:$0xff] }
  0x65   : > { %911 = vmatprep.mubr.f32.mxu1 %v6739_v0  ;;  %1698 = vmatpush1.msra.mxu1 %v1323_v33  ;;  %v1406_v33 = vld [vmem:[%s6735_s3 + $0x388] sm:$0xff] }
  0x66   : > { %1699 = vmatprep.subr.mxu1 %v1322_v34  ;;  %1805 = vmatpush1.msra.mxu0 %v1369_v37  ;;  %v1352_v34 = vld [vmem:[%s6735_s3 + $0x1d8] sm:$0xff] }
  0x67   : > { %1700 = vmatpush1.msra.mxu1 %v1321_v36  ;;  %1806 = vmatprep.subr.mxu0 %v1368_v41  ;;  %v1351_v36 = vld [vmem:[%s6735_s3 + $0x1d0] sm:$0xff]  ;;  %v1404_v37 = vld [vmem:[%s6735_s3 + $0x378] sm:$0xff]  ;;  %v1402_v41 = vld [vmem:[%s6735_s3 + $0x368] sm:$0xff] }
  0x68   : > { %3464 = vmatmul.mubr.msk.f32.gmra.mxu1 %vm343_vm1, %v3831_v31  ;;  %1701 = vmatprep.subr.mxu1 %v1320_v38  ;;  %v1315_v31 = vld [vmem:[%s6735_s3 + $0xb0] sm:$0xff]  ;;  %v1350_v38 = vld [vmem:[%s6735_s3 + $0x1c8] sm:$0xff] }
  0x69   : > { %917 = vmatprep.mubr.f32.mxu1 %v6739_v0  ;;  %1702 = vmatpush1.msra.mxu1 %v1319_v26  ;;  %v1403_v26 = vld [vmem:[%s6735_s3 + $0x370] sm:$0xff] }
  0x6a   : > { %1703 = vmatprep.subr.mxu1 %v1318_v40  ;;  %1807 = vmatpush1.msra.mxu0 %v1367_v43  ;;  %v1349_v40 = vld [vmem:[%s6735_s3 + $0x1c0] sm:$0xff] }
  0x6b   : > { %1704 = vmatpush1.msra.mxu1 %v1317_v42  ;;  %1808 = vmatprep.subr.mxu0 %v1366_v46  ;;  %v1348_v42 = vld [vmem:[%s6735_s3 + $0x1b8] sm:$0xff]  ;;  %v1401_v43 = vld [vmem:[%s6735_s3 + $0x360] sm:$0xff]  ;;  %v1399_v46 = vld [vmem:[%s6735_s3 + $0x350] sm:$0xff] }
  0x6c   : > { %3465 = vmatmul.mubr.msk.f32.gmra.mxu1 %vm343_vm1, %v3851_v39  ;;  %1705 = vmatprep.subr.mxu1 %v1316_v44  ;;  %v1311_v39 = vld [vmem:[%s6735_s3 + $0x90] sm:$0xff] }
  0x6d   : > { %923 = vmatprep.mubr.f32.mxu1 %v6739_v0  ;;  %1706 = vmatpush1.msra.mxu1 %v1315_v31  ;;  %v1347_v44 = vld [vmem:[%s6735_s3 + $0x1b0] sm:$0xff]  ;;  %v1400_v31 = vld [vmem:[%s6735_s3 + $0x358] sm:$0xff] }
  0x6e   : > { %1707 = vmatprep.subr.mxu1 %v1314_v45  ;;  %1809 = vmatpush1.msra.mxu0 %v1365_v49  ;;  %v1346_v45 = vld [vmem:[%s6735_s3 + $0x1a8] sm:$0xff] }
  0x6f   : > { %1708 = vmatpush1.msra.mxu1 %v1313_v48  ;;  %1810 = vmatprep.subr.mxu0 %v1364_v51  ;;  %v1345_v48 = vld [vmem:[%s6735_s3 + $0x1a0] sm:$0xff]  ;;  %v1398_v49 = vld [vmem:[%s6735_s3 + $0x348] sm:$0xff]  ;;  %v1343_v51 = vld [vmem:[%s6735_s3 + $0x190] sm:$0xff] }
  0x70   : > { %3466 = vmatmul.mubr.msk.f32.gmra.mxu1 %vm343_vm1, %v3870_v47  ;;  %1709 = vmatprep.subr.mxu1 %v1312_v50  ;;  %v1307_v47 = vld [vmem:[%s6735_s3 + $0x70] sm:$0xff]  ;;  %v1344_v50 = vld [vmem:[%s6735_s3 + $0x198] sm:$0xff] }
  0x71   : > { %1710 = vmatpush1.msra.mxu1 %v1311_v39  ;;  %1811 = vmatpush1.msra.mxu0 %v1363_v53  ;;  %v1397_v39 = vld [vmem:[%s6735_s3 + $0x340] sm:$0xff]  ;;  %v1342_v53 = vld [vmem:[%s6735_s3 + $0x188] sm:$0xff] }
  0x72   : > { %1711 = vmatprep.subr.mxu1 %v1310_v52  ;;  %1812 = vmatprep.subr.mxu0 %v1362_v55  ;;  %v1396_v52 = vld [vmem:[%s6735_s3 + $0x338] sm:$0xff]  ;;  %v1341_v55 = vld [vmem:[%s6735_s3 + $0x180] sm:$0xff] }
  0x73   : > { %1712 = vmatpush1.msra.mxu1 %v1309_v54  ;;  %1813 = vmatpush1.msra.mxu0 %v1361_v57  ;;  %v1395_v54 = vld [vmem:[%s6735_s3 + $0x330] sm:$0xff]  ;;  %v1340_v57 = vld [vmem:[%s6735_s3 + $0x178] sm:$0xff] }
  0x74   : > { %1713 = vmatprep.subr.mxu1 %v1308_v56  ;;  %1814 = vmatprep.subr.mxu0 %v1360_v58  ;;  %v1394_v56 = vld [vmem:[%s6735_s3 + $0x328] sm:$0xff]  ;;  %v1339_v58 = vld [vmem:[%s6735_s3 + $0x170] sm:$0xff] }
  0x75   : > { %1714 = vmatpush1.msra.mxu1 %v1307_v47  ;;  %1815 = vmatpush1.msra.mxu0 %v1359_v60  ;;  %v1393_v47 = vld [vmem:[%s6735_s3 + $0x320] sm:$0xff]  ;;  %v1338_v60 = vld [vmem:[%s6735_s3 + $0x168] sm:$0xff] }
  0x76   : > { %1715 = vmatprep.subr.mxu1 %v1306_v59  ;;  %1816 = vmatprep.subr.mxu0 %v1358_v62  ;;  %v1392_v59 = vld [vmem:[%s6735_s3 + $0x318] sm:$0xff]  ;;  %v1337_v62 = vld [vmem:[%s6735_s3 + $0x160] sm:$0xff] }
  0x77   : > { %1716 = vmatpush1.msra.mxu1 %v1305_v61  ;;  %1817 = vmatpush1.msra.mxu0 %v1357_v1  ;;  %v1391_v61 = vld [vmem:[%s6735_s3 + $0x310] sm:$0xff]  ;;  %v1336_v1 = vld [vmem:[%s6735_s3 + $0x158] sm:$0xff] }
  0x78   : > { %1717 = vmatprep.subr.mxu1 %v1304_v63  ;;  %1818 = vmatprep.subr.mxu0 %v1420_v3  ;;  %v1390_v63 = vld [vmem:[%s6735_s3 + $0x308] sm:$0xff]  ;;  %v1335_v3 = vld [vmem:[%s6735_s3 + $0x150] sm:$0xff] }
  0x79   : > { %1718 = vmatpush1.msra.mxu1 %v1303_v2  ;;  %1819 = vmatpush2.msra.mxu0 %v1419_v5  ;;  %v1389_v2 = vld [vmem:[%s6735_s3 + $0x300] sm:$0xff]  ;;  %v1334_v5 = vld [vmem:[%s6735_s3 + $0x148] sm:$0xff] }
  0x7a   : > { %1719 = vmatprep.subr.mxu1 %v1302_v4  ;;  %1820 = vmatprep.subr.mxu0 %v1418_v7  ;;  %v1516_v4 = vld [vmem:[%s6735_s3 + $0x6f8] sm:$0xff] }
  0x7b   : > { %1720 = vmatpush1.msra.mxu1 %v1301_v6  ;;  %1821 = vmatpush2.msra.mxu0 %v1417_v9  ;;  %v1333_v6 = vld [vmem:[%s6735_s3 + $0x140] sm:$0xff]  ;;  %v1332_v7 = vld [vmem:[%s6735_s3 + $0x138] sm:$0xff]  ;;  %v1330_v9 = vld [vmem:[%s6735_s3 + $0x128] sm:$0xff] }
  0x7c   : > { %1721 = vmatprep.subr.mxu1 %v1300_v8  ;;  %1822 = vmatprep.subr.mxu0 %v1416_v11  ;;  %v1331_v8 = vld [vmem:[%s6735_s3 + $0x130] sm:$0xff]  ;;  %v1328_v11 = vld [vmem:[%s6735_s3 + $0x118] sm:$0xff] }
  0x7d   : > { %1722 = vmatpush1.msra.mxu1 %v1299_v10  ;;  %1823 = vmatpush2.msra.mxu0 %v1415_v13  ;;  %v1329_v10 = vld [vmem:[%s6735_s3 + $0x120] sm:$0xff]  ;;  %v1326_v13 = vld [vmem:[%s6735_s3 + $0x108] sm:$0xff] }
  0x7e   : > { %1723 = vmatprep.subr.mxu1 %v1298_v12  ;;  %1824 = vmatprep.subr.mxu0 %v1414_v15  ;;  %v1327_v12 = vld [vmem:[%s6735_s3 + $0x110] sm:$0xff]  ;;  %v1452_v15 = vld [vmem:[%s6735_s3 + $0x4f8] sm:$0xff] }
  0x7f   : > { %1724 = vmatpush1.msra.mxu1 %v1297_v14  ;;  %1825 = vmatpush2.msra.mxu0 %v1413_v17  ;;  %v1325_v14 = vld [vmem:[%s6735_s3 + $0x100] sm:$0xff] }
  0x80   : > { %1725 = vmatprep.subr.mxu1 %v1296_v16  ;;  %1826 = vmatprep.subr.mxu0 %v1412_v19  ;;  %v1015_v19 = vld [vmem:[%s6734_s2] sm:$0xff] }
  0x81   : > { %1726 = vmatpush1.msra.mxu1 %v1295_v18  ;;  %1827 = vmatpush2.msra.mxu0 %v1411_v21 }
  0x82   : > { %1727 = vmatprep.subr.mxu1 %v1294_v20  ;;  %1828 = vmatprep.subr.mxu0 %v1410_v23  ;;  %v1016_v23 = vld [vmem:[%s6734_s2 + $0x8] sm:$0xff] }
  0x83   : > { %1728 = vmatpush1.msra.mxu1 %v1293_v22  ;;  %1829 = vmatpush2.msra.mxu0 %v1409_v25  ;;  %v1019_v25 = vld [vmem:[%s6734_s2 + $0x20] sm:$0xff] }
  0x84   : > { %1729 = vmatprep.subr.mxu1 %v1356_v24  ;;  %1830 = vmatprep.subr.mxu0 %v1408_v28 }
  0x85   : > { %1730 = vmatpush2.msra.mxu1 %v1355_v27  ;;  %1831 = vmatpush2.msra.mxu0 %v1407_v30 }
  0x86   : > { %1731 = vmatprep.subr.mxu1 %v1354_v29  ;;  %1832 = vmatprep.subr.mxu0 %v1406_v33 }
  0x87   : > { %1732 = vmatpush2.msra.mxu1 %v1353_v32  ;;  %1833 = vmatpush2.msra.mxu0 %v1405_v35  ;;  %v1028_v32 = vld [vmem:[%s6734_s2 + $0x68] sm:$0xff] }
  0x88   : > { %1733 = vmatprep.subr.mxu1 %v1352_v34  ;;  %1834 = vmatprep.subr.mxu0 %v1404_v37 }
  0x89   : > { %1734 = vmatpush2.msra.mxu1 %v1351_v36  ;;  %1835 = vmatpush2.msra.mxu0 %v1403_v26  ;;  %v1032_v36 = vld [vmem:[%s6734_s2 + $0x88] sm:$0xff] }
  0x8a   : > { %1735 = vmatprep.subr.mxu1 %v1350_v38  ;;  %1836 = vmatprep.subr.mxu0 %v1402_v41  ;;  %v1029_v41 = vld [vmem:[%s6734_s2 + $0x70] sm:$0xff] }
  0x8b   : > { %1736 = vmatpush2.msra.mxu1 %v1349_v40  ;;  %1837 = vmatpush2.msra.mxu0 %v1401_v43 }
  0x8c   : > { %1737 = vmatprep.subr.mxu1 %v1348_v42  ;;  %1838 = vmatprep.subr.mxu0 %v1400_v31  ;;  %v1020_v42 = vld [vmem:[%s6734_s2 + $0x28] sm:$0xff] }
  0x8d   : > { %1738 = vmatpush2.msra.mxu1 %v1347_v44  ;;  %1839 = vmatpush2.msra.mxu0 %v1399_v46 }
  0x8e   : > { %1739 = vmatprep.subr.mxu1 %v1346_v45  ;;  %1840 = vmatprep.subr.mxu0 %v1398_v49  ;;  %v1033_v45 = vld [vmem:[%s6734_s2 + $0x90] sm:$0xff] }
  0x8f   : > { %1740 = vmatpush2.msra.mxu1 %v1345_v48  ;;  %1841 = vmatpush2.msra.mxu0 %v1397_v39 }
  0x90   : > { %1741 = vmatprep.subr.mxu1 %v1344_v50  ;;  %1842 = vmatprep.subr.mxu0 %v1396_v52 }
  0x91   : > { %1742 = vmatpush2.msra.mxu1 %v1343_v51  ;;  %1843 = vmatpush2.msra.mxu0 %v1395_v54  ;;  %v4368_v16 = vpop.permute.xlu0 %325  ;;  %v4405_v46 = vpop.permute.xlu1 %335  ;;  %v1451_v51 = vld [vmem:[%s6735_s3 + $0x4f0] sm:$0xff] }
  0x92   : > { %1743 = vmatprep.subr.mxu1 %v1342_v53  ;;  %1844 = vmatprep.subr.mxu0 %v1394_v56  ;;  %v1450_v56 = vld [vmem:[%s6735_s3 + $0x4e8] sm:$0xff] }
  0x93   : > { %1744 = vmatpush2.msra.mxu1 %v1341_v55  ;;  %1845 = vmatpush2.msra.mxu0 %v1393_v47  ;;  %v1041_v55 = vld [vmem:[%s6734_s2 + $0xd0] sm:$0xff] }
  0x94   : > { %1745 = vmatprep.subr.mxu1 %v1340_v57  ;;  %1846 = vmatprep.subr.mxu0 %v1392_v59 }
  0x95   : > { %1746 = vmatpush2.msra.mxu1 %v1339_v58  ;;  %1847 = vmatpush2.msra.mxu0 %v1391_v61  ;;  %v4378_v24 = vpop.permute.xlu0 %330  ;;  %v1045_v61 = vld [vmem:[%s6734_s2 + $0xf0] sm:$0xff] }
  0x96   : > { %1747 = vmatprep.subr.mxu1 %v1338_v60  ;;  %1848 = vmatprep.subr.mxu0 %v1390_v63 }
  0x97   : > { %1748 = vmatpush2.msra.mxu1 %v1337_v62  ;;  %1849 = vmatpush2.msra.mxu0 %v1389_v2  ;;  %v1449_v62 = vld [vmem:[%s6735_s3 + $0x4e0] sm:$0xff] }
  0x98   : > { %1749 = vmatprep.subr.mxu1 %v1336_v1  ;;  %1964 = vmatprep.subr.mxu0 %v1516_v4 }
  0x99   : > { %1750 = vmatpush2.msra.mxu1 %v1335_v3  ;;  %v1042_v3 = vld [vmem:[%s6734_s2 + $0xd8] sm:$0xff] }
  0x9a   : > { %1751 = vmatprep.subr.mxu1 %v1334_v5  ;;  %v1448_v5 = vld [vmem:[%s6735_s3 + $0x4d8] sm:$0xff] }
  0x9b   : > { %1752 = vmatpush2.msra.mxu1 %v1333_v6 }
  0x9c   : > { %1753 = vmatprep.subr.mxu1 %v1332_v7 }
  0x9d   : > { %1754 = vmatpush2.msra.mxu1 %v1331_v8 }
  0x9e   : > { %1755 = vmatprep.subr.mxu1 %v1330_v9 }
  0x9f   : > { %1756 = vmatpush2.msra.mxu1 %v1329_v10  ;;  %v1046_v10 = vld [vmem:[%s6734_s2 + $0xf8] sm:$0xff] }
  0xa0   : > { %1757 = vmatprep.subr.mxu1 %v1328_v11 }
  0xa1   : > { %1758 = vmatpush2.msra.mxu1 %v1327_v12  ;;  %v1447_v12 = vld [vmem:[%s6735_s3 + $0x4d0] sm:$0xff] }
  0xa2   : > { %1759 = vmatprep.subr.mxu1 %v1326_v13 }
  0xa3   : > { %1760 = vmatpush2.msra.mxu1 %v1325_v14 }
  0xa4   : > { %1875 = vmatprep.subr.mxu1 %v1452_v15  ;;  %v4451_v15 = vpop.permute.xlu1 %340 }
  0xe5   : > { %v462_v17 = vpop.f32.mrf.mxu1 }
  0xe6   : > { %v463_v18 = vadd.f32 %v462_v17, %v4368_v16  ;;  %v640_v20 = vpop.f32.mrf.mxu0  ;;  %v1446_v17 = vld [vmem:[%s6735_s3 + $0x4c8] sm:$0xff] }
  0xe7   : > { %v641_v21 = vadd.f32 %v640_v20, %v4368_v16  ;;  %v464_v22 = vpop.f32.mrf.mxu1  ;;  %v1445_v20 = vld [vmem:[%s6735_s3 + $0x4c0] sm:$0xff] }
  0xe8   : > { %v465_v27 = vadd.f32 %v464_v22, %v4368_v16  ;;  %v642_v28 = vpop.f32.mrf.mxu0  ;;  %v1067_v29 = vmul.f32 %v1015_v19, %v463_v18 }
  0xe9   : > { %v468_v30 = vpop.f32.mrf.mxu1  ;;  %v4391_v37 = vmul.f32 %v1019_v25, %v641_v21  ;;  %v643_v38 = vadd.f32 %v642_v28, %v4368_v16  ;;  %v1054_v25 = vld [vmem:[%s6734_s2 + $0x138] sm:$0xff] }
  0xea   : > { %v1068_v33 = vmul.f32 %v1016_v23, %v465_v27  ;;  %v469_v34 = vadd.f32 %v468_v30, %v4378_v24  ;;  %v646_v35 = vpop.f32.mrf.mxu0  ;;  %v1241_v49 = vmul.f32 %v1067_v29, %v1067_v29 }
  0xeb   : > { %v647_v26 = vadd.f32 %v646_v35, %v4378_v24  ;;  %v470_v40 = vpop.f32.mrf.mxu1  ;;  %v4419_v57 = vmul.f32 %v1020_v42, %v643_v38  ;;  %v1055_v35 = vld [vmem:[%s6734_s2 + $0x140] sm:$0xff] }
  0xec   : > { %v1080_v43 = vmul.f32 %v1028_v32, %v469_v34  ;;  %v471_v44 = vadd.f32 %v470_v40, %v4378_v24  ;;  %v648_v31 = vpop.f32.mrf.mxu0  ;;  %v1242_v48 = vmul.f32 %v1068_v33, %v1068_v33  ;;  %v1444_v32 = vld [vmem:[%s6735_s3 + $0x4b8] sm:$0xff] }
  0xed   : > { %v4407_v50 = vmul.f32 %v1032_v36, %v647_v26  ;;  %v649_v39 = vadd.f32 %v648_v31, %v4378_v24  ;;  %v1443_v26 = vld [vmem:[%s6735_s3 + $0x4b0] sm:$0xff] }
  0xee   : > { %v1119_v52 = vadd.f32 %v1080_v43, %v1067_v29  ;;  %v1081_v53 = vmul.f32 %v1029_v41, %v471_v44  ;;  %1761 = vmatprep.mubr.f32.mxu1 %v1242_v48  ;;  %v1254_v11 = vmul.f32 %v1080_v43, %v1080_v43  ;;  %v1442_v43 = vld [vmem:[%s6735_s3 + $0x4a8] sm:$0xff]  ;;  %v1023_v44 = vld [vmem:[%s6734_s2 + $0x40] sm:$0xff] }
  0xef   : > { %v474_v54 = vpop.f32.mrf.mxu1  ;;  %v1155_v47 = vadd.f32 %v4407_v50, %v4391_v37  ;;  %v4423_v58 = vmul.f32 %v1033_v45, %v649_v39  ;;  %v652_v60 = vpop.f32.mrf.mxu0  ;;  %1762 = vmatmul.mubr.f32.vlgmr.msra.gmra.mxu1 %v1241_v49  ;;  %v1024_v45 = vld [vmem:[%s6734_s2 + $0x48] sm:$0xff]  ;;  %v1441_v39 = vld [vmem:[%s6735_s3 + $0x4a0] sm:$0xff] }
  0xf0   : > { %v475_v59 = vadd.f32 %v474_v54, %v4405_v46  ;;  %v1128_v63 = vadd.f32 %v1081_v53, %v1068_v33  ;;  %v653_v1 = vadd.f32 %v652_v60, %v4405_v46  ;;  %1876 = vmatpush1.msra.mxu1 %v1451_v51  ;;  %v1255_v4 = vmul.f32 %v1081_v53, %v1081_v53  ;;  %v1017_v53 = vld [vmem:[%s6734_s2 + $0x10] sm:$0xff]  ;;  %v1036_v54 = vld [vmem:[%s6734_s2 + $0xa8] sm:$0xff]  ;;  %v1018_v60 = vld [vmem:[%s6734_s2 + $0x18] sm:$0xff] }
  0xf1   : > { %v476_v2 = vpop.f32.mrf.mxu1  ;;  %v1164_v6 = vadd.f32 %v4423_v58, %v4419_v57  ;;  %v654_v9 = vpop.f32.mrf.mxu0  ;;  %1877 = vmatprep.subr.mxu1 %v1450_v56 }
  0xf2   : > { %v1093_v7 = vmul.f32 %v1041_v55, %v475_v59  ;;  %v477_v8 = vadd.f32 %v476_v2, %v4405_v46  ;;  %v4448_v13 = vmul.f32 %v1045_v61, %v653_v1  ;;  %v655_v14 = vadd.f32 %v654_v9, %v4405_v46  ;;  %1878 = vmatpush1.msra.mxu1 %v1449_v62  ;;  %v1440_v55 = vld [vmem:[%s6735_s3 + $0x498] sm:$0xff]  ;;  %v1037_v62 = vld [vmem:[%s6734_s2 + $0xb0] sm:$0xff] }
  0xf3   : > { %1767 = vmatprep.mubr.f32.mxu1 %v1255_v4  ;;  %1879 = vmatprep.subr.mxu1 %v1448_v5  ;;  %v1438_v5 = vld [vmem:[%s6735_s3 + $0x488] sm:$0xff] }
  0xf4   : > { %v1120_v18 = vadd.f32 %v1119_v52, %v1093_v7  ;;  %v1094_v19 = vmul.f32 %v1042_v3, %v477_v8  ;;  %1768 = vmatmul.mubr.f32.gmra.mxu1 %v1254_v11  ;;  %v4460_v21 = vadd.f32 %v1155_v47, %v4448_v13  ;;  %v4462_v22 = vmul.f32 %v1046_v10, %v655_v14  ;;  %v480_v23 = vpop.f32.mrf.mxu1  ;;  %v1030_v10 = vld [vmem:[%s6734_s2 + $0x78] sm:$0xff] }
  0xf5   : > { %v818_v27 = vpop.f32.mrf.mxu0  ;;  %1880 = vmatpush1.msra.mxu1 %v1447_v12  ;;  %v481_v29 = vadd.f32 %v480_v23, %v4451_v15  ;;  %v1267_v38 = vmul.f32 %v1093_v7, %v1093_v7  ;;  %v1437_v23 = vld [vmem:[%s6735_s3 + $0x480] sm:$0xff] }
  0xf6   : > { %v1129_v28 = vadd.f32 %v1128_v63, %v1094_v19  ;;  %1881 = vmatprep.subr.mxu1 %v1446_v17  ;;  %v1268_v30 = vmul.f32 %v1094_v19, %v1094_v19  ;;  %v4472_v33 = vadd.f32 %v1164_v6, %v4462_v22  ;;  %v482_v34 = vpop.f32.mrf.mxu1  ;;  %v819_v41 = vadd.f32 %v818_v27, %v4368_v16  ;;  %v1439_v63 = vld [vmem:[%s6735_s3 + $0x490] sm:$0xff] }
  0xf7   : > { %v820_v36 = vpop.f32.mrf.mxu0  ;;  %1882 = vmatpush1.msra.mxu1 %v1445_v20  ;;  %v1106_v40 = vmul.f32 %v1054_v25, %v481_v29  ;;  %v483_v42 = vadd.f32 %v482_v34, %v4451_v15  ;;  %v1049_v19 = vld [vmem:[%s6734_s2 + $0x110] sm:$0xff]  ;;  %v1031_v29 = vld [vmem:[%s6734_s2 + $0x80] sm:$0xff]  ;;  %v1246_v34 = vmul.f32 %v4419_v57, %v4419_v57 }
  0xf8   : > { %1773 = vmatprep.mubr.f32.mxu1 %v1268_v30  ;;  %v821_v31 = vadd.f32 %v820_v36, %v4368_v16  ;;  %v551_v48 = vpop.f32.mrf.mxu1  ;;  %1883 = vmatprep.subr.mxu1 %v1444_v32  ;;  %v4517_v1 = vmul.f32 %v1023_v44, %v819_v41  ;;  %v1050_v32 = vld [vmem:[%s6734_s2 + $0x118] sm:$0xff]  ;;  %v1435_v41 = vld [vmem:[%s6735_s3 + $0x470] sm:$0xff]  ;;  %v1043_v44 = vld [vmem:[%s6734_s2 + $0xe0] sm:$0xff] }
  0xf9   : > { %v824_v49 = vpop.f32.mrf.mxu0  ;;  %1774 = vmatmul.mubr.f32.gmra.mxu1 %v1267_v38  ;;  %v4495_v51 = vadd.f32 %v1120_v18, %v1106_v40  ;;  %v1107_v52 = vmul.f32 %v1055_v35, %v483_v42  ;;  %v552_v56 = vadd.f32 %v551_v48, %v4368_v16  ;;  %v1280_v20 = vmul.f32 %v1106_v40, %v1106_v40  ;;  %v1436_v35 = vld [vmem:[%s6735_s3 + $0x478] sm:$0xff] }
  0xfa   : > { %1884 = vmatpush1.msra.mxu1 %v1443_v26  ;;  %v825_v47 = vadd.f32 %v824_v49, %v4378_v24  ;;  %v553_v59 = vpop.f32.mrf.mxu1  ;;  %v4526_v6 = vmul.f32 %v1024_v45, %v821_v31 }
  0xfb   : > { %v826_v61 = vpop.f32.mrf.mxu0  ;;  %1885 = vmatprep.subr.mxu1 %v1442_v43  ;;  %v4519_v2 = vadd.f32 %v1129_v28, %v1107_v52  ;;  %v554_v3 = vadd.f32 %v553_v59, %v4368_v16  ;;  %v1069_v7 = vmul.f32 %v1017_v53, %v552_v56  ;;  %v1281_v12 = vmul.f32 %v1107_v52, %v1107_v52  ;;  %v1062_v53 = vld [vmem:[%s6734_s2 + $0x178] sm:$0xff] }
  0xfc   : > { %v827_v4 = vadd.f32 %v826_v61, %v4378_v24  ;;  %1886 = vmatpush1.msra.mxu1 %v1441_v39  ;;  %v4528_v8 = vmul.f32 %v1036_v54, %v825_v47  ;;  %v557_v9 = vpop.f32.mrf.mxu1  ;;  %v1515_v54 = vld [vmem:[%s6735_s3 + $0x6f0] sm:$0xff] }
  0xfd   : > { %v830_v11 = vpop.f32.mrf.mxu0  ;;  %1887 = vmatprep.subr.mxu1 %v1440_v55  ;;  %v1070_v14 = vmul.f32 %v1018_v60, %v554_v3  ;;  %v558_v18 = vadd.f32 %v557_v9, %v4378_v24  ;;  %1779 = vmatprep.mubr.f32.mxu1 %v1281_v12  ;;  %v1243_v42 = vmul.f32 %v1069_v7, %v1069_v7  ;;  %v1434_v55 = vld [vmem:[%s6735_s3 + $0x468] sm:$0xff]  ;;  %v1063_v9 = vld [vmem:[%s6734_s2 + $0x180] sm:$0xff] }
  0xfe   : > { %v4533_v17 = vmul.f32 %v1037_v62, %v827_v4  ;;  %1888 = vmatpush1.msra.mxu1 %v1439_v63  ;;  %v1191_v25 = vadd.f32 %v4528_v8, %v4517_v1  ;;  %v831_v27 = vadd.f32 %v830_v11, %v4405_v46  ;;  %v559_v28 = vpop.f32.mrf.mxu1  ;;  %v1044_v60 = vld [vmem:[%s6734_s2 + $0xe8] sm:$0xff]  ;;  %v1433_v63 = vld [vmem:[%s6735_s3 + $0x460] sm:$0xff] }
  0xff   : > { %v832_v30 = vpop.f32.mrf.mxu0  ;;  %1889 = vmatprep.subr.mxu1 %v1438_v5  ;;  %v1082_v38 = vmul.f32 %v1030_v10, %v558_v18  ;;  %v560_v26 = vadd.f32 %v559_v28, %v4378_v24  ;;  %1780 = vmatmul.mubr.f32.gmra.mxu1 %v1280_v20  ;;  %v1244_v45 = vmul.f32 %v1070_v14, %v1070_v14  ;;  %v1514_v62 = vld [vmem:[%s6735_s3 + $0x6e8] sm:$0xff]  ;;  %v1513_v10 = vld [vmem:[%s6735_s3 + $0x6e0] sm:$0xff]  ;;  %v1432_v18 = vld [vmem:[%s6735_s3 + $0x458] sm:$0xff] }
 0x100   : > { %v1200_v36 = vadd.f32 %v4533_v17, %v4526_v6  ;;  %v833_v40 = vadd.f32 %v832_v30, %v4405_v46  ;;  %v4563_v43 = vmul.f32 %v1049_v19, %v831_v27  ;;  %1939 = vmatprep.mubr.f32.mxu1 %v1246_v34  ;;  %v563_v57 = vpop.f32.mrf.mxu1  ;;  %1890 = vmatpush1.msra.mxu1 %v1437_v23  ;;  %v1512_v19 = vld [vmem:[%s6735_s3 + $0x6d8] sm:$0xff]  ;;  %v1056_v27 = vld [vmem:[%s6734_s2 + $0x148] sm:$0xff] }
 0x101   : > { %v836_v31 = vpop.f32.mrf.mxu0  ;;  %v1137_v48 = vadd.f32 %v1082_v38, %v1069_v7  ;;  %v1083_v49 = vmul.f32 %v1031_v29, %v560_v26  ;;  %v564_v52 = vadd.f32 %v563_v57, %v4405_v46  ;;  %1891 = vmatprep.subr.mxu1 %v1436_v35  ;;  %1850 = vmatprep.mubr.f32.mxu0 %v1244_v45  ;;  %v1431_v29 = vld [vmem:[%s6735_s3 + $0x450] sm:$0xff]  ;;  %v1430_v26 = vld [vmem:[%s6735_s3 + $0x448] sm:$0xff] }
 0x102   : > { %v4568_v39 = vmul.f32 %v1050_v32, %v833_v40  ;;  %v1192_v56 = vadd.f32 %v1191_v25, %v4563_v43  ;;  %v837_v47 = vadd.f32 %v836_v31, %v4451_v15  ;;  %v565_v59 = vpop.f32.mrf.mxu1  ;;  %1892 = vmatpush1.msra.mxu1 %v1435_v41  ;;  %1851 = vmatmul.mubr.f32.vlgmr.msra.gmra.mxu0 %v1243_v42  ;;  %v1057_v57 = vld [vmem:[%s6734_s2 + $0x150] sm:$0xff]  ;;  %v1429_v31 = vld [vmem:[%s6735_s3 + $0x440] sm:$0xff] }
 0x103   : > { %v838_v61 = vpop.f32.mrf.mxu0  ;;  %v1146_v3 = vadd.f32 %v1083_v49, %v1070_v14  ;;  %v1095_v5 = vmul.f32 %v1043_v44, %v564_v52  ;;  %v566_v7 = vadd.f32 %v565_v59, %v4405_v46  ;;  %1965 = vmatpush1.msra.mxu0 %v1515_v54  ;;  %1893 = vmatprep.subr.mxu1 %v1434_v55  ;;  %v1510_v44 = vld [vmem:[%s6735_s3 + $0x6c8] sm:$0xff]  ;;  %v1027_v54 = vld [vmem:[%s6734_s2 + $0x60] sm:$0xff] }
 0x104   : > { %v1201_v4 = vadd.f32 %v1200_v36, %v4568_v39  ;;  %v4599_v11 = vmul.f32 %v1062_v53, %v837_v47  ;;  %v839_v12 = vadd.f32 %v838_v61, %v4451_v15  ;;  %v1257_v14 = vmul.f32 %v1083_v49, %v1083_v49  ;;  %1966 = vmatprep.subr.mxu0 %v1514_v62  ;;  %v1040_v36 = vld [vmem:[%s6734_s2 + $0xc8] sm:$0xff]  ;;  %v1509_v55 = vld [vmem:[%s6735_s3 + $0x6c0] sm:$0xff]  ;;  %v1428_v61 = vld [vmem:[%s6735_s3 + $0x438] sm:$0xff] }
 0x105   : > { %v1138_v20 = vadd.f32 %v1137_v48, %v1095_v5  ;;  %v1096_v23 = vmul.f32 %v1044_v60, %v566_v7  ;;  %1894 = vmatpush1.msra.mxu1 %v1433_v63  ;;  %v1256_v28 = vmul.f32 %v1082_v38, %v1082_v38  ;;  %1967 = vmatpush1.msra.mxu0 %v1513_v10  ;;  %v1511_v38 = vld [vmem:[%s6735_s3 + $0x6d0] sm:$0xff]  ;;  %v1058_v60 = vld [vmem:[%s6734_s2 + $0x158] sm:$0xff] }
 0x106   : > { %v569_v25 = vpop.f32.mrf.mxu1  ;;  %v4615_v30 = vadd.f32 %v1192_v56, %v4599_v11  ;;  %v4617_v32 = vmul.f32 %v1063_v9, %v839_v12  ;;  %v3520_v35 = vpop.f32.mrf.mxu0  ;;  %1856 = vmatprep.mubr.f32.mxu0 %v1257_v14  ;;  %1895 = vmatprep.subr.mxu1 %v1432_v18  ;;  %v1508_v62 = vld [vmem:[%s6735_s3 + $0x6b8] sm:$0xff]  ;;  %v1269_v63 = vmul.f32 %v1095_v5, %v1095_v5  ;;  %v1427_v12 = vld [vmem:[%s6735_s3 + $0x430] sm:$0xff] }
 0x107   : > { %v570_v34 = vadd.f32 %v569_v25, %v4451_v15  ;;  %v1147_v40 = vadd.f32 %v1146_v3, %v1096_v23  ;;  %v1002_v41 = vadd.f32 %v3520_v35, %v4378_v24  ;;  %1968 = vmatprep.subr.mxu0 %v1512_v19  ;;  %v1270_v45 = vmul.f32 %v1096_v23, %v1096_v23  ;;  %v1066_v10 = vld [vmem:[%s6734_s2 + $0x198] sm:$0xff]  ;;  %v1059_v19 = vld [vmem:[%s6734_s2 + $0x160] sm:$0xff]  ;;  %v1426_v23 = vld [vmem:[%s6735_s3 + $0x428] sm:$0xff] }
 0x108   : > { %6749 = vst [vmem:[#allocation5_spill] sm:$0xff] %v4615_v30  ;;  %v571_v42 = vpop.f32.mrf.mxu1  ;;  %v4640_v48 = vadd.f32 %v1201_v4, %v4617_v32  ;;  %v996_v53 = vpop.f32.mrf.mxu0  ;;  %1857 = vmatmul.mubr.f32.gmra.mxu0 %v1256_v28  ;;  %1896 = vmatpush1.msra.mxu1 %v1431_v29  ;;  %v1506_v35 = vld [vmem:[%s6735_s3 + $0x6a8] sm:$0xff] }
 0x109   : > { %v4642_v49 = vmul.f32 %v1056_v27, %v570_v34  ;;  %v572_v52 = vadd.f32 %v571_v42, %v4451_v15  ;;  %v4651_v56 = vmul.f32 %v1040_v36, %v1002_v41  ;;  %v997_v47 = vadd.f32 %v996_v53, %v4368_v16  ;;  %1969 = vmatpush1.msra.mxu0 %v1511_v38  ;;  %v1053_v34 = vld [vmem:[%s6734_s2 + $0x130] sm:$0xff]  ;;  %v1425_v36 = vld [vmem:[%s6735_s3 + $0x420] sm:$0xff] }
 0x10a   : > { %6750 = vst [vmem:[#allocation6_spill] sm:$0xff] %v4640_v48  ;;  %1897 = vmatprep.subr.mxu1 %v1430_v26  ;;  %v658_v59 = vpop.f32.mrf.mxu1  ;;  %1970 = vmatprep.subr.mxu0 %v1510_v44  ;;  %v1505_v42 = vld [vmem:[%s6735_s3 + $0x6a0] sm:$0xff] }
 0x10b   : > { %v4664_v3 = vadd.f32 %v1138_v20, %v4642_v49  ;;  %v1109_v4 = vmul.f32 %v1057_v57, %v572_v52  ;;  %v659_v7 = vadd.f32 %v658_v59, %v4451_v15  ;;  %v3523_v9 = vpop.f32.mrf.mxu0  ;;  %1898 = vmatpush1.msra.mxu1 %v1429_v31  ;;  %v4673_v14 = vmul.f32 %v1027_v54, %v997_v47  ;;  %v1507_v20 = vld [vmem:[%s6735_s3 + $0x6b0] sm:$0xff]  ;;  %v1424_v57 = vld [vmem:[%s6735_s3 + $0x418] sm:$0xff] }
 0x10c   : > { %v1012_v5 = vadd.f32 %v3523_v9, %v4451_v15  ;;  %1971 = vmatpush1.msra.mxu0 %v1509_v55  ;;  %1862 = vmatprep.mubr.f32.mxu0 %v1270_v45  ;;  %v660_v18 = vpop.f32.mrf.mxu1  ;;  %v1229_v38 = vsel %vm1227_vm2, %v4651_v56, 0.0  ;;  %v1504_v52 = vld [vmem:[%s6735_s3 + $0x698] sm:$0xff]  ;;  %v1423_v55 = vld [vmem:[%s6735_s3 + $0x410] sm:$0xff]  ;;  %v1282_v47 = vmul.f32 %v4642_v49, %v4642_v49  ;;  %v1502_v49 = vld [vmem:[%s6735_s3 + $0x688] sm:$0xff] }
 0x10d   : > { %v4685_v25 = vadd.f32 %v1147_v40, %v1109_v4  ;;  %v4687_v27 = vmul.f32 %v1058_v60, %v659_v7  ;;  %1899 = vmatprep.subr.mxu1 %v1428_v61  ;;  %1972 = vmatprep.subr.mxu0 %v1508_v62  ;;  %v661_v28 = vadd.f32 %v660_v18, %v4451_v15  ;;  %v1006_v29 = vpop.f32.mrf.mxu0  ;;  %v1228_v26 = vsel %vm1227_vm2, %v4673_v14, 0.0  ;;  %v1503_v59 = vld [vmem:[%s6735_s3 + $0x690] sm:$0xff]  ;;  %v1422_v60 = vld [vmem:[%s6735_s3 + $0x408] sm:$0xff]  ;;  %v1421_v62 = vld [vmem:[%s6735_s3 + $0x400] sm:$0xff] }
 0x10e   : > { %v4703_v40 = vmul.f32 %v1066_v10, %v1012_v5  ;;  %v1007_v41 = vadd.f32 %v1006_v29, %v4405_v46  ;;  %1863 = vmatmul.mubr.f32.gmra.mxu0 %v1269_v63  ;;  %1900 = vmatpush1.msra.mxu1 %v1427_v12  ;;  %v1230_v44 = vadd.f32 %v1229_v38, %v1228_v26  ;;  %v1484_v7 = vld [vmem:[%s6735_s3 + $0x5f8] sm:$0xff]  ;;  %v1483_v12 = vld [vmem:[%s6735_s3 + $0x5f0] sm:$0xff]  ;;  %v1481_v29 = vld [vmem:[%s6735_s3 + $0x5e0] sm:$0xff] }
 0x10f   : > { %v4714_v31 = vadd.f32 %v4460_v21, %v4687_v27  ;;  %v4716_v45 = vmul.f32 %v1059_v19, %v661_v28  ;;  %1973 = vmatpush1.msra.mxu0 %v1507_v20  ;;  %1901 = vmatprep.subr.mxu1 %v1426_v23  ;;  %v1283_v54 = vmul.f32 %v1109_v4, %v1109_v4  ;;  %v1501_v4 = vld [vmem:[%s6735_s3 + $0x680] sm:$0xff]  ;;  %v1500_v10 = vld [vmem:[%s6735_s3 + $0x678] sm:$0xff]  ;;  %v1499_v18 = vld [vmem:[%s6735_s3 + $0x670] sm:$0xff] }
 0x110   : > { %v4721_v53 = vmul.f32 %v1053_v34, %v1007_v41  ;;  %1974 = vmatprep.subr.mxu0 %v1506_v35  ;;  %1902 = vmatpush1.msra.mxu1 %v1425_v36  ;;  %v1233_v61 = vsel %vm1227_vm2, %v4703_v40, 0.0  ;;  %v1482_v19 = vld [vmem:[%s6735_s3 + $0x5e8] sm:$0xff]  ;;  %v1022_v23 = vld [vmem:[%s6734_s2 + $0x38] sm:$0xff]  ;;  %v1021_v35 = vld [vmem:[%s6734_s2 + $0x30] sm:$0xff] }
 0x111   : > { %v4728_v21 = vadd.f32 %v4472_v33, %v4716_v45  ;;  %1975 = vmatpush1.msra.mxu0 %v1505_v42  ;;  %1903 = vmatprep.subr.mxu1 %v1424_v57  ;;  %v1498_v28 = vld [vmem:[%s6735_s3 + $0x668] sm:$0xff]  ;;  %v1497_v38 = vld [vmem:[%s6735_s3 + $0x660] sm:$0xff]  ;;  %v1480_v26 = vld [vmem:[%s6735_s3 + $0x5d8] sm:$0xff] }
 0x112   : > { %v1231_v33 = vsel %vm1227_vm2, %v4721_v53, 0.0  ;;  %1868 = vmatprep.mubr.f32.mxu0 %v1283_v54  ;;  %1976 = vmatprep.subr.mxu0 %v1504_v52  ;;  %v1034_v42 = vld [vmem:[%s6734_s2 + $0x98] sm:$0xff] }
 0x113   : > { %v1232_v63 = vadd.f32 %v1231_v33, %v1230_v44  ;;  %1869 = vmatmul.mubr.f32.gmra.mxu0 %v1282_v47  ;;  %1904 = vmatpush1.msra.mxu1 %v1423_v55  ;;  %v1496_v57 = vld [vmem:[%s6735_s3 + $0x658] sm:$0xff]  ;;  %v1479_v44 = vld [vmem:[%s6735_s3 + $0x5d0] sm:$0xff]  ;;  %v1478_v47 = vld [vmem:[%s6735_s3 + $0x5c8] sm:$0xff] }
 0x114   : > { %1977 = vmatpush1.msra.mxu0 %v1503_v59  ;;  %1905 = vmatprep.subr.mxu1 %v1422_v60  ;;  %v729_v9 = vpop.f32.mrf.mxu1  ;;  %v1495_v55 = vld [vmem:[%s6735_s3 + $0x650] sm:$0xff]  ;;  %v1035_v60 = vld [vmem:[%s6734_s2 + $0xa0] sm:$0xff] }
 0x115   : > { %v4760_v5 = vadd.f32 %v1233_v61, %v1232_v63  ;;  %1978 = vmatprep.subr.mxu0 %v1502_v49  ;;  %1906 = vmatpush1.msra.mxu1 %v1421_v62  ;;  %v730_v34 = vadd.f32 %v729_v9, %v4368_v16  ;;  %v1494_v61 = vld [vmem:[%s6735_s3 + $0x648] sm:$0xff]  ;;  %v1477_v33 = vld [vmem:[%s6735_s3 + $0x5c0] sm:$0xff] }
 0x116   : > { %1979 = vmatpush1.msra.mxu0 %v1501_v4  ;;  %1907 = vmatprep.subr.mxu1 %v1484_v7  ;;  %v731_v20 = vpop.f32.mrf.mxu1  ;;  %v1493_v4 = vld [vmem:[%s6735_s3 + $0x640] sm:$0xff]  ;;  %v1476_v7 = vld [vmem:[%s6735_s3 + $0x5b8] sm:$0xff] }
 0x117   : > { %6751 = vst [vmem:[#allocation7_spill] sm:$0xff] %v4760_v5  ;;  %1980 = vmatprep.subr.mxu0 %v1500_v10  ;;  %1908 = vmatpush2.msra.mxu1 %v1483_v12  ;;  %v732_v36 = vadd.f32 %v731_v20, %v4368_v16  ;;  %v4813_v49 = vmul.f32 %v1021_v35, %v730_v34  ;;  %v1047_v10 = vld [vmem:[%s6734_s2 + $0x100] sm:$0xff]  ;;  %v1492_v12 = vld [vmem:[%s6735_s3 + $0x638] sm:$0xff]  ;;  %v1048_v35 = vld [vmem:[%s6734_s2 + $0x108] sm:$0xff] }
 0x118   : > { %1981 = vmatpush1.msra.mxu0 %v1499_v18  ;;  %1909 = vmatprep.subr.mxu1 %v1482_v19  ;;  %v735_v41 = vpop.f32.mrf.mxu1  ;;  %v1475_v18 = vld [vmem:[%s6735_s3 + $0x5b0] sm:$0xff] }
 0x119   : > { %v1074_v52 = vmul.f32 %v1022_v23, %v732_v36  ;;  %1982 = vmatprep.subr.mxu0 %v1498_v28  ;;  %1910 = vmatpush2.msra.mxu1 %v1481_v29  ;;  %v736_v54 = vadd.f32 %v735_v41, %v4378_v24  ;;  %v1491_v29 = vld [vmem:[%s6735_s3 + $0x630] sm:$0xff]  ;;  %v1474_v36 = vld [vmem:[%s6735_s3 + $0x5a8] sm:$0xff] }
 0x11a   : > { %1983 = vmatpush1.msra.mxu0 %v1497_v38  ;;  %1911 = vmatprep.subr.mxu1 %v1480_v26  ;;  %v737_v59 = vpop.f32.mrf.mxu1  ;;  %v1490_v38 = vld [vmem:[%s6735_s3 + $0x628] sm:$0xff] }
 0x11b   : > { %v4815_v62 = vmul.f32 %v1034_v42, %v736_v54  ;;  %1984 = vmatprep.subr.mxu0 %v1496_v57  ;;  %1912 = vmatpush2.msra.mxu1 %v1479_v44  ;;  %v738_v63 = vadd.f32 %v737_v59, %v4378_v24  ;;  %v1248_v19 = vmul.f32 %v1074_v52, %v1074_v52  ;;  %v1473_v57 = vld [vmem:[%s6735_s3 + $0x5a0] sm:$0xff] }
 0x11c   : > { %1985 = vmatpush1.msra.mxu0 %v1495_v55  ;;  %1913 = vmatprep.subr.mxu1 %v1478_v47  ;;  %v741_v9 = vpop.f32.mrf.mxu1  ;;  %v1489_v44 = vld [vmem:[%s6735_s3 + $0x620] sm:$0xff]  ;;  %v1472_v55 = vld [vmem:[%s6735_s3 + $0x598] sm:$0xff] }
 0x11d   : > { %v1173_v20 = vadd.f32 %v4815_v62, %v4813_v49  ;;  %v4835_v23 = vmul.f32 %v1035_v60, %v738_v63  ;;  %1986 = vmatprep.subr.mxu0 %v1494_v61  ;;  %1914 = vmatpush2.msra.mxu1 %v1477_v33  ;;  %v742_v28 = vadd.f32 %v741_v9, %v4405_v46  ;;  %v1488_v47 = vld [vmem:[%s6735_s3 + $0x618] sm:$0xff]  ;;  %v1471_v33 = vld [vmem:[%s6735_s3 + $0x590] sm:$0xff]  ;;  %v1470_v9 = vld [vmem:[%s6735_s3 + $0x588] sm:$0xff] }
 0x11e   : > { %1987 = vmatpush1.msra.mxu0 %v1493_v4  ;;  %1915 = vmatprep.subr.mxu1 %v1476_v7  ;;  %v743_v34 = vpop.f32.mrf.mxu1  ;;  %v1487_v63 = vld [vmem:[%s6735_s3 + $0x610] sm:$0xff] }
 0x11f   : > { %v1182_v26 = vadd.f32 %v4835_v23, %v1074_v52  ;;  %v4851_v41 = vmul.f32 %v1047_v10, %v742_v28  ;;  %1988 = vmatprep.subr.mxu0 %v1492_v12  ;;  %1916 = vmatpush2.msra.mxu1 %v1475_v18  ;;  %v744_v42 = vadd.f32 %v743_v34, %v4405_v46  ;;  %v1060_v52 = vld [vmem:[%s6734_s2 + $0x168] sm:$0xff]  ;;  %v1061_v7 = vld [vmem:[%s6734_s2 + $0x170] sm:$0xff]  ;;  %v1485_v28 = vld [vmem:[%s6735_s3 + $0x600] sm:$0xff] }
 0x120   : > { %1989 = vmatpush1.msra.mxu0 %v1491_v29  ;;  %2028 = vmatprep.mubr.f32.mxu0 %v1248_v19  ;;  %v747_v54 = vpop.f32.mrf.mxu1  ;;  %v1486_v10 = vld [vmem:[%s6735_s3 + $0x608] sm:$0xff]  ;;  %v1468_v34 = vld [vmem:[%s6735_s3 + $0x578] sm:$0xff] }
 0x121   : > { %v1174_v59 = vadd.f32 %v1173_v20, %v4851_v41  ;;  %v4870_v60 = vmul.f32 %v1048_v35, %v744_v42  ;;  %1917 = vmatprep.subr.mxu1 %v1474_v36  ;;  %1990 = vmatprep.subr.mxu0 %v1490_v38  ;;  %v748_v61 = vadd.f32 %v747_v54, %v4451_v15  ;;  %v1469_v20 = vld [vmem:[%s6735_s3 + $0x580] sm:$0xff]  ;;  %v1548_v35 = vld [vmem:[%s6735_s3 + $0x7f8] sm:$0xff]  ;;  %v1547_v42 = vld [vmem:[%s6735_s3 + $0x7f0] sm:$0xff] }
 0x122   : > { %1918 = vmatpush2.msra.mxu1 %v1473_v57  ;;  %1991 = vmatpush1.msra.mxu0 %v1489_v44  ;;  %v749_v4 = vpop.f32.mrf.mxu1  ;;  %v1466_v44 = vld [vmem:[%s6735_s3 + $0x568] sm:$0xff] }
 0x123   : > { %v1183_v12 = vadd.f32 %v1182_v26, %v4870_v60  ;;  %v4889_v18 = vmul.f32 %v1060_v52, %v748_v61  ;;  %1919 = vmatprep.subr.mxu1 %v1472_v55  ;;  %1992 = vmatprep.subr.mxu0 %v1488_v47  ;;  %v750_v19 = vadd.f32 %v749_v4, %v4451_v15  ;;  %v1467_v26 = vld [vmem:[%s6735_s3 + $0x570] sm:$0xff]  ;;  %v1546_v54 = vld [vmem:[%s6735_s3 + $0x7e8] sm:$0xff]  ;;  %v1545_v61 = vld [vmem:[%s6735_s3 + $0x7e0] sm:$0xff] }
 0x124   : > { %1920 = vmatpush2.msra.mxu1 %v1471_v33  ;;  %1993 = vmatpush1.msra.mxu0 %v1487_v63  ;;  %v907_v29 = vpop.f32.mrf.mxu1  ;;  %v1025_v47 = vld [vmem:[%s6734_s2 + $0x50] sm:$0xff]  ;;  %v1038_v4 = vld [vmem:[%s6734_s2 + $0xb8] sm:$0xff] }
 0x125   : > { %v4905_v36 = vadd.f32 %v1174_v59, %v4889_v18  ;;  %v4907_v38 = vmul.f32 %v1061_v7, %v750_v19  ;;  %1921 = vmatprep.subr.mxu1 %v1470_v9  ;;  %1994 = vmatprep.subr.mxu0 %v1486_v10  ;;  %v908_v55 = vadd.f32 %v907_v29, %v4368_v16  ;;  %v1465_v59 = vld [vmem:[%s6735_s3 + $0x560] sm:$0xff]  ;;  %v1464_v7 = vld [vmem:[%s6735_s3 + $0x558] sm:$0xff]  ;;  %v1543_v19 = vld [vmem:[%s6735_s3 + $0x7d0] sm:$0xff] }
 0x126   : > { %1922 = vmatpush2.msra.mxu1 %v1469_v20  ;;  %1995 = vmatpush1.msra.mxu0 %v1485_v28  ;;  %v909_v57 = vpop.f32.mrf.mxu1  ;;  %v1544_v9 = vld [vmem:[%s6735_s3 + $0x7d8] sm:$0xff]  ;;  %v1039_v28 = vld [vmem:[%s6734_s2 + $0xc0] sm:$0xff]  ;;  %v1462_v29 = vld [vmem:[%s6735_s3 + $0x548] sm:$0xff] }
 0x127   : > { %v4922_v52 = vadd.f32 %v1183_v12, %v4907_v38  ;;  %1923 = vmatprep.subr.mxu1 %v1468_v34  ;;  %1996 = vmatprep.subr.mxu0 %v1548_v35  ;;  %v910_v33 = vadd.f32 %v909_v57, %v4368_v16  ;;  %v1026_v10 = vld [vmem:[%s6734_s2 + $0x58] sm:$0xff]  ;;  %v1463_v12 = vld [vmem:[%s6735_s3 + $0x550] sm:$0xff]  ;;  %v1542_v34 = vld [vmem:[%s6735_s3 + $0x7c8] sm:$0xff]  ;;  %v4963_v35 = vmul.f32 %v1025_v47, %v908_v55 }
 0x128   : > { %1924 = vmatpush2.msra.mxu1 %v1467_v26  ;;  %1997 = vmatpush2.msra.mxu0 %v1547_v42  ;;  %v913_v63 = vpop.f32.mrf.mxu1  ;;  %v1461_v57 = vld [vmem:[%s6735_s3 + $0x540] sm:$0xff] }
 0x129   : > { %6752 = vst [vmem:[#allocation8_spill] sm:$0xff] %v4922_v52  ;;  %1925 = vmatprep.subr.mxu1 %v1466_v44  ;;  %1998 = vmatprep.subr.mxu0 %v1546_v54  ;;  %v914_v16 = vadd.f32 %v913_v63, %v4378_v24  ;;  %v1541_v44 = vld [vmem:[%s6735_s3 + $0x7c0] sm:$0xff]  ;;  %v4974_v54 = vmul.f32 %v1026_v10, %v910_v33  ;;  %v1052_v10 = vld [vmem:[%s6734_s2 + $0x128] sm:$0xff] }
 0x12a   : > { %1926 = vmatpush2.msra.mxu1 %v1465_v59  ;;  %1999 = vmatpush2.msra.mxu0 %v1545_v61  ;;  %v915_v20 = vpop.f32.mrf.mxu1  ;;  %v1051_v47 = vld [vmem:[%s6734_s2 + $0x120] sm:$0xff]  ;;  %v1540_v59 = vld [vmem:[%s6735_s3 + $0x7b8] sm:$0xff] }
 0x12b   : > { %v4965_v26 = vmul.f32 %v1038_v4, %v914_v16  ;;  %1927 = vmatprep.subr.mxu1 %v1464_v7  ;;  %2000 = vmatprep.subr.mxu0 %v1544_v9  ;;  %v916_v42 = vadd.f32 %v915_v20, %v4378_v24  ;;  %v1460_v24 = vld [vmem:[%s6735_s3 + $0x538] sm:$0xff]  ;;  %v1459_v4 = vld [vmem:[%s6735_s3 + $0x530] sm:$0xff]  ;;  %v1458_v16 = vld [vmem:[%s6735_s3 + $0x528] sm:$0xff] }
 0x12c   : > { %1928 = vmatpush2.msra.mxu1 %v1463_v12  ;;  %2001 = vmatpush2.msra.mxu0 %v1543_v19  ;;  %v919_v55 = vpop.f32.mrf.mxu1  ;;  %v1539_v7 = vld [vmem:[%s6735_s3 + $0x7b0] sm:$0xff]  ;;  %v1538_v12 = vld [vmem:[%s6735_s3 + $0x7a8] sm:$0xff] }
 0x12d   : > { %v1209_v61 = vadd.f32 %v4965_v26, %v4963_v35  ;;  %v4987_v33 = vmul.f32 %v1039_v28, %v916_v42  ;;  %1929 = vmatprep.subr.mxu1 %v1462_v29  ;;  %2002 = vmatprep.subr.mxu0 %v1542_v34  ;;  %v920_v63 = vadd.f32 %v919_v55, %v4405_v46  ;;  %v1457_v29 = vld [vmem:[%s6735_s3 + $0x520] sm:$0xff] }
 0x12e   : > { %1930 = vmatpush2.msra.mxu1 %v1461_v57  ;;  %2003 = vmatpush2.msra.mxu0 %v1541_v44  ;;  %v921_v9 = vpop.f32.mrf.mxu1  ;;  %v1537_v34 = vld [vmem:[%s6735_s3 + $0x7a0] sm:$0xff]  ;;  %v1064_v57 = vld [vmem:[%s6734_s2 + $0x188] sm:$0xff]  ;;  %v1456_v44 = vld [vmem:[%s6735_s3 + $0x518] sm:$0xff] }
 0x12f   : > { %v1218_v19 = vadd.f32 %v4987_v33, %v4974_v54  ;;  %v5007_v20 = vmul.f32 %v1051_v47, %v920_v63  ;;  %1931 = vmatprep.subr.mxu1 %v1460_v24  ;;  %2004 = vmatprep.subr.mxu0 %v1540_v59  ;;  %v922_v28 = vadd.f32 %v921_v9, %v4405_v46  ;;  %v1536_v46 = vld [vmem:[%s6735_s3 + $0x798] sm:$0xff]  ;;  %v1455_v59 = vld [vmem:[%s6735_s3 + $0x510] sm:$0xff]  ;;  %v1534_v9 = vld [vmem:[%s6735_s3 + $0x788] sm:$0xff] }
 0x130   : > { %1932 = vmatpush2.msra.mxu1 %v1459_v4  ;;  %2005 = vmatpush2.msra.mxu0 %v1539_v7  ;;  %v925_v42 = vpop.f32.mrf.mxu1  ;;  %v1535_v63 = vld [vmem:[%s6735_s3 + $0x790] sm:$0xff]  ;;  %v1454_v7 = vld [vmem:[%s6735_s3 + $0x508] sm:$0xff] }
 0x131   : > { %v1210_v55 = vadd.f32 %v1209_v61, %v5007_v20  ;;  %v5026_v47 = vmul.f32 %v1052_v10, %v922_v28  ;;  %1933 = vmatprep.subr.mxu1 %v1458_v16  ;;  %2006 = vmatprep.subr.mxu0 %v1538_v12  ;;  %v926_v24 = vadd.f32 %v925_v42, %v4451_v15  ;;  %v1065_v61 = vld [vmem:[%s6734_s2 + $0x190] sm:$0xff]  ;;  %v1453_v28 = vld [vmem:[%s6735_s3 + $0x500] sm:$0xff] }
 0x132   : > { %1934 = vmatpush2.msra.mxu1 %v1457_v29  ;;  %2007 = vmatpush2.msra.mxu0 %v1537_v34  ;;  %v927_v4 = vpop.f32.mrf.mxu1  ;;  %v1533_v29 = vld [vmem:[%s6735_s3 + $0x780] sm:$0xff]  ;;  %v1245_v34 = vmul.f32 %v4391_v37, %v4391_v37  ;;  %v1531_v37 = vld [vmem:[%s6735_s3 + $0x770] sm:$0xff] }
 0x133   : > { %v1219_v10 = vadd.f32 %v1218_v19, %v5026_v47  ;;  %v5045_v16 = vmul.f32 %v1064_v57, %v926_v24  ;;  %1935 = vmatprep.subr.mxu1 %v1456_v44  ;;  %2008 = vmatprep.subr.mxu0 %v1536_v46  ;;  %v928_v12 = vadd.f32 %v927_v4, %v4451_v15  ;;  %v1532_v19 = vld [vmem:[%s6735_s3 + $0x778] sm:$0xff]  ;;  %v1579_v46 = vld [vmem:[%s6735_s3 + $0x8f0] sm:$0xff]  ;;  %v1530_v24 = vld [vmem:[%s6735_s3 + $0x768] sm:$0xff] }
 0x134   : > { %1936 = vmatpush2.msra.mxu1 %v1455_v59  ;;  %2009 = vmatpush2.msra.mxu0 %v1535_v63  ;;  %v1580_v57 = vld [vmem:[%s6735_s3 + $0x8f8] sm:$0xff]  ;;  %v1259_v44 = vmul.f32 %v4423_v58, %v4423_v58  ;;  %v1578_v58 = vld [vmem:[%s6735_s3 + $0x8e8] sm:$0xff]  ;;  %v1529_v59 = vld [vmem:[%s6735_s3 + $0x760] sm:$0xff] }
 0x135   : > { %v5060_v42 = vadd.f32 %v1210_v55, %v5045_v16  ;;  %v5062_v15 = vmul.f32 %v1065_v61, %v928_v12  ;;  %1937 = vmatprep.subr.mxu1 %v1454_v7  ;;  %2010 = vmatprep.subr.mxu0 %v1534_v9  ;;  %v1577_v63 = vld [vmem:[%s6735_s3 + $0x8e0] sm:$0xff]  ;;  %v1528_v4 = vld [vmem:[%s6735_s3 + $0x758] sm:$0xff]  ;;  %v1258_v61 = vmul.f32 %v4407_v50, %v4407_v50  ;;  %v1575_v12 = vld [vmem:[%s6735_s3 + $0x8d0] sm:$0xff] }
 0x136   : > { %1938 = vmatpush2.msra.mxu1 %v1453_v28  ;;  %2011 = vmatpush2.msra.mxu0 %v1533_v29  ;;  %v1576_v7 = vld [vmem:[%s6735_s3 + $0x8d8] sm:$0xff]  ;;  %v1272_v9 = vmul.f32 %v4462_v22, %v4462_v22  ;;  %v1526_v50 = vld [vmem:[%s6735_s3 + $0x748] sm:$0xff]  ;;  %v1525_v22 = vld [vmem:[%s6735_s3 + $0x740] sm:$0xff] }
 0x137   : > { %6753 = vst [vmem:[#allocation9_spill] sm:$0xff] %v5060_v42  ;;  %v5076_v55 = vadd.f32 %v1219_v10, %v5062_v15  ;;  %1940 = vmatmul.mubr.f32.vlgmr.msra.gmra.mxu1 %v1245_v34  ;;  %2012 = vmatprep.subr.mxu0 %v1532_v19  ;;  %v1527_v10 = vld [vmem:[%s6735_s3 + $0x750] sm:$0xff]  ;;  %v1574_v28 = vld [vmem:[%s6735_s3 + $0x8c8] sm:$0xff]  ;;  %v1573_v29 = vld [vmem:[%s6735_s3 + $0x8c0] sm:$0xff]  ;;  %v1271_v34 = vmul.f32 %v4448_v13, %v4448_v13 }
 0x138   : > { %2053 = vmatprep.subr.mxu1 %v1580_v57  ;;  %1945 = vmatprep.mubr.f32.mxu1 %v1259_v44  ;;  %v1524_v19 = vld [vmem:[%s6735_s3 + $0x738] sm:$0xff]  ;;  %v1285_v44 = vmul.f32 %v4716_v45, %v4716_v45  ;;  %v1522_v13 = vld [vmem:[%s6735_s3 + $0x728] sm:$0xff]  ;;  %v1521_v45 = vld [vmem:[%s6735_s3 + $0x720] sm:$0xff] }
 0x139   : > { %6754 = vst [vmem:[#allocation10_spill] sm:$0xff] %v5076_v55  ;;  %2013 = vmatpush2.msra.mxu0 %v1531_v37  ;;  %2054 = vmatpush1.msra.mxu1 %v1579_v46  ;;  %v1572_v57 = vld [vmem:[%s6735_s3 + $0x8b8] sm:$0xff]  ;;  %v1523_v37 = vld [vmem:[%s6735_s3 + $0x730] sm:$0xff] }
 0x13a   : > { %2014 = vmatprep.subr.mxu0 %v1530_v24  ;;  %2055 = vmatprep.subr.mxu1 %v1578_v58  ;;  %v1571_v46 = vld [vmem:[%s6735_s3 + $0x8b0] sm:$0xff]  ;;  %v1570_v24 = vld [vmem:[%s6735_s3 + $0x8a8] sm:$0xff]  ;;  %v1569_v58 = vld [vmem:[%s6735_s3 + $0x8a0] sm:$0xff] }
 0x13b   : > { %2015 = vmatpush2.msra.mxu0 %v1529_v59  ;;  %2056 = vmatpush1.msra.mxu1 %v1577_v63  ;;  %v1520_v59 = vld [vmem:[%s6735_s3 + $0x718] sm:$0xff]  ;;  %v1284_v63 = vmul.f32 %v4687_v27, %v4687_v27  ;;  %v1518_v27 = vld [vmem:[%s6735_s3 + $0x708] sm:$0xff] }
 0x13c   : > { %1946 = vmatmul.mubr.f32.gmra.mxu1 %v1258_v61  ;;  %2016 = vmatprep.subr.mxu0 %v1528_v4  ;;  %v1568_v4 = vld [vmem:[%s6735_s3 + $0x898] sm:$0xff]  ;;  %v1519_v61 = vld [vmem:[%s6735_s3 + $0x710] sm:$0xff] }
 0x13d   : > { %2057 = vmatprep.subr.mxu1 %v1576_v7  ;;  %1951 = vmatprep.mubr.f32.mxu1 %v1272_v9  ;;  %v1567_v7 = vld [vmem:[%s6735_s3 + $0x890] sm:$0xff]  ;;  %v1250_v9 = vmul.f32 %v4526_v6, %v4526_v6  ;;  %v1564_v6 = vld [vmem:[%s6735_s3 + $0x878] sm:$0xff] }
 0x13e   : > { %2017 = vmatpush2.msra.mxu0 %v1527_v10  ;;  %2058 = vmatpush1.msra.mxu1 %v1575_v12  ;;  %v1566_v10 = vld [vmem:[%s6735_s3 + $0x888] sm:$0xff]  ;;  %v1517_v12 = vld [vmem:[%s6735_s3 + $0x700] sm:$0xff] }
 0x13f   : > { %2018 = vmatprep.subr.mxu0 %v1526_v50  ;;  %2059 = vmatprep.subr.mxu1 %v1574_v28  ;;  %v1565_v50 = vld [vmem:[%s6735_s3 + $0x880] sm:$0xff]  ;;  %v1247_v28 = vmul.f32 %v4813_v49, %v4813_v49  ;;  %v1562_v49 = vld [vmem:[%s6735_s3 + $0x868] sm:$0xff] }
 0x140   : > { %2019 = vmatpush2.msra.mxu0 %v1525_v22  ;;  %2060 = vmatpush1.msra.mxu1 %v1573_v29  ;;  %v1644_v22 = vld [vmem:[%s6735_s3 + $0xaf8] sm:$0xff]  ;;  %v1261_v29 = vmul.f32 %v4835_v23, %v4835_v23  ;;  %v1561_v23 = vld [vmem:[%s6735_s3 + $0x860] sm:$0xff] }
 0x141   : > { %1952 = vmatmul.mubr.f32.gmra.mxu1 %v1271_v34  ;;  %2020 = vmatprep.subr.mxu0 %v1524_v19  ;;  %v1563_v19 = vld [vmem:[%s6735_s3 + $0x870] sm:$0xff] }
 0x142   : > { %2061 = vmatprep.subr.mxu1 %v1572_v57  ;;  %1957 = vmatprep.mubr.f32.mxu1 %v1285_v44  ;;  %v1643_v34 = vld [vmem:[%s6735_s3 + $0xaf0] sm:$0xff]  ;;  %v1642_v57 = vld [vmem:[%s6735_s3 + $0xae8] sm:$0xff]  ;;  %v1641_v44 = vld [vmem:[%s6735_s3 + $0xae0] sm:$0xff] }
 0x143   : > { %2021 = vmatpush2.msra.mxu0 %v1523_v37  ;;  %2062 = vmatpush1.msra.mxu1 %v1571_v46  ;;  %v1560_v37 = vld [vmem:[%s6735_s3 + $0x858] sm:$0xff]  ;;  %v1260_v46 = vmul.f32 %v4815_v62, %v4815_v62  ;;  %v1558_v62 = vld [vmem:[%s6735_s3 + $0x848] sm:$0xff] }
 0x144   : > { %2022 = vmatprep.subr.mxu0 %v1522_v13  ;;  %2063 = vmatprep.subr.mxu1 %v1570_v24  ;;  %v1640_v13 = vld [vmem:[%s6735_s3 + $0xad8] sm:$0xff]  ;;  %v1274_v24 = vmul.f32 %v4870_v60, %v4870_v60  ;;  %v1557_v60 = vld [vmem:[%s6735_s3 + $0x840] sm:$0xff] }
 0x145   : > { %2023 = vmatpush2.msra.mxu0 %v1521_v45  ;;  %2064 = vmatpush1.msra.mxu1 %v1569_v58  ;;  %v1559_v45 = vld [vmem:[%s6735_s3 + $0x850] sm:$0xff] }
 0x146   : > { %1958 = vmatmul.mubr.f32.gmra.mxu1 %v1284_v63  ;;  %2024 = vmatprep.subr.mxu0 %v1520_v59  ;;  %v1639_v58 = vld [vmem:[%s6735_s3 + $0xad0] sm:$0xff]  ;;  %v1638_v59 = vld [vmem:[%s6735_s3 + $0xac8] sm:$0xff]  ;;  %v1637_v63 = vld [vmem:[%s6735_s3 + $0xac0] sm:$0xff] }
 0x147   : > { %2065 = vmatprep.subr.mxu1 %v1568_v4  ;;  %2025 = vmatpush2.msra.mxu0 %v1519_v61  ;;  %v1556_v4 = vld [vmem:[%s6735_s3 + $0x838] sm:$0xff]  ;;  %v1273_v61 = vmul.f32 %v4851_v41, %v4851_v41  ;;  %v1554_v41 = vld [vmem:[%s6735_s3 + $0x828] sm:$0xff] }
 0x148   : > { %2066 = vmatpush1.msra.mxu1 %v1567_v7  ;;  %2117 = vmatprep.mubr.f32.mxu1 %v1250_v9  ;;  %v1636_v7 = vld [vmem:[%s6735_s3 + $0xab8] sm:$0xff]  ;;  %v1287_v9 = vmul.f32 %v4907_v38, %v4907_v38  ;;  %v1553_v38 = vld [vmem:[%s6735_s3 + $0x820] sm:$0xff] }
 0x149   : > { %2026 = vmatprep.subr.mxu0 %v1518_v27  ;;  %2067 = vmatprep.subr.mxu1 %v1566_v10  ;;  %v1555_v27 = vld [vmem:[%s6735_s3 + $0x830] sm:$0xff] }
 0x14a   : > { %2027 = vmatpush2.msra.mxu0 %v1517_v12  ;;  %2068 = vmatpush1.msra.mxu1 %v1565_v50  ;;  %v1635_v10 = vld [vmem:[%s6735_s3 + $0xab0] sm:$0xff]  ;;  %v1634_v12 = vld [vmem:[%s6735_s3 + $0xaa8] sm:$0xff]  ;;  %v1633_v50 = vld [vmem:[%s6735_s3 + $0xaa0] sm:$0xff] }
 0x14b   : > { %2029 = vmatmul.mubr.f32.vlgmr.msra.gmra.mxu0 %v1247_v28  ;;  %2069 = vmatprep.subr.mxu1 %v1564_v6  ;;  %v1552_v6 = vld [vmem:[%s6735_s3 + $0x818] sm:$0xff]  ;;  %v1286_v28 = vmul.f32 %v4889_v18, %v4889_v18  ;;  %v1550_v18 = vld [vmem:[%s6735_s3 + $0x808] sm:$0xff] }
 0x14c   : > { %2142 = vmatprep.subr.mxu0 %v1644_v22  ;;  %2034 = vmatprep.mubr.f32.mxu0 %v1261_v29  ;;  %v1632_v22 = vld [vmem:[%s6735_s3 + $0xa98] sm:$0xff]  ;;  %v1551_v29 = vld [vmem:[%s6735_s3 + $0x810] sm:$0xff] }
 0x14d   : > { %2070 = vmatpush1.msra.mxu1 %v1563_v19  ;;  %2143 = vmatpush1.msra.mxu0 %v1643_v34  ;;  %v1631_v19 = vld [vmem:[%s6735_s3 + $0xa90] sm:$0xff]  ;;  %v1252_v34 = vmul.f32 %v4974_v54, %v4974_v54  ;;  %v1612_v54 = vld [vmem:[%s6735_s3 + $0x9f8] sm:$0xff] }
 0x14e   : > { %2071 = vmatprep.subr.mxu1 %v1562_v49  ;;  %2144 = vmatprep.subr.mxu0 %v1642_v57  ;;  %v1630_v49 = vld [vmem:[%s6735_s3 + $0xa88] sm:$0xff]  ;;  %v1549_v57 = vld [vmem:[%s6735_s3 + $0x800] sm:$0xff] }
 0x14f   : > { %2072 = vmatpush1.msra.mxu1 %v1561_v23  ;;  %2145 = vmatpush1.msra.mxu0 %v1641_v44  ;;  %v1629_v23 = vld [vmem:[%s6735_s3 + $0xa80] sm:$0xff]  ;;  %v1628_v44 = vld [vmem:[%s6735_s3 + $0xa78] sm:$0xff] }
 0x150   : > { %2035 = vmatmul.mubr.f32.gmra.mxu0 %v1260_v46  ;;  %2073 = vmatprep.subr.mxu1 %v1560_v37  ;;  %v1611_v37 = vld [vmem:[%s6735_s3 + $0x9f0] sm:$0xff] }
 0x151   : > { %2146 = vmatprep.subr.mxu0 %v1640_v13  ;;  %2040 = vmatprep.mubr.f32.mxu0 %v1274_v24  ;;  %v1627_v46 = vld [vmem:[%s6735_s3 + $0xa70] sm:$0xff]  ;;  %v1610_v13 = vld [vmem:[%s6735_s3 + $0x9e8] sm:$0xff] }
 0x152   : > { %2074 = vmatpush1.msra.mxu1 %v1559_v45  ;;  %2147 = vmatpush1.msra.mxu0 %v1639_v58  ;;  %v1626_v24 = vld [vmem:[%s6735_s3 + $0xa68] sm:$0xff]  ;;  %v1609_v45 = vld [vmem:[%s6735_s3 + $0x9e0] sm:$0xff] }
 0x153   : > { %2075 = vmatprep.subr.mxu1 %v1558_v62  ;;  %2148 = vmatprep.subr.mxu0 %v1638_v59  ;;  %v1625_v58 = vld [vmem:[%s6735_s3 + $0xa60] sm:$0xff]  ;;  %v1608_v62 = vld [vmem:[%s6735_s3 + $0x9d8] sm:$0xff] }
 0x154   : > { %2076 = vmatpush1.msra.mxu1 %v1557_v60  ;;  %2149 = vmatpush1.msra.mxu0 %v1637_v63  ;;  %v1624_v59 = vld [vmem:[%s6735_s3 + $0xa58] sm:$0xff]  ;;  %v1607_v60 = vld [vmem:[%s6735_s3 + $0x9d0] sm:$0xff] }
 0x155   : > { %2041 = vmatmul.mubr.f32.gmra.mxu0 %v1273_v61  ;;  %2077 = vmatprep.subr.mxu1 %v1556_v4  ;;  %v1623_v63 = vld [vmem:[%s6735_s3 + $0xa50] sm:$0xff]  ;;  %v1606_v4 = vld [vmem:[%s6735_s3 + $0x9c8] sm:$0xff] }
 0x156   : > { %2150 = vmatprep.subr.mxu0 %v1636_v7  ;;  %2046 = vmatprep.mubr.f32.mxu0 %v1287_v9  ;;  %v1622_v61 = vld [vmem:[%s6735_s3 + $0xa48] sm:$0xff]  ;;  %v1605_v7 = vld [vmem:[%s6735_s3 + $0x9c0] sm:$0xff] }
 0x157   : > { %2078 = vmatpush1.msra.mxu1 %v1555_v27  ;;  %2151 = vmatpush1.msra.mxu0 %v1635_v10  ;;  %v1621_v9 = vld [vmem:[%s6735_s3 + $0xa40] sm:$0xff]  ;;  %v1604_v27 = vld [vmem:[%s6735_s3 + $0x9b8] sm:$0xff] }
 0x158   : > { %2079 = vmatprep.subr.mxu1 %v1554_v41  ;;  %2152 = vmatprep.subr.mxu0 %v1634_v12  ;;  %v1620_v10 = vld [vmem:[%s6735_s3 + $0xa38] sm:$0xff]  ;;  %v1603_v41 = vld [vmem:[%s6735_s3 + $0x9b0] sm:$0xff] }
 0x159   : > { %2080 = vmatpush1.msra.mxu1 %v1553_v38  ;;  %2153 = vmatpush1.msra.mxu0 %v1633_v50  ;;  %v1619_v12 = vld [vmem:[%s6735_s3 + $0xa30] sm:$0xff]  ;;  %v1602_v38 = vld [vmem:[%s6735_s3 + $0x9a8] sm:$0xff] }
 0x15a   : > { %2047 = vmatmul.mubr.f32.gmra.mxu0 %v1286_v28  ;;  %2081 = vmatprep.subr.mxu1 %v1552_v6  ;;  %v1618_v50 = vld [vmem:[%s6735_s3 + $0xa28] sm:$0xff]  ;;  %v1601_v6 = vld [vmem:[%s6735_s3 + $0x9a0] sm:$0xff] }
 0x15b   : > { %2154 = vmatprep.subr.mxu0 %v1632_v22  ;;  %2082 = vmatpush1.msra.mxu1 %v1551_v29  ;;  %v1617_v28 = vld [vmem:[%s6735_s3 + $0xa20] sm:$0xff]  ;;  %v1600_v22 = vld [vmem:[%s6735_s3 + $0x998] sm:$0xff] }
 0x15c   : > { %2155 = vmatpush1.msra.mxu0 %v1631_v19  ;;  %2206 = vmatprep.mubr.f32.mxu0 %v1252_v34  ;;  %v1616_v29 = vld [vmem:[%s6735_s3 + $0xa18] sm:$0xff]  ;;  %v1599_v19 = vld [vmem:[%s6735_s3 + $0x990] sm:$0xff] }
 0x15d   : > { %2083 = vmatprep.subr.mxu1 %v1550_v18  ;;  %2156 = vmatprep.subr.mxu0 %v1630_v49  ;;  %v1615_v34 = vld [vmem:[%s6735_s3 + $0xa10] sm:$0xff]  ;;  %v1598_v18 = vld [vmem:[%s6735_s3 + $0x988] sm:$0xff] }
 0x15e   : > { %2084 = vmatpush1.msra.mxu1 %v1549_v57  ;;  %2157 = vmatpush1.msra.mxu0 %v1629_v23  ;;  %v1614_v49 = vld [vmem:[%s6735_s3 + $0xa08] sm:$0xff]  ;;  %v1597_v57 = vld [vmem:[%s6735_s3 + $0x980] sm:$0xff] }
 0x15f   : > { %2085 = vmatprep.subr.mxu1 %v1612_v54  ;;  %2158 = vmatprep.subr.mxu0 %v1628_v44  ;;  %v1613_v23 = vld [vmem:[%s6735_s3 + $0xa00] sm:$0xff]  ;;  %v1596_v54 = vld [vmem:[%s6735_s3 + $0x978] sm:$0xff] }
 0x160   : > { %2086 = vmatpush2.msra.mxu1 %v1611_v37  ;;  %2159 = vmatpush1.msra.mxu0 %v1627_v46  ;;  %v1676_v44 = vld [vmem:[%s6735_s3 + $0xbf8] sm:$0xff]  ;;  %v1595_v37 = vld [vmem:[%s6735_s3 + $0x970] sm:$0xff] }
 0x161   : > { %2087 = vmatprep.subr.mxu1 %v1610_v13  ;;  %2160 = vmatprep.subr.mxu0 %v1626_v24  ;;  %v1675_v46 = vld [vmem:[%s6735_s3 + $0xbf0] sm:$0xff]  ;;  %v1594_v13 = vld [vmem:[%s6735_s3 + $0x968] sm:$0xff] }
 0x162   : > { %2088 = vmatpush2.msra.mxu1 %v1609_v45  ;;  %2161 = vmatpush1.msra.mxu0 %v1625_v58  ;;  %v1674_v24 = vld [vmem:[%s6735_s3 + $0xbe8] sm:$0xff]  ;;  %v1593_v45 = vld [vmem:[%s6735_s3 + $0x960] sm:$0xff] }
 0x163   : > { %2089 = vmatprep.subr.mxu1 %v1608_v62  ;;  %2162 = vmatprep.subr.mxu0 %v1624_v59  ;;  %v1673_v58 = vld [vmem:[%s6735_s3 + $0xbe0] sm:$0xff]  ;;  %v1592_v62 = vld [vmem:[%s6735_s3 + $0x958] sm:$0xff] }
 0x164   : > { %2090 = vmatpush2.msra.mxu1 %v1607_v60  ;;  %2163 = vmatpush1.msra.mxu0 %v1623_v63  ;;  %v1672_v59 = vld [vmem:[%s6735_s3 + $0xbd8] sm:$0xff]  ;;  %v1591_v60 = vld [vmem:[%s6735_s3 + $0x950] sm:$0xff] }
 0x165   : > { %2091 = vmatprep.subr.mxu1 %v1606_v4  ;;  %2164 = vmatprep.subr.mxu0 %v1622_v61  ;;  %v1671_v63 = vld [vmem:[%s6735_s3 + $0xbd0] sm:$0xff]  ;;  %v1590_v4 = vld [vmem:[%s6735_s3 + $0x948] sm:$0xff] }
 0x166   : > { %2092 = vmatpush2.msra.mxu1 %v1605_v7  ;;  %2165 = vmatpush1.msra.mxu0 %v1621_v9  ;;  %v1670_v61 = vld [vmem:[%s6735_s3 + $0xbc8] sm:$0xff]  ;;  %v1589_v7 = vld [vmem:[%s6735_s3 + $0x940] sm:$0xff] }
 0x167   : > { %2093 = vmatprep.subr.mxu1 %v1604_v27  ;;  %2166 = vmatprep.subr.mxu0 %v1620_v10  ;;  %v1669_v9 = vld [vmem:[%s6735_s3 + $0xbc0] sm:$0xff]  ;;  %v1588_v27 = vld [vmem:[%s6735_s3 + $0x938] sm:$0xff] }
 0x168   : > { %2094 = vmatpush2.msra.mxu1 %v1603_v41  ;;  %2167 = vmatpush1.msra.mxu0 %v1619_v12  ;;  %v1668_v10 = vld [vmem:[%s6735_s3 + $0xbb8] sm:$0xff]  ;;  %v1587_v41 = vld [vmem:[%s6735_s3 + $0x930] sm:$0xff] }
 0x169   : > { %2095 = vmatprep.subr.mxu1 %v1602_v38  ;;  %2168 = vmatprep.subr.mxu0 %v1618_v50  ;;  %v1667_v12 = vld [vmem:[%s6735_s3 + $0xbb0] sm:$0xff]  ;;  %v1586_v38 = vld [vmem:[%s6735_s3 + $0x928] sm:$0xff] }
 0x16a   : > { %2096 = vmatpush2.msra.mxu1 %v1601_v6  ;;  %2169 = vmatpush1.msra.mxu0 %v1617_v28  ;;  %v1666_v50 = vld [vmem:[%s6735_s3 + $0xba8] sm:$0xff]  ;;  %v1585_v6 = vld [vmem:[%s6735_s3 + $0x920] sm:$0xff] }
 0x16b   : > { %2097 = vmatprep.subr.mxu1 %v1600_v22  ;;  %2170 = vmatprep.subr.mxu0 %v1616_v29  ;;  %v1665_v28 = vld [vmem:[%s6735_s3 + $0xba0] sm:$0xff]  ;;  %v1584_v22 = vld [vmem:[%s6735_s3 + $0x918] sm:$0xff] }
 0x16c   : > { %2098 = vmatpush2.msra.mxu1 %v1599_v19  ;;  %2171 = vmatpush1.msra.mxu0 %v1615_v34  ;;  %v1664_v29 = vld [vmem:[%s6735_s3 + $0xb98] sm:$0xff]  ;;  %v1583_v19 = vld [vmem:[%s6735_s3 + $0x910] sm:$0xff] }
 0x16d   : > { %2099 = vmatprep.subr.mxu1 %v1598_v18  ;;  %2172 = vmatprep.subr.mxu0 %v1614_v49  ;;  %v1663_v34 = vld [vmem:[%s6735_s3 + $0xb90] sm:$0xff]  ;;  %v1582_v18 = vld [vmem:[%s6735_s3 + $0x908] sm:$0xff] }
 0x16e   : > { %2100 = vmatpush2.msra.mxu1 %v1597_v57  ;;  %2173 = vmatpush1.msra.mxu0 %v1613_v23  ;;  %v1662_v49 = vld [vmem:[%s6735_s3 + $0xb88] sm:$0xff]  ;;  %v1581_v57 = vld [vmem:[%s6735_s3 + $0x900] sm:$0xff] }
 0x16f   : > { %2101 = vmatprep.subr.mxu1 %v1596_v54  ;;  %2174 = vmatprep.subr.mxu0 %v1676_v44  ;;  %v1661_v23 = vld [vmem:[%s6735_s3 + $0xb80] sm:$0xff]  ;;  %v1660_v54 = vld [vmem:[%s6735_s3 + $0xb78] sm:$0xff]  ;;  %v1249_v44 = vmul.f32 %v4517_v1, %v4517_v1 }
 0x170   : > { %2102 = vmatpush2.msra.mxu1 %v1595_v37  ;;  %2175 = vmatpush2.msra.mxu0 %v1675_v46  ;;  %v1659_v37 = vld [vmem:[%s6735_s3 + $0xb70] sm:$0xff]  ;;  %v1263_v46 = vmul.f32 %v4533_v17, %v4533_v17  ;;  %v1657_v1 = vld [vmem:[%s6735_s3 + $0xb60] sm:$0xff]  ;;  %v1656_v17 = vld [vmem:[%s6735_s3 + $0xb58] sm:$0xff] }
 0x171   : > { %2103 = vmatprep.subr.mxu1 %v1594_v13  ;;  %2176 = vmatprep.subr.mxu0 %v1674_v24  ;;  %v1658_v13 = vld [vmem:[%s6735_s3 + $0xb68] sm:$0xff]  ;;  %v1684_v24 = vld [vmem:[%s6735_s3 + $0xc38] sm:$0xff] }
 0x172   : > { %2104 = vmatpush2.msra.mxu1 %v1593_v45  ;;  %2177 = vmatpush2.msra.mxu0 %v1673_v58  ;;  %v1683_v45 = vld [vmem:[%s6735_s3 + $0xc30] sm:$0xff]  ;;  %v1262_v58 = vmul.f32 %v4528_v8, %v4528_v8  ;;  %v1653_v8 = vld [vmem:[%s6735_s3 + $0xb40] sm:$0xff] }
 0x173   : > { %2105 = vmatprep.subr.mxu1 %v1592_v62  ;;  %2178 = vmatprep.subr.mxu0 %v1672_v59  ;;  %v1655_v62 = vld [vmem:[%s6735_s3 + $0xb50] sm:$0xff]  ;;  %v1276_v59 = vmul.f32 %v4568_v39, %v4568_v39  ;;  %v1652_v39 = vld [vmem:[%s6735_s3 + $0xb38] sm:$0xff] }
 0x174   : > { %2106 = vmatpush2.msra.mxu1 %v1591_v60  ;;  %2179 = vmatpush2.msra.mxu0 %v1671_v63  ;;  %v1654_v60 = vld [vmem:[%s6735_s3 + $0xb48] sm:$0xff] }
 0x175   : > { %2107 = vmatprep.subr.mxu1 %v1590_v4  ;;  %2180 = vmatprep.subr.mxu0 %v1670_v61  ;;  %v1682_v63 = vld [vmem:[%s6735_s3 + $0xc28] sm:$0xff]  ;;  %v1681_v4 = vld [vmem:[%s6735_s3 + $0xc20] sm:$0xff]  ;;  %v1275_v61 = vmul.f32 %v4563_v43, %v4563_v43 }
 0x176   : > { %2108 = vmatpush2.msra.mxu1 %v1589_v7  ;;  %2181 = vmatpush2.msra.mxu0 %v1669_v9  ;;  %v1651_v7 = vld [vmem:[%s6735_s3 + $0xb30] sm:$0xff]  ;;  %v1289_v9 = vmul.f32 %v4617_v32, %v4617_v32  ;;  %v1649_v43 = vld [vmem:[%s6735_s3 + $0xb20] sm:$0xff]  ;;  %v1648_v32 = vld [vmem:[%s6735_s3 + $0xb18] sm:$0xff] }
 0x177   : > { %2109 = vmatprep.subr.mxu1 %v1588_v27  ;;  %2182 = vmatprep.subr.mxu0 %v1668_v10  ;;  %v1650_v27 = vld [vmem:[%s6735_s3 + $0xb28] sm:$0xff]  ;;  %v1680_v10 = vld [vmem:[%s6735_s3 + $0xc18] sm:$0xff] }
 0x178   : > { %2110 = vmatpush2.msra.mxu1 %v1587_v41  ;;  %2183 = vmatpush2.msra.mxu0 %v1667_v12  ;;  %v1679_v41 = vld [vmem:[%s6735_s3 + $0xc10] sm:$0xff]  ;;  %v1288_v12 = vmul.f32 %v4599_v11, %v4599_v11  ;;  %v1645_v11 = vld [vmem:[%s6735_s3 + $0xb00] sm:$0xff] }
 0x179   : > { %2111 = vmatprep.subr.mxu1 %v1586_v38  ;;  %2184 = vmatprep.subr.mxu0 %v1666_v50  ;;  %v1647_v38 = vld [vmem:[%s6735_s3 + $0xb10] sm:$0xff]  ;;  %v1678_v50 = vld [vmem:[%s6735_s3 + $0xc08] sm:$0xff] }
 0x17a   : > { %2112 = vmatpush2.msra.mxu1 %v1585_v6  ;;  %2185 = vmatpush2.msra.mxu0 %v1665_v28  ;;  %v1646_v6 = vld [vmem:[%s6735_s3 + $0xb08] sm:$0xff]  ;;  %v1677_v28 = vld [vmem:[%s6735_s3 + $0xc00] sm:$0xff] }
 0x17b   : > { %2113 = vmatprep.subr.mxu1 %v1584_v22  ;;  %2186 = vmatprep.subr.mxu0 %v1664_v29  ;;  %v1253_v22 = vmul.f32 %v4673_v14, %v4673_v14  ;;  %v1251_v29 = vmul.f32 %v4963_v35, %v4963_v35  ;;  %v1266_v14 = vmul.f32 %v4651_v56, %v4651_v56 }
 0x17c   : > { %2114 = vmatpush2.msra.mxu1 %v1583_v19  ;;  %2187 = vmatpush2.msra.mxu0 %v1663_v34  ;;  %v1265_v19 = vmul.f32 %v4987_v33, %v4987_v33  ;;  %v1264_v35 = vmul.f32 %v4965_v26, %v4965_v26  ;;  %v1278_v34 = vmul.f32 %v5026_v47, %v5026_v47 }
 0x17d   : > { %2115 = vmatprep.subr.mxu1 %v1582_v18  ;;  %2188 = vmatprep.subr.mxu0 %v1662_v49  ;;  %v1279_v33 = vmul.f32 %v4721_v53, %v4721_v53  ;;  %v1277_v18 = vmul.f32 %v5007_v20, %v5007_v20  ;;  %v1291_v56 = vmul.f32 %v5062_v15, %v5062_v15  ;;  %v2563_v53 = vld [vmem:[%s6736_s4 + $0x620] sm:$0xff]  ;;  %v2565_v20 = vld [vmem:[%s6736_s4 + $0x630] sm:$0xff]  ;;  %v2550_v15 = vld [vmem:[%s6736_s4 + $0x5b8] sm:$0xff] }
 0x17e   : > { %2116 = vmatpush2.msra.mxu1 %v1581_v57  ;;  %2189 = vmatpush2.msra.mxu0 %v1661_v23  ;;  %v1292_v26 = vmul.f32 %v4703_v40, %v4703_v40  ;;  %v1290_v47 = vmul.f32 %v5045_v16, %v5045_v16  ;;  %v2562_v40 = vld [vmem:[%s6736_s4 + $0x618] sm:$0xff]  ;;  %v2564_v16 = vld [vmem:[%s6736_s4 + $0x628] sm:$0xff]  ;;  %v2549_v57 = vld [vmem:[%s6736_s4 + $0x5b0] sm:$0xff] }
 0x17f   : > { %2118 = vmatmul.mubr.f32.vlgmr.msra.gmra.mxu1 %v1249_v44  ;;  %2190 = vmatprep.subr.mxu0 %v1660_v54  ;;  %v2552_v49 = vld [vmem:[%s6736_s4 + $0x5c8] sm:$0xff]  ;;  %v2551_v23 = vld [vmem:[%s6736_s4 + $0x5c0] sm:$0xff]  ;;  %v2537_v54 = vld [vmem:[%s6736_s4 + $0x550] sm:$0xff] }
 0x180   : > { %2123 = vmatprep.mubr.f32.mxu1 %v1263_v46  ;;  %2191 = vmatpush2.msra.mxu0 %v1659_v37  ;;  %v2539_v44 = vld [vmem:[%s6736_s4 + $0x560] sm:$0xff]  ;;  %v2536_v37 = vld [vmem:[%s6736_s4 + $0x548] sm:$0xff]  ;;  %v2538_v46 = vld [vmem:[%s6736_s4 + $0x558] sm:$0xff] }
 0x181   : > { %2192 = vmatprep.subr.mxu0 %v1658_v13  ;;  %2255 = vmatprep.subr.mxu1 %v1684_v24  ;;  %v2524_v13 = vld [vmem:[%s6736_s4 + $0x4e8] sm:$0xff]  ;;  %v2526_v24 = vld [vmem:[%s6736_s4 + $0x4f8] sm:$0xff] }
 0x182   : > { %2193 = vmatpush2.msra.mxu0 %v1657_v1  ;;  %2256 = vmatpush1.msra.mxu1 %v1683_v45  ;;  %v2523_v1 = vld [vmem:[%s6736_s4 + $0x4e0] sm:$0xff]  ;;  %v2525_v45 = vld [vmem:[%s6736_s4 + $0x4f0] sm:$0xff] }
 0x183   : > { %2124 = vmatmul.mubr.f32.gmra.mxu1 %v1262_v58  ;;  %2194 = vmatprep.subr.mxu0 %v1656_v17  ;;  %v2511_v17 = vld [vmem:[%s6736_s4 + $0x480] sm:$0xff]  ;;  %v2513_v58 = vld [vmem:[%s6736_s4 + $0x490] sm:$0xff] }
 0x184   : > { %2129 = vmatprep.mubr.f32.mxu1 %v1276_v59  ;;  %2195 = vmatpush2.msra.mxu0 %v1655_v62  ;;  %v2510_v62 = vld [vmem:[%s6736_s4 + $0x478] sm:$0xff]  ;;  %v2512_v59 = vld [vmem:[%s6736_s4 + $0x488] sm:$0xff] }
 0x185   : > { %2196 = vmatprep.subr.mxu0 %v1654_v60  ;;  %2257 = vmatprep.subr.mxu1 %v1682_v63  ;;  %v2498_v60 = vld [vmem:[%s6736_s4 + $0x418] sm:$0xff]  ;;  %v2500_v63 = vld [vmem:[%s6736_s4 + $0x428] sm:$0xff] }
 0x186   : > { %2197 = vmatpush2.msra.mxu0 %v1653_v8  ;;  %2258 = vmatpush1.msra.mxu1 %v1681_v4  ;;  %v2497_v8 = vld [vmem:[%s6736_s4 + $0x410] sm:$0xff]  ;;  %v2499_v4 = vld [vmem:[%s6736_s4 + $0x420] sm:$0xff] }
 0x187   : > { %2130 = vmatmul.mubr.f32.gmra.mxu1 %v1275_v61  ;;  %2198 = vmatprep.subr.mxu0 %v1652_v39  ;;  %v2485_v39 = vld [vmem:[%s6736_s4 + $0x3b0] sm:$0xff]  ;;  %v2487_v61 = vld [vmem:[%s6736_s4 + $0x3c0] sm:$0xff] }
 0x188   : > { %2135 = vmatprep.mubr.f32.mxu1 %v1289_v9  ;;  %2199 = vmatpush2.msra.mxu0 %v1651_v7  ;;  %v2484_v7 = vld [vmem:[%s6736_s4 + $0x3a8] sm:$0xff]  ;;  %v2486_v9 = vld [vmem:[%s6736_s4 + $0x3b8] sm:$0xff] }
 0x189   : > { %2200 = vmatprep.subr.mxu0 %v1650_v27  ;;  %2259 = vmatprep.subr.mxu1 %v1680_v10  ;;  %v2472_v27 = vld [vmem:[%s6736_s4 + $0x348] sm:$0xff]  ;;  %v2474_v10 = vld [vmem:[%s6736_s4 + $0x358] sm:$0xff] }
 0x18a   : > { %2201 = vmatpush2.msra.mxu0 %v1649_v43  ;;  %2260 = vmatpush1.msra.mxu1 %v1679_v41  ;;  %v2471_v43 = vld [vmem:[%s6736_s4 + $0x340] sm:$0xff]  ;;  %v2473_v41 = vld [vmem:[%s6736_s4 + $0x350] sm:$0xff] }
 0x18b   : > { %2136 = vmatmul.mubr.f32.gmra.mxu1 %v1288_v12  ;;  %2202 = vmatprep.subr.mxu0 %v1648_v32  ;;  %v2459_v32 = vld [vmem:[%s6736_s4 + $0x2e0] sm:$0xff]  ;;  %v2461_v12 = vld [vmem:[%s6736_s4 + $0x2f0] sm:$0xff] }
 0x18c   : > { %2203 = vmatpush2.msra.mxu0 %v1647_v38  ;;  %2261 = vmatprep.subr.mxu1 %v1678_v50  ;;  %v2458_v38 = vld [vmem:[%s6736_s4 + $0x2d8] sm:$0xff]  ;;  %v2460_v50 = vld [vmem:[%s6736_s4 + $0x2e8] sm:$0xff] }
 0x18d   : > { %2204 = vmatprep.subr.mxu0 %v1646_v6  ;;  %2262 = vmatpush1.msra.mxu1 %v1677_v28  ;;  %v2446_v6 = vld [vmem:[%s6736_s4 + $0x278] sm:$0xff]  ;;  %v2448_v28 = vld [vmem:[%s6736_s4 + $0x288] sm:$0xff] }
 0x18e   : > { %2205 = vmatpush2.msra.mxu0 %v1645_v11  ;;  %2295 = vmatprep.mubr.f32.mxu1 %v6739_v0  ;;  %v2445_v11 = vld [vmem:[%s6736_s4 + $0x270] sm:$0xff] }
 0x18f   : > { %2207 = vmatmul.mubr.f32.vlgmr.msra.gmra.mxu0 %v1251_v29  ;;  %3472 = vmatmul.mubr.msk.f32.vlgmr.msra.gmra.mxu1 %vm1227_vm2, %v1253_v22  ;;  %v2447_v22 = vld [vmem:[%s6736_s4 + $0x280] sm:$0xff]  ;;  %v2433_v29 = vld [vmem:[%s6736_s4 + $0x210] sm:$0xff] }
 0x190   : > { %2212 = vmatprep.mubr.f32.mxu0 %v1265_v19  ;;  %2301 = vmatprep.mubr.f32.mxu1 %v6739_v0  ;;  %v2435_v19 = vld [vmem:[%s6736_s4 + $0x220] sm:$0xff] }
 0x191   : > { %2734 = vmatprep.subr.mxu0 %v2563_v53  ;;  %2805 = vmatprep.subr.mxu1 %v2565_v20  ;;  %v2406_v53 = vld [vmem:[%s6736_s4 + $0x138] sm:$0xff]  ;;  %v2408_v20 = vld [vmem:[%s6736_s4 + $0x148] sm:$0xff] }
 0x192   : > { %2735 = vmatpush1.msra.mxu0 %v2562_v40  ;;  %2806 = vmatpush1.msra.mxu1 %v2564_v16  ;;  %v2394_v40 = vld [vmem:[%s6736_s4 + $0xd8] sm:$0xff]  ;;  %v2396_v16 = vld [vmem:[%s6736_s4 + $0xe8] sm:$0xff] }
 0x193   : > { %2213 = vmatmul.mubr.f32.gmra.mxu0 %v1264_v35  ;;  %3473 = vmatmul.mubr.msk.f32.gmra.mxu1 %vm1227_vm2, %v1266_v14  ;;  %v2432_v14 = vld [vmem:[%s6736_s4 + $0x208] sm:$0xff]  ;;  %v2434_v35 = vld [vmem:[%s6736_s4 + $0x218] sm:$0xff] }
 0x194   : > { %2218 = vmatprep.mubr.f32.mxu0 %v1278_v34  ;;  %2307 = vmatprep.mubr.f32.mxu1 %v6739_v0  ;;  %v2420_v34 = vld [vmem:[%s6736_s4 + $0x1a8] sm:$0xff] }
 0x195   : > { %2736 = vmatprep.subr.mxu0 %v2550_v15  ;;  %2807 = vmatprep.subr.mxu1 %v2552_v49  ;;  %v2393_v15 = vld [vmem:[%s6736_s4 + $0xd0] sm:$0xff]  ;;  %v2395_v49 = vld [vmem:[%s6736_s4 + $0xe0] sm:$0xff] }
 0x196   : > { %2737 = vmatpush1.msra.mxu0 %v2549_v57  ;;  %2808 = vmatpush1.msra.mxu1 %v2551_v23  ;;  %v2381_v57 = vld [vmem:[%s6736_s4 + $0x70] sm:$0xff]  ;;  %v2383_v23 = vld [vmem:[%s6736_s4 + $0x80] sm:$0xff] }
 0x197   : > { %2219 = vmatmul.mubr.f32.gmra.mxu0 %v1277_v18  ;;  %3474 = vmatmul.mubr.msk.f32.gmra.mxu1 %vm1227_vm2, %v1279_v33  ;;  %v2422_v33 = vld [vmem:[%s6736_s4 + $0x1b8] sm:$0xff]  ;;  %v2419_v18 = vld [vmem:[%s6736_s4 + $0x1a0] sm:$0xff] }
 0x198   : > { %2224 = vmatprep.mubr.f32.mxu0 %v1291_v56  ;;  %2313 = vmatprep.mubr.f32.mxu1 %v6739_v0  ;;  %v2421_v56 = vld [vmem:[%s6736_s4 + $0x1b0] sm:$0xff] }
 0x199   : > { %2738 = vmatprep.subr.mxu0 %v2537_v54  ;;  %2809 = vmatprep.subr.mxu1 %v2539_v44  ;;  %v2380_v54 = vld [vmem:[%s6736_s4 + $0x68] sm:$0xff]  ;;  %v2382_v44 = vld [vmem:[%s6736_s4 + $0x78] sm:$0xff] }
 0x19a   : > { %2739 = vmatpush1.msra.mxu0 %v2536_v37  ;;  %2810 = vmatpush1.msra.mxu1 %v2538_v46  ;;  %v2368_v37 = vld [vmem:[%s6736_s4 + $0x8] sm:$0xff]  ;;  %v2370_v46 = vld [vmem:[%s6736_s4 + $0x18] sm:$0xff] }
 0x19b   : > { %2225 = vmatmul.mubr.f32.gmra.mxu0 %v1290_v47  ;;  %3475 = vmatmul.mubr.msk.f32.gmra.mxu1 %vm1227_vm2, %v1292_v26  ;;  %v2407_v26 = vld [vmem:[%s6736_s4 + $0x140] sm:$0xff]  ;;  %v2409_v47 = vld [vmem:[%s6736_s4 + $0x150] sm:$0xff] }
 0x19c   : > { %2740 = vmatprep.subr.mxu0 %v2524_v13  ;;  %2811 = vmatprep.subr.mxu1 %v2526_v24  ;;  %v2367_v13 = vld [vmem:[%s6736_s4] sm:$0xff]  ;;  %v2369_v24 = vld [vmem:[%s6736_s4 + $0x10] sm:$0xff] }
 0x19d   : > { %2741 = vmatpush1.msra.mxu0 %v2523_v1  ;;  %2812 = vmatpush1.msra.mxu1 %v2525_v45  ;;  %v2680_v45 = vld [vmem:[%s6736_s4 + $0x9c8] sm:$0xf] }
 0x19e   : > { %2742 = vmatprep.subr.mxu0 %v2511_v17  ;;  %2813 = vmatprep.subr.mxu1 %v2513_v58  ;;  %v2682_v17 = vld [vmem:[%s6736_s4 + $0x9d8] sm:$0xf]  ;;  %v2679_v58 = vld [vmem:[%s6736_s4 + $0x9c0] sm:$0xf] }
 0x19f   : > { %2743 = vmatpush1.msra.mxu0 %v2510_v62  ;;  %2814 = vmatpush1.msra.mxu1 %v2512_v59  ;;  %v2681_v62 = vld [vmem:[%s6736_s4 + $0x9d0] sm:$0xf]  ;;  %v2667_v59 = vld [vmem:[%s6736_s4 + $0x960] sm:$0xff] }
 0x1a0   : > { %2744 = vmatprep.subr.mxu0 %v2498_v60  ;;  %2815 = vmatprep.subr.mxu1 %v2500_v63  ;;  %v2669_v60 = vld [vmem:[%s6736_s4 + $0x970] sm:$0xff]  ;;  %v2666_v63 = vld [vmem:[%s6736_s4 + $0x958] sm:$0xff] }
 0x1a1   : > { %2745 = vmatpush1.msra.mxu0 %v2497_v8  ;;  %2816 = vmatpush1.msra.mxu1 %v2499_v4  ;;  %v2668_v8 = vld [vmem:[%s6736_s4 + $0x968] sm:$0xff]  ;;  %v2654_v4 = vld [vmem:[%s6736_s4 + $0x8f8] sm:$0xff] }
 0x1a2   : > { %2746 = vmatprep.subr.mxu0 %v2485_v39  ;;  %2817 = vmatprep.subr.mxu1 %v2487_v61  ;;  %v2656_v39 = vld [vmem:[%s6736_s4 + $0x908] sm:$0xff] }
 0x1a3   : > { %2747 = vmatpush1.msra.mxu0 %v2484_v7  ;;  %2818 = vmatpush1.msra.mxu1 %v2486_v9  ;;  %v2653_v7 = vld [vmem:[%s6736_s4 + $0x8f0] sm:$0xff]  ;;  %v2655_v9 = vld [vmem:[%s6736_s4 + $0x900] sm:$0xff] }
 0x1a4   : > { %2748 = vmatprep.subr.mxu0 %v2472_v27  ;;  %2819 = vmatprep.subr.mxu1 %v2474_v10  ;;  %v2641_v27 = vld [vmem:[%s6736_s4 + $0x890] sm:$0xff]  ;;  %v2643_v10 = vld [vmem:[%s6736_s4 + $0x8a0] sm:$0xff] }
 0x1a5   : > { %2749 = vmatpush1.msra.mxu0 %v2471_v43  ;;  %2820 = vmatpush1.msra.mxu1 %v2473_v41  ;;  %v2640_v43 = vld [vmem:[%s6736_s4 + $0x888] sm:$0xff]  ;;  %v2642_v41 = vld [vmem:[%s6736_s4 + $0x898] sm:$0xff] }
 0x1a6   : > { %2750 = vmatprep.subr.mxu0 %v2459_v32  ;;  %2821 = vmatprep.subr.mxu1 %v2461_v12  ;;  %v2628_v32 = vld [vmem:[%s6736_s4 + $0x828] sm:$0xff]  ;;  %v2630_v12 = vld [vmem:[%s6736_s4 + $0x838] sm:$0xff] }
 0x1a7   : > { %2751 = vmatpush1.msra.mxu0 %v2458_v38  ;;  %2822 = vmatpush1.msra.mxu1 %v2460_v50  ;;  %v2627_v50 = vld [vmem:[%s6736_s4 + $0x820] sm:$0xff] }
 0x1a8   : > { %2752 = vmatprep.subr.mxu0 %v2446_v6  ;;  %2823 = vmatprep.subr.mxu1 %v2448_v28  ;;  %v2629_v6 = vld [vmem:[%s6736_s4 + $0x830] sm:$0xff]  ;;  %v2615_v28 = vld [vmem:[%s6736_s4 + $0x7c0] sm:$0xff] }
 0x1a9   : > { %2753 = vmatpush1.msra.mxu0 %v2445_v11  ;;  %2824 = vmatpush1.msra.mxu1 %v2447_v22  ;;  %v2617_v11 = vld [vmem:[%s6736_s4 + $0x7d0] sm:$0xff]  ;;  %v2614_v22 = vld [vmem:[%s6736_s4 + $0x7b8] sm:$0xff] }
 0x1aa   : > { %2754 = vmatprep.subr.mxu0 %v2433_v29  ;;  %2825 = vmatprep.subr.mxu1 %v2435_v19  ;;  %v2616_v29 = vld [vmem:[%s6736_s4 + $0x7c8] sm:$0xff]  ;;  %v2602_v19 = vld [vmem:[%s6736_s4 + $0x758] sm:$0xff] }
 0x1ab   : > { %2755 = vmatpush1.msra.mxu0 %v2432_v14  ;;  %2826 = vmatpush1.msra.mxu1 %v2434_v35  ;;  %v2604_v14 = vld [vmem:[%s6736_s4 + $0x768] sm:$0xff] }
 0x1ac   : > { %2756 = vmatprep.subr.mxu0 %v2420_v34  ;;  %2827 = vmatprep.subr.mxu1 %v2422_v33  ;;  %v2601_v34 = vld [vmem:[%s6736_s4 + $0x750] sm:$0xff]  ;;  %v2603_v33 = vld [vmem:[%s6736_s4 + $0x760] sm:$0xff] }
 0x1ad   : > { %2757 = vmatpush1.msra.mxu0 %v2419_v18  ;;  %2828 = vmatpush1.msra.mxu1 %v2421_v56  ;;  %v2589_v18 = vld [vmem:[%s6736_s4 + $0x6f0] sm:$0xff]  ;;  %v2591_v56 = vld [vmem:[%s6736_s4 + $0x700] sm:$0xff] }
 0x1ae   : > { %2758 = vmatprep.subr.mxu0 %v2407_v26  ;;  %2829 = vmatprep.subr.mxu1 %v2409_v47  ;;  %v2588_v26 = vld [vmem:[%s6736_s4 + $0x6e8] sm:$0xff]  ;;  %v2590_v47 = vld [vmem:[%s6736_s4 + $0x6f8] sm:$0xff] }
 0x1af   : > { %2759 = vmatpush1.msra.mxu0 %v2406_v53  ;;  %2830 = vmatpush1.msra.mxu1 %v2408_v20  ;;  %v5786_v1 = vpop.f32.mrf.mxu1  ;;  %v2576_v53 = vld [vmem:[%s6736_s4 + $0x688] sm:$0xff]  ;;  %v2578_v20 = vld [vmem:[%s6736_s4 + $0x698] sm:$0xff] }
 0x1b0   : > { %2760 = vmatprep.subr.mxu0 %v2394_v40  ;;  %2831 = vmatprep.subr.mxu1 %v2396_v16 }
 0x1b1   : > { %2761 = vmatpush1.msra.mxu0 %v2393_v15  ;;  %2832 = vmatpush1.msra.mxu1 %v2395_v49  ;;  %v5822_v61 = vpop.f32.mrf.mxu1  ;;  %v2575_v15 = vld [vmem:[%s6736_s4 + $0x680] sm:$0xff]  ;;  %v2577_v49 = vld [vmem:[%s6736_s4 + $0x690] sm:$0xff] }
 0x1b2   : > { %2762 = vmatprep.subr.mxu0 %v2381_v57  ;;  %2833 = vmatprep.subr.mxu1 %v2383_v23 }
 0x1b3   : > { %2763 = vmatpush1.msra.mxu0 %v2380_v54  ;;  %2834 = vmatpush1.msra.mxu1 %v2382_v44  ;;  %v2567_v54 = vld [vmem:[%s6736_s4 + $0x640] sm:$0xff]  ;;  %v2569_v44 = vld [vmem:[%s6736_s4 + $0x650] sm:$0xff] }
 0x1b4   : > { %2764 = vmatprep.subr.mxu0 %v2368_v37  ;;  %2835 = vmatprep.subr.mxu1 %v2370_v46  ;;  %v5848_v38 = vpop.f32.mrf.mxu1 }
 0x1b5   : > { %2765 = vmatpush1.msra.mxu0 %v2367_v13  ;;  %2836 = vmatpush1.msra.mxu1 %v2369_v24 }
 0x1b6   : > { %3476 = vmatprep.subr.msk.mxu0 %vm356_vm0, %v2680_v45  ;;  %3479 = vmatprep.subr.msk.mxu1 %vm356_vm0, %v2682_v17  ;;  %v5874_v35 = vpop.f32.mrf.mxu1 }
 0x1b7   : > { %3477 = vmatpush2.msk.msra.mxu0 %vm356_vm0, %v2679_v58  ;;  %3480 = vmatpush2.msk.msra.mxu1 %vm356_vm0, %v2681_v62 }
 0x1b8   : > { %2782 = vmatprep.subr.mxu0 %v2667_v59  ;;  %2853 = vmatprep.subr.mxu1 %v2669_v60 }
 0x1b9   : > { %2783 = vmatpush2.msra.mxu0 %v2666_v63  ;;  %2854 = vmatpush2.msra.mxu1 %v2668_v8  ;;  %v1775_v40 = vpop.f32.mrf.mxu1 }
 0x1ba   : > { %2784 = vmatprep.subr.mxu0 %v2654_v4  ;;  %2855 = vmatprep.subr.mxu1 %v2656_v39 }
 0x1bb   : > { %2785 = vmatpush2.msra.mxu0 %v2653_v7  ;;  %2856 = vmatpush2.msra.mxu1 %v2655_v9  ;;  %v1777_v57 = vpop.f32.mrf.mxu1 }
 0x1bc   : > { %2786 = vmatprep.subr.mxu0 %v2641_v27  ;;  %2857 = vmatprep.subr.mxu1 %v2643_v10 }
 0x1bd   : > { %2787 = vmatpush2.msra.mxu0 %v2640_v43  ;;  %2858 = vmatpush2.msra.mxu1 %v2642_v41 }
 0x1be   : > { %2788 = vmatprep.subr.mxu0 %v2628_v32  ;;  %2859 = vmatprep.subr.mxu1 %v2630_v12 }
 0x1bf   : > { %2789 = vmatpush2.msra.mxu0 %v2627_v50  ;;  %2860 = vmatpush2.msra.mxu1 %v2629_v6  ;;  %v1781_v37 = vpop.f32.mrf.mxu1 }
 0x1c0   : > { %2790 = vmatprep.subr.mxu0 %v2615_v28  ;;  %2861 = vmatprep.subr.mxu1 %v2617_v11 }
 0x1c1   : > { %2791 = vmatpush2.msra.mxu0 %v2614_v22  ;;  %2862 = vmatpush2.msra.mxu1 %v2616_v29  ;;  %v1783_v13 = vpop.f32.mrf.mxu1 }
 0x1c2   : > { %2792 = vmatprep.subr.mxu0 %v2602_v19  ;;  %2863 = vmatprep.subr.mxu1 %v2604_v14  ;;  %v1852_v16 = vpop.f32.mrf.mxu0 }
 0x1c3   : > { %2793 = vmatpush2.msra.mxu0 %v2601_v34  ;;  %2864 = vmatpush2.msra.mxu1 %v2603_v33 }
 0x1c4   : > { %2794 = vmatprep.subr.mxu0 %v2589_v18  ;;  %2865 = vmatprep.subr.mxu1 %v2591_v56  ;;  %v1854_v23 = vpop.f32.mrf.mxu0 }
 0x1c5   : > { %2795 = vmatpush2.msra.mxu0 %v2588_v26  ;;  %2866 = vmatpush2.msra.mxu1 %v2590_v47  ;;  %v1855_v33 = vadd.f32 %v1854_v23, %v5822_v61  ;;  %v1853_v26 = vadd.f32 %v1852_v16, %v5786_v1 }
 0x1c6   : > { %2796 = vmatprep.subr.mxu0 %v2576_v53  ;;  %2867 = vmatprep.subr.mxu1 %v2578_v20 }
 0x1c7   : > { %2797 = vmatpush2.msra.mxu0 %v2575_v15  ;;  %2868 = vmatpush2.msra.mxu1 %v2577_v49 }
 0x1c8   : > { %2876 = vmatprep.subr.mxu0 %v2567_v54  ;;  %2947 = vmatprep.subr.mxu1 %v2569_v44  ;;  %v1858_v46 = vpop.f32.mrf.mxu0 }
 0x1c9   : > { %v1859_v34 = vadd.f32 %v1858_v46, %v5848_v38 }
 0x1ca   : > { %v1860_v24 = vpop.f32.mrf.mxu0 }
 0x1cb   : > { %v1861_v47 = vadd.f32 %v1860_v24, %v5874_v35 }
 0x1ce   : > { %v1864_v17 = vpop.f32.mrf.mxu0 }
 0x1cf   : > { %v1865_v54 = vadd.f32 %v1864_v17, %v1775_v40 }
 0x1d0   : > { %v1866_v62 = vpop.f32.mrf.mxu0 }
 0x1d1   : > { %v1867_v55 = vadd.f32 %v1866_v62, %v1777_v57 }
 0x1d3   : > { %v1870_v60 = vpop.f32.mrf.mxu0 }
 0x1d4   : > { %v1871_v52 = vadd.f32 %v1870_v60, %v1781_v37 }
 0x1d5   : > { %v1872_v8 = vpop.f32.mrf.mxu0 }
 0x1f7   : > { %v1941_v45 = vpop.f32.mrf.mxu1 }
 0x1f8   : > { %v1942_v44 = vadd.f32 %v1941_v45, %v1853_v26  ;;  %v1873_v45 = vadd.f32 %v1872_v8, %v1783_v13 }
 0x1f9   : > { %v1943_v58 = vpop.f32.mrf.mxu1 }
 0x1fa   : > { %v1944_v20 = vadd.f32 %v1943_v58, %v1855_v33 }
 0x1fc   : > { %v1947_v59 = vpop.f32.mrf.mxu1 }
 0x1fd   : > { %v1948_v53 = vadd.f32 %v1947_v59, %v1859_v34 }
 0x1fe   : > { %v1949_v63 = vpop.f32.mrf.mxu1 }
 0x1ff   : > { %v1950_v0 = vadd.f32 %v1949_v63, %v1861_v47 }
 0x201   : > { %v1953_v4 = vpop.f32.mrf.mxu1 }
 0x202   : > { %v1954_v46 = vadd.f32 %v1953_v4, %v1865_v54 }
 0x203   : > { %v1955_v7 = vpop.f32.mrf.mxu1 }
 0x204   : > { %v1956_v1 = vadd.f32 %v1955_v7, %v1867_v55 }
 0x206   : > { %v1959_v27 = vpop.f32.mrf.mxu1 }
 0x207   : > { %v1960_v17 = vadd.f32 %v1959_v27, %v1871_v52 }
 0x208   : > { %v1961_v43 = vpop.f32.mrf.mxu1 }
 0x20b   : > { %v2030_v39 = vpop.f32.mrf.mxu0 }
 0x20c   : > { %v2031_v61 = vadd.f32 %v2030_v39, %v1942_v44 }
 0x20d   : > { %v2032_v9 = vpop.f32.mrf.mxu0 }
 0x20e   : > { %v2033_v42 = vadd.f32 %v2032_v9, %v1944_v20 }
 0x210   : > { %v2036_v10 = vpop.f32.mrf.mxu0 }
 0x211   : > { %v2037_v5 = vadd.f32 %v2036_v10, %v1948_v53 }
 0x212   : > { %v2038_v41 = vpop.f32.mrf.mxu0 }
 0x213   : > { %v2039_v23 = vadd.f32 %v2038_v41, %v1950_v0  ;;  %v1962_v0 = vadd.f32 %v1961_v43, %v1873_v45 }
 0x215   : > { %v2042_v12 = vpop.f32.mrf.mxu0 }
 0x216   : > { %v2043_v58 = vadd.f32 %v2042_v12, %v1954_v46 }
 0x217   : > { %v2044_v28 = vpop.f32.mrf.mxu0 }
 0x218   : > { %v2045_v9 = vadd.f32 %v2044_v28, %v1956_v1 }
 0x21a   : > { %v2048_v29 = vpop.f32.mrf.mxu0 }
 0x21c   : > { %v2050_v18 = vpop.f32.mrf.mxu0 }
 0x23f   : > { %v2119_v32 = vpop.f32.mrf.mxu1 }
 0x240   : > { %v2120_v59 = vadd.f32 %v2119_v32, %v2031_v61  ;;  %v2051_v32 = vadd.f32 %v2050_v18, %v1962_v0 }
 0x241   : > { %v2121_v50 = vpop.f32.mrf.mxu1 }
 0x242   : > { %v2122_v16 = vadd.f32 %v2121_v50, %v2033_v42 }
 0x243   : > { %v2125_v6 = vpop.f32.mrf.mxu1 }
 0x244   : > { %v2126_v30 = vadd.f32 %v2125_v6, %v2037_v5  ;;  %v2049_v5 = vadd.f32 %v2048_v29, %v1960_v17 }
 0x245   : > { %v2127_v11 = vpop.f32.mrf.mxu1 }
 0x246   : > { %v2128_v34 = vadd.f32 %v2127_v11, %v2039_v23 }
 0x247   : > { %v2131_v22 = vpop.f32.mrf.mxu1 }
 0x248   : > { %v2132_v10 = vadd.f32 %v2131_v22, %v2043_v58 }
 0x249   : > { %v2133_v19 = vpop.f32.mrf.mxu1 }
 0x24a   : > { %v2134_v42 = vadd.f32 %v2133_v19, %v2045_v9 }
 0x24b   : > { %v2137_v14 = vpop.f32.mrf.mxu1 }
 0x24d   : > { %v2139_v56 = vpop.f32.mrf.mxu1 }
 0x24e   : > { %v2140_v50 = vadd.f32 %v2139_v56, %v2051_v32 }
 0x24f   : > { %v2208_v15 = vpop.f32.mrf.mxu0  ;;  %v2297_v49 = vpop.f32.mrf.mxu1 }
 0x250   : > { %v2209_v4 = vadd.f32 %v2208_v15, %v2120_v59 }
 0x251   : > { %v2210_v48 = vpop.f32.mrf.mxu0  ;;  %v2299_v38 = vpop.f32.mrf.mxu1 }
 0x252   : > { %v2211_v63 = vadd.f32 %v2210_v48, %v2122_v16  ;;  %v2138_v48 = vadd.f32 %v2137_v14, %v2049_v5  ;;  %v2298_v13 = vadd.f32 %v2297_v49, %v2209_v4 }
 0x253   : > { %v2214_v35 = vpop.f32.mrf.mxu0  ;;  %v2303_v24 = vpop.f32.mrf.mxu1 }
 0x254   : > { %v2215_v40 = vadd.f32 %v2214_v35, %v2126_v30  ;;  %v2300_v12 = vadd.f32 %v2299_v38, %v2211_v63 }
 0x255   : > { %v2216_v57 = vpop.f32.mrf.mxu0  ;;  %v2305_v62 = vpop.f32.mrf.mxu1 }
 0x256   : > { %v2217_v39 = vadd.f32 %v2216_v57, %v2128_v34  ;;  %v2304_v60 = vadd.f32 %v2303_v24, %v2215_v40  ;;  %v2330_v19 = vsel %vm2329_vm3, %v2300_v12, 0.0 }
 0x257   : > { %v2220_v37 = vpop.f32.mrf.mxu0  ;;  %v2309_v55 = vpop.f32.mrf.mxu1 }
 0x258   : > { %v2306_v7 = vadd.f32 %v2305_v62, %v2217_v39  ;;  %v2221_v41 = vadd.f32 %v2220_v37, %v2132_v10  ;;  %v2320_v43 = vadd.f32 %v2304_v60, %v2298_v13  ;;  %v2554_v13 = vld [vmem:[%s6736_s4 + $0x5d8] sm:$0xff] }
 0x259   : > { %v2222_v30 = vpop.f32.mrf.mxu0  ;;  %v2311_v52 = vpop.f32.mrf.mxu1 }
 0x25a   : > { %v2310_v8 = vadd.f32 %v2309_v55, %v2221_v41  ;;  %v2223_v27 = vadd.f32 %v2222_v30, %v2134_v42  ;;  %v2331_v11 = vsel %vm2329_vm3, %v2306_v7, 0.0 }
 0x25b   : > { %v2226_v6 = vpop.f32.mrf.mxu0  ;;  %v2315_v28 = vpop.f32.mrf.mxu1  ;;  %v2332_v14 = vadd.f32 %v2331_v11, %v2330_v19  ;;  %v2542_v11 = vld [vmem:[%s6736_s4 + $0x578] sm:$0xff]  ;;  %v2527_v19 = vld [vmem:[%s6736_s4 + $0x500] sm:$0xff] }
 0x25c   : > { %v2312_v22 = vadd.f32 %v2311_v52, %v2223_v27  ;;  %v2227_v29 = vadd.f32 %v2226_v6, %v2138_v48  ;;  %v2321_v18 = vadd.f32 %v2320_v43, %v2310_v8  ;;  %v2566_v52 = vld [vmem:[%s6736_s4 + $0x638] sm:$0xff]  ;;  %v2568_v48 = vld [vmem:[%s6736_s4 + $0x648] sm:$0xff]  ;;  %v2553_v27 = vld [vmem:[%s6736_s4 + $0x5d0] sm:$0xff] }
 0x25d   : > { %v2228_v33 = vpop.f32.mrf.mxu0  ;;  %v2317_v20 = vpop.f32.mrf.mxu1  ;;  %v2556_v8 = vld [vmem:[%s6736_s4 + $0x5e8] sm:$0xff]  ;;  %v2541_v6 = vld [vmem:[%s6736_s4 + $0x570] sm:$0xff] }
 0x25e   : > { %v2333_v26 = vsel %vm2329_vm3, %v2312_v22, 0.0  ;;  %v2316_v47 = vadd.f32 %v2315_v28, %v2227_v29  ;;  %v2229_v53 = vadd.f32 %v2228_v33, %v2140_v50  ;;  %v2555_v50 = vld [vmem:[%s6736_s4 + $0x5e0] sm:$0xff]  ;;  %v2540_v43 = vld [vmem:[%s6736_s4 + $0x568] sm:$0xff]  ;;  %v2530_v29 = vld [vmem:[%s6736_s4 + $0x518] sm:$0xff] }
 0x25f   : > { %v2334_v56 = vadd.f32 %v2333_v26, %v2332_v14  ;;  %v2543_v28 = vld [vmem:[%s6736_s4 + $0x580] sm:$0xff]  ;;  %v2528_v22 = vld [vmem:[%s6736_s4 + $0x508] sm:$0xff]  ;;  %v2529_v33 = vld [vmem:[%s6736_s4 + $0x510] sm:$0xff] }
 0x260   : > { %v2322_v15 = vadd.f32 %v2321_v18, %v2316_v47  ;;  %v2318_v49 = vadd.f32 %v2317_v20, %v2229_v53  ;;  %v2515_v18 = vld [vmem:[%s6736_s4 + $0x4a0] sm:$0xff]  ;;  %v2517_v26 = vld [vmem:[%s6736_s4 + $0x4b0] sm:$0xff]  ;;  %v2514_v47 = vld [vmem:[%s6736_s4 + $0x498] sm:$0xff] }
 0x261   : > { %v2516_v53 = vld [vmem:[%s6736_s4 + $0x4a8] sm:$0xff]  ;;  %v2502_v14 = vld [vmem:[%s6736_s4 + $0x438] sm:$0xff] }
 0x262   : > { %v2323_v54 = vrot.slane %v2322_v15, 4  ;;  %v2335_v44 = vsel %vm2329_vm3, %v2318_v49, 0.0  ;;  %v2504_v20 = vld [vmem:[%s6736_s4 + $0x448] sm:$0xff]  ;;  %v2503_v49 = vld [vmem:[%s6736_s4 + $0x440] sm:$0xff] }
 0x263   : > { %v2336_v38 = vadd.f32 %v2335_v44, %v2334_v56  ;;  %v2489_v56 = vld [vmem:[%s6736_s4 + $0x3d0] sm:$0xff]  ;;  %v2488_v44 = vld [vmem:[%s6736_s4 + $0x3c8] sm:$0xff] }
 0x264   : > { %v2324_v46 = vadd.f32 %v2323_v54, %v2322_v15  ;;  %v2501_v15 = vld [vmem:[%s6736_s4 + $0x430] sm:$0xff]  ;;  %v2491_v54 = vld [vmem:[%s6736_s4 + $0x3e0] sm:$0xff] }
 0x265   : > { %v2337_v61 = vrot.slane %v2336_v38, 4 }
 0x266   : > { %v2325_v23 = vrot.slane %v2324_v46, 2 }
 0x267   : > { %v2338_v1 = vadd.f32 %v2337_v61, %v2336_v38  ;;  %v2490_v38 = vld [vmem:[%s6736_s4 + $0x3d8] sm:$0xff] }
 0x268   : > { %v2326_v16 = vadd.f32 %v2325_v23, %v2324_v46  ;;  %v2476_v46 = vld [vmem:[%s6736_s4 + $0x368] sm:$0xff]  ;;  %v2478_v61 = vld [vmem:[%s6736_s4 + $0x378] sm:$0xff]  ;;  %v2475_v23 = vld [vmem:[%s6736_s4 + $0x360] sm:$0xff] }
 0x269   : > { %v2339_v35 = vrot.slane %v2338_v1, 2 }
 0x26a   : > { %v2327_v24 = vrot.slane %v2326_v16, 1 }
 0x26b   : > { %v2340_v58 = vadd.f32 %v2339_v35, %v2338_v1  ;;  %v2477_v1 = vld [vmem:[%s6736_s4 + $0x370] sm:$0xff] }
 0x26c   : > { %v2328_v59 = vadd.f32 %v2327_v24, %v2326_v16  ;;  %v2463_v16 = vld [vmem:[%s6736_s4 + $0x300] sm:$0xff]  ;;  %v2465_v35 = vld [vmem:[%s6736_s4 + $0x310] sm:$0xff]  ;;  %v2462_v24 = vld [vmem:[%s6736_s4 + $0x2f8] sm:$0xff] }
 0x26d   : > { %v2341_v34 = vrot.slane %v2340_v58, 1 }
 0x26e   : > { %3581 = vrsqrt.f32 %v2328_v59  ;;  %vm2347_vm4 = vcmp.eq.f32.partialorder %v2328_v59, inf  ;;  %v2350_v63 = vand.u32 2147483648, %v2328_v59  ;;  %vm2349_vm5 = vcmp.eq.f32.partialorder %v2328_v59, 0.0 }
 0x26f   : > { %v2342_v40 = vadd.f32 %v2341_v34, %v2340_v58  ;;  %v2343_v39 = vadd.f32 1.0, %v2328_v59  ;;  %v2464_v58 = vld [vmem:[%s6736_s4 + $0x308] sm:$0xff] }
 0x270   : > { %v2452_v34 = vld [vmem:[%s6736_s4 + $0x2a8] sm:$0xff] }
 0x271   : > { %3583 = vrsqrt.f32 %v2342_v40  ;;  %vm2354_vm6 = vcmp.eq.f32.partialorder %v2342_v40, inf  ;;  %v2357_v4 = vand.u32 2147483648, %v2342_v40  ;;  %vm2356_vm7 = vcmp.eq.f32.partialorder %v2342_v40, 0.0 }
 0x272   : > { %v2344_v42 = vadd.f32 1.0, %v2342_v40 }
 0x27b   : > { %v3582_v45 = vpop.eup %3581 }
 0x27c   : > { %v2346_v17 = vmul.f32 %v3582_v45, %v2328_v59  ;;  %v2451_v45 = vld [vmem:[%s6736_s4 + $0x2a0] sm:$0xff] }
 0x27e   : > { %v3584_v57 = vpop.eup %3583  ;;  %v2348_v62 = vsel %vm2347_vm4, %v2328_v59, %v2346_v17  ;;  %v2437_v17 = vld [vmem:[%s6736_s4 + $0x230] sm:$0xff] }
 0x27f   : > { %v2353_v9 = vmul.f32 %v3584_v57, %v2342_v40  ;;  %v2351_v10 = vsel %vm2349_vm5, %v2350_v63, %v2348_v62  ;;  %v2439_v63 = vld [vmem:[%s6736_s4 + $0x240] sm:$0xff]  ;;  %v2436_v57 = vld [vmem:[%s6736_s4 + $0x228] sm:$0xff]  ;;  %v2438_v62 = vld [vmem:[%s6736_s4 + $0x238] sm:$0xff] }
 0x280   : > { %v2359_v0 = vadd.f32 1e-08, %v2351_v10  ;;  %v2426_v10 = vld [vmem:[%s6736_s4 + $0x1d8] sm:$0xff] }
 0x281   : > { %v2355_v5 = vsel %vm2354_vm6, %v2342_v40, %v2353_v9  ;;  %v2424_v9 = vld [vmem:[%s6736_s4 + $0x1c8] sm:$0xff] }
 0x282   : > { %v2358_v37 = vsel %vm2356_vm7, %v2357_v4, %v2355_v5  ;;  %v2361_v55 = vmul.f32 %v2359_v0, %v2343_v39  ;;  %v2423_v4 = vld [vmem:[%s6736_s4 + $0x1c0] sm:$0xff]  ;;  %v2425_v39 = vld [vmem:[%s6736_s4 + $0x1d0] sm:$0xff] }
 0x283   : > { %v2360_v60 = vadd.f32 1e-08, %v2358_v37  ;;  %v2411_v0 = vld [vmem:[%s6736_s4 + $0x160] sm:$0xff]  ;;  %v2413_v5 = vld [vmem:[%s6736_s4 + $0x170] sm:$0xff]  ;;  %v2410_v37 = vld [vmem:[%s6736_s4 + $0x158] sm:$0xff] }
 0x284   : > { %3585 = vrcp.f32 %v2361_v55  ;;  %v2412_v55 = vld [vmem:[%s6736_s4 + $0x168] sm:$0xff] }
 0x285   : > { %v2362_v7 = vmul.f32 %v2360_v60, %v2344_v42  ;;  %v2398_v42 = vld [vmem:[%s6736_s4 + $0xf8] sm:$0xff]  ;;  %v2400_v60 = vld [vmem:[%s6736_s4 + $0x108] sm:$0xff] }
 0x287   : > { %3587 = vrcp.f32 %v2362_v7  ;;  %v2397_v7 = vld [vmem:[%s6736_s4 + $0xf0] sm:$0xff] }
 0x291   : > { %v3586_v41 = vpop.eup %3585 }
 0x292   : > { %v5922_v30 = vmul.f32 %v3586_v41, %v2328_v59  ;;  %v2450_v59 = vld [vmem:[%s6736_s4 + $0x298] sm:$0xff]  ;;  %v2399_v41 = vld [vmem:[%s6736_s4 + $0x100] sm:$0xff] }
 0x294   : > { %v3588_v32 = vpop.eup %3587 }
 0x295   : > { %v5920_v12 = vmul.f32 %v3588_v32, %v2342_v40  ;;  %v2449_v40 = vld [vmem:[%s6736_s4 + $0x290] sm:$0xff] }
 0x296   : > { %v2385_v32 = vld [vmem:[%s6736_s4 + $0x90] sm:$0xff] }
 0x297   : > { %3478 = vmatprep.mubr.msk.f32.mxu0 %vm2329_vm3, %v5920_v12  ;;  %3481 = vmatprep.mubr.msk.f32.mxu1 %vm2329_vm3, %v5920_v12 }
 0x298   : > { %2799 = vmatmul.mubr.f32.vlgmr.msra.gmra.mxu0 %v5922_v30  ;;  %2870 = vmatmul.mubr.f32.vlgmr.msra.gmra.mxu1 %v5922_v30 }
 0x299   : > { %2877 = vmatpush1.msra.mxu0 %v2566_v52  ;;  %2948 = vmatpush1.msra.mxu1 %v2568_v48  ;;  %v2387_v52 = vld [vmem:[%s6736_s4 + $0xa0] sm:$0xff]  ;;  %v2384_v48 = vld [vmem:[%s6736_s4 + $0x88] sm:$0xff] }
 0x29a   : > { %2878 = vmatprep.subr.mxu0 %v2554_v13  ;;  %3484 = vmatprep.mubr.msk.f32.mxu0 %vm2329_vm3, %v5920_v12  ;;  %v2386_v13 = vld [vmem:[%s6736_s4 + $0x98] sm:$0xff] }
 0x29b   : > { %2949 = vmatprep.subr.mxu1 %v2556_v8  ;;  %3487 = vmatprep.mubr.msk.f32.mxu1 %vm2329_vm3, %v5920_v12  ;;  %v2372_v8 = vld [vmem:[%s6736_s4 + $0x28] sm:$0xff] }
 0x29c   : > { %2879 = vmatpush1.msra.mxu0 %v2553_v27  ;;  %2950 = vmatpush1.msra.mxu1 %v2555_v50  ;;  %v2374_v27 = vld [vmem:[%s6736_s4 + $0x38] sm:$0xff]  ;;  %v2371_v50 = vld [vmem:[%s6736_s4 + $0x20] sm:$0xff] }
 0x29d   : > { %2880 = vmatprep.subr.mxu0 %v2541_v6  ;;  %2951 = vmatprep.subr.mxu1 %v2543_v28  ;;  %v2373_v6 = vld [vmem:[%s6736_s4 + $0x30] sm:$0xff]  ;;  %v2684_v28 = vld [vmem:[%s6736_s4 + $0x9e8] sm:$0xf] }
 0x29e   : > { %2881 = vmatpush1.msra.mxu0 %v2540_v43  ;;  %2952 = vmatpush1.msra.mxu1 %v2542_v11  ;;  %v2686_v43 = vld [vmem:[%s6736_s4 + $0x9f8] sm:$0xf]  ;;  %v2683_v11 = vld [vmem:[%s6736_s4 + $0x9e0] sm:$0xf] }
 0x29f   : > { %2882 = vmatprep.subr.mxu0 %v2528_v22  ;;  %2953 = vmatprep.subr.mxu1 %v2530_v29  ;;  %v2685_v22 = vld [vmem:[%s6736_s4 + $0x9f0] sm:$0xf]  ;;  %v2671_v29 = vld [vmem:[%s6736_s4 + $0x980] sm:$0xff] }
 0x2a0   : > { %2883 = vmatpush1.msra.mxu0 %v2527_v19  ;;  %2954 = vmatpush1.msra.mxu1 %v2529_v33  ;;  %v2673_v19 = vld [vmem:[%s6736_s4 + $0x990] sm:$0xff]  ;;  %v2670_v33 = vld [vmem:[%s6736_s4 + $0x978] sm:$0xff] }
 0x2a1   : > { %2884 = vmatprep.subr.mxu0 %v2515_v18  ;;  %2955 = vmatprep.subr.mxu1 %v2517_v26  ;;  %v2672_v18 = vld [vmem:[%s6736_s4 + $0x988] sm:$0xff]  ;;  %v2658_v26 = vld [vmem:[%s6736_s4 + $0x918] sm:$0xff] }
 0x2a2   : > { %2885 = vmatpush1.msra.mxu0 %v2514_v47  ;;  %2956 = vmatpush1.msra.mxu1 %v2516_v53  ;;  %v2660_v47 = vld [vmem:[%s6736_s4 + $0x928] sm:$0xff]  ;;  %v2657_v53 = vld [vmem:[%s6736_s4 + $0x910] sm:$0xff] }
 0x2a3   : > { %2886 = vmatprep.subr.mxu0 %v2502_v14  ;;  %2957 = vmatprep.subr.mxu1 %v2504_v20  ;;  %v2659_v14 = vld [vmem:[%s6736_s4 + $0x920] sm:$0xff]  ;;  %v2645_v20 = vld [vmem:[%s6736_s4 + $0x8b0] sm:$0xff] }
 0x2a4   : > { %2887 = vmatpush1.msra.mxu0 %v2501_v15  ;;  %2958 = vmatpush1.msra.mxu1 %v2503_v49  ;;  %v2647_v15 = vld [vmem:[%s6736_s4 + $0x8c0] sm:$0xff]  ;;  %v2644_v49 = vld [vmem:[%s6736_s4 + $0x8a8] sm:$0xff] }
 0x2a5   : > { %2888 = vmatprep.subr.mxu0 %v2489_v56  ;;  %2959 = vmatprep.subr.mxu1 %v2491_v54  ;;  %v2646_v56 = vld [vmem:[%s6736_s4 + $0x8b8] sm:$0xff]  ;;  %v2632_v54 = vld [vmem:[%s6736_s4 + $0x848] sm:$0xff] }
 0x2a6   : > { %2889 = vmatpush1.msra.mxu0 %v2488_v44  ;;  %2960 = vmatpush1.msra.mxu1 %v2490_v38  ;;  %v2634_v44 = vld [vmem:[%s6736_s4 + $0x858] sm:$0xff]  ;;  %v2631_v38 = vld [vmem:[%s6736_s4 + $0x840] sm:$0xff] }
 0x2a7   : > { %2890 = vmatprep.subr.mxu0 %v2476_v46  ;;  %2961 = vmatprep.subr.mxu1 %v2478_v61  ;;  %v2633_v46 = vld [vmem:[%s6736_s4 + $0x850] sm:$0xff]  ;;  %v2619_v61 = vld [vmem:[%s6736_s4 + $0x7e0] sm:$0xff] }
 0x2a8   : > { %2891 = vmatpush1.msra.mxu0 %v2475_v23  ;;  %2962 = vmatpush1.msra.mxu1 %v2477_v1  ;;  %v2621_v23 = vld [vmem:[%s6736_s4 + $0x7f0] sm:$0xff]  ;;  %v2618_v1 = vld [vmem:[%s6736_s4 + $0x7d8] sm:$0xff] }
 0x2a9   : > { %2892 = vmatprep.subr.mxu0 %v2463_v16  ;;  %2963 = vmatprep.subr.mxu1 %v2465_v35  ;;  %v2620_v16 = vld [vmem:[%s6736_s4 + $0x7e8] sm:$0xff]  ;;  %v2606_v35 = vld [vmem:[%s6736_s4 + $0x778] sm:$0xff] }
 0x2aa   : > { %2893 = vmatpush1.msra.mxu0 %v2462_v24  ;;  %2964 = vmatpush1.msra.mxu1 %v2464_v58  ;;  %v2608_v24 = vld [vmem:[%s6736_s4 + $0x788] sm:$0xff]  ;;  %v2605_v58 = vld [vmem:[%s6736_s4 + $0x770] sm:$0xff] }
 0x2ab   : > { %2894 = vmatprep.subr.mxu0 %v2450_v59  ;;  %2965 = vmatprep.subr.mxu1 %v2452_v34  ;;  %v2607_v59 = vld [vmem:[%s6736_s4 + $0x780] sm:$0xff]  ;;  %v2593_v34 = vld [vmem:[%s6736_s4 + $0x710] sm:$0xff] }
 0x2ac   : > { %2895 = vmatpush1.msra.mxu0 %v2449_v40  ;;  %2966 = vmatpush1.msra.mxu1 %v2451_v45  ;;  %v2595_v40 = vld [vmem:[%s6736_s4 + $0x720] sm:$0xff]  ;;  %v2592_v45 = vld [vmem:[%s6736_s4 + $0x708] sm:$0xff] }
 0x2ad   : > { %2896 = vmatprep.subr.mxu0 %v2437_v17  ;;  %2967 = vmatprep.subr.mxu1 %v2439_v63  ;;  %v2594_v17 = vld [vmem:[%s6736_s4 + $0x718] sm:$0xff]  ;;  %v2580_v63 = vld [vmem:[%s6736_s4 + $0x6a8] sm:$0xff] }
 0x2ae   : > { %2897 = vmatpush1.msra.mxu0 %v2436_v57  ;;  %2968 = vmatpush1.msra.mxu1 %v2438_v62  ;;  %v2582_v57 = vld [vmem:[%s6736_s4 + $0x6b8] sm:$0xff]  ;;  %v2579_v62 = vld [vmem:[%s6736_s4 + $0x6a0] sm:$0xff] }
 0x2af   : > { %2898 = vmatprep.subr.mxu0 %v2424_v9  ;;  %2969 = vmatprep.subr.mxu1 %v2426_v10  ;;  %v2581_v9 = vld [vmem:[%s6736_s4 + $0x6b0] sm:$0xff]  ;;  %v2571_v10 = vld [vmem:[%s6736_s4 + $0x660] sm:$0xff] }
 0x2b0   : > { %2899 = vmatpush1.msra.mxu0 %v2423_v4  ;;  %2970 = vmatpush1.msra.mxu1 %v2425_v39  ;;  %v2573_v4 = vld [vmem:[%s6736_s4 + $0x670] sm:$0xff]  ;;  %v2570_v39 = vld [vmem:[%s6736_s4 + $0x658] sm:$0xff] }
 0x2b1   : > { %2900 = vmatprep.subr.mxu0 %v2411_v0  ;;  %2971 = vmatprep.subr.mxu1 %v2413_v5  ;;  %v2572_v0 = vld [vmem:[%s6736_s4 + $0x668] sm:$0xff]  ;;  %v2558_v5 = vld [vmem:[%s6736_s4 + $0x5f8] sm:$0xff] }
 0x2b2   : > { %2901 = vmatpush1.msra.mxu0 %v2410_v37  ;;  %2972 = vmatpush1.msra.mxu1 %v2412_v55  ;;  %v2560_v37 = vld [vmem:[%s6736_s4 + $0x608] sm:$0xff]  ;;  %v2557_v55 = vld [vmem:[%s6736_s4 + $0x5f0] sm:$0xff] }
 0x2b3   : > { %2902 = vmatprep.subr.mxu0 %v2398_v42  ;;  %2973 = vmatprep.subr.mxu1 %v2400_v60  ;;  %v2559_v42 = vld [vmem:[%s6736_s4 + $0x600] sm:$0xff]  ;;  %v2545_v60 = vld [vmem:[%s6736_s4 + $0x590] sm:$0xff] }
 0x2b4   : > { %2903 = vmatpush1.msra.mxu0 %v2397_v7  ;;  %2974 = vmatpush1.msra.mxu1 %v2399_v41  ;;  %v2547_v7 = vld [vmem:[%s6736_s4 + $0x5a0] sm:$0xff]  ;;  %v2544_v41 = vld [vmem:[%s6736_s4 + $0x588] sm:$0xff] }
 0x2b5   : > { %2904 = vmatprep.subr.mxu0 %v2385_v32  ;;  %2975 = vmatprep.subr.mxu1 %v2387_v52  ;;  %v2546_v32 = vld [vmem:[%s6736_s4 + $0x598] sm:$0xff]  ;;  %v2532_v52 = vld [vmem:[%s6736_s4 + $0x528] sm:$0xff] }
 0x2b6   : > { %2905 = vmatpush1.msra.mxu0 %v2384_v48  ;;  %2976 = vmatpush1.msra.mxu1 %v2386_v13  ;;  %v2534_v48 = vld [vmem:[%s6736_s4 + $0x538] sm:$0xff]  ;;  %v2531_v13 = vld [vmem:[%s6736_s4 + $0x520] sm:$0xff] }
 0x2b7   : > { %2906 = vmatprep.subr.mxu0 %v2372_v8  ;;  %2977 = vmatprep.subr.mxu1 %v2374_v27  ;;  %v2533_v8 = vld [vmem:[%s6736_s4 + $0x530] sm:$0xff]  ;;  %v2519_v27 = vld [vmem:[%s6736_s4 + $0x4c0] sm:$0xff] }
 0x2b8   : > { %2907 = vmatpush1.msra.mxu0 %v2371_v50  ;;  %2978 = vmatpush1.msra.mxu1 %v2373_v6  ;;  %v2521_v50 = vld [vmem:[%s6736_s4 + $0x4d0] sm:$0xff]  ;;  %v2518_v6 = vld [vmem:[%s6736_s4 + $0x4b8] sm:$0xff] }
 0x2b9   : > { %3482 = vmatprep.subr.msk.mxu0 %vm356_vm0, %v2684_v28  ;;  %3485 = vmatprep.subr.msk.mxu1 %vm356_vm0, %v2686_v43  ;;  %v2520_v28 = vld [vmem:[%s6736_s4 + $0x4c8] sm:$0xff]  ;;  %v2506_v43 = vld [vmem:[%s6736_s4 + $0x458] sm:$0xff] }
 0x2ba   : > { %3483 = vmatpush2.msk.msra.mxu0 %vm356_vm0, %v2683_v11  ;;  %3486 = vmatpush2.msk.msra.mxu1 %vm356_vm0, %v2685_v22  ;;  %v2508_v11 = vld [vmem:[%s6736_s4 + $0x468] sm:$0xff]  ;;  %v2505_v22 = vld [vmem:[%s6736_s4 + $0x450] sm:$0xff] }
 0x2bb   : > { %2924 = vmatprep.subr.mxu0 %v2671_v29  ;;  %2995 = vmatprep.subr.mxu1 %v2673_v19  ;;  %v2507_v29 = vld [vmem:[%s6736_s4 + $0x460] sm:$0xff]  ;;  %v2493_v19 = vld [vmem:[%s6736_s4 + $0x3f0] sm:$0xff] }
 0x2bc   : > { %2925 = vmatpush2.msra.mxu0 %v2670_v33  ;;  %2996 = vmatpush2.msra.mxu1 %v2672_v18  ;;  %v2495_v33 = vld [vmem:[%s6736_s4 + $0x400] sm:$0xff]  ;;  %v2492_v18 = vld [vmem:[%s6736_s4 + $0x3e8] sm:$0xff] }
 0x2bd   : > { %2926 = vmatprep.subr.mxu0 %v2658_v26  ;;  %2997 = vmatprep.subr.mxu1 %v2660_v47  ;;  %v2494_v26 = vld [vmem:[%s6736_s4 + $0x3f8] sm:$0xff]  ;;  %v2480_v47 = vld [vmem:[%s6736_s4 + $0x388] sm:$0xff] }
 0x2be   : > { %2927 = vmatpush2.msra.mxu0 %v2657_v53  ;;  %2998 = vmatpush2.msra.mxu1 %v2659_v14  ;;  %v2482_v53 = vld [vmem:[%s6736_s4 + $0x398] sm:$0xff]  ;;  %v2479_v14 = vld [vmem:[%s6736_s4 + $0x380] sm:$0xff] }
 0x2bf   : > { %2928 = vmatprep.subr.mxu0 %v2645_v20  ;;  %2999 = vmatprep.subr.mxu1 %v2647_v15  ;;  %v2481_v20 = vld [vmem:[%s6736_s4 + $0x390] sm:$0xff]  ;;  %v2467_v15 = vld [vmem:[%s6736_s4 + $0x320] sm:$0xff] }
 0x2c0   : > { %2929 = vmatpush2.msra.mxu0 %v2644_v49  ;;  %3000 = vmatpush2.msra.mxu1 %v2646_v56  ;;  %v2469_v49 = vld [vmem:[%s6736_s4 + $0x330] sm:$0xff]  ;;  %v2466_v56 = vld [vmem:[%s6736_s4 + $0x318] sm:$0xff] }
 0x2c1   : > { %2930 = vmatprep.subr.mxu0 %v2632_v54  ;;  %3001 = vmatprep.subr.mxu1 %v2634_v44  ;;  %v2468_v54 = vld [vmem:[%s6736_s4 + $0x328] sm:$0xff]  ;;  %v2454_v44 = vld [vmem:[%s6736_s4 + $0x2b8] sm:$0xff] }
 0x2c2   : > { %2931 = vmatpush2.msra.mxu0 %v2631_v38  ;;  %3002 = vmatpush2.msra.mxu1 %v2633_v46  ;;  %v2456_v38 = vld [vmem:[%s6736_s4 + $0x2c8] sm:$0xff]  ;;  %v2453_v46 = vld [vmem:[%s6736_s4 + $0x2b0] sm:$0xff] }
 0x2c3   : > { %2932 = vmatprep.subr.mxu0 %v2619_v61  ;;  %3003 = vmatprep.subr.mxu1 %v2621_v23  ;;  %v2455_v61 = vld [vmem:[%s6736_s4 + $0x2c0] sm:$0xff]  ;;  %v2441_v23 = vld [vmem:[%s6736_s4 + $0x250] sm:$0xff] }
 0x2c4   : > { %2933 = vmatpush2.msra.mxu0 %v2618_v1  ;;  %3004 = vmatpush2.msra.mxu1 %v2620_v16  ;;  %v2443_v1 = vld [vmem:[%s6736_s4 + $0x260] sm:$0xff]  ;;  %v2440_v16 = vld [vmem:[%s6736_s4 + $0x248] sm:$0xff] }
 0x2c5   : > { %2934 = vmatprep.subr.mxu0 %v2606_v35  ;;  %3005 = vmatprep.subr.mxu1 %v2608_v24  ;;  %v2442_v35 = vld [vmem:[%s6736_s4 + $0x258] sm:$0xff]  ;;  %v2428_v24 = vld [vmem:[%s6736_s4 + $0x1e8] sm:$0xff] }
 0x2c6   : > { %2935 = vmatpush2.msra.mxu0 %v2605_v58  ;;  %3006 = vmatpush2.msra.mxu1 %v2607_v59  ;;  %v2430_v58 = vld [vmem:[%s6736_s4 + $0x1f8] sm:$0xff]  ;;  %v2427_v59 = vld [vmem:[%s6736_s4 + $0x1e0] sm:$0xff] }
 0x2c7   : > { %2936 = vmatprep.subr.mxu0 %v2593_v34  ;;  %3007 = vmatprep.subr.mxu1 %v2595_v40  ;;  %v2429_v34 = vld [vmem:[%s6736_s4 + $0x1f0] sm:$0xff]  ;;  %v2415_v40 = vld [vmem:[%s6736_s4 + $0x180] sm:$0xff] }
 0x2c8   : > { %2937 = vmatpush2.msra.mxu0 %v2592_v45  ;;  %3008 = vmatpush2.msra.mxu1 %v2594_v17  ;;  %v2417_v45 = vld [vmem:[%s6736_s4 + $0x190] sm:$0xff]  ;;  %v2414_v17 = vld [vmem:[%s6736_s4 + $0x178] sm:$0xff] }
 0x2c9   : > { %2938 = vmatprep.subr.mxu0 %v2580_v63  ;;  %3009 = vmatprep.subr.mxu1 %v2582_v57  ;;  %v2416_v63 = vld [vmem:[%s6736_s4 + $0x188] sm:$0xff]  ;;  %v2402_v57 = vld [vmem:[%s6736_s4 + $0x118] sm:$0xff] }
 0x2ca   : > { %2939 = vmatpush2.msra.mxu0 %v2579_v62  ;;  %3010 = vmatpush2.msra.mxu1 %v2581_v9  ;;  %v2404_v62 = vld [vmem:[%s6736_s4 + $0x128] sm:$0xff]  ;;  %v2401_v9 = vld [vmem:[%s6736_s4 + $0x110] sm:$0xff] }
 0x2cb   : > { %2941 = vmatmul.mubr.f32.vlgmr.msra.gmra.mxu0 %v5922_v30  ;;  %3012 = vmatmul.mubr.f32.vlgmr.msra.gmra.mxu1 %v5922_v30 }
 0x2cc   : > { %3018 = vmatprep.subr.mxu0 %v2571_v10  ;;  %3089 = vmatprep.subr.mxu1 %v2573_v4  ;;  %v2403_v10 = vld [vmem:[%s6736_s4 + $0x120] sm:$0xff]  ;;  %v2389_v4 = vld [vmem:[%s6736_s4 + $0xb0] sm:$0xff] }
 0x2cd   : > { %3019 = vmatpush1.msra.mxu0 %v2570_v39  ;;  %3490 = vmatprep.mubr.msk.f32.mxu0 %vm2329_vm3, %v5920_v12  ;;  %v2391_v39 = vld [vmem:[%s6736_s4 + $0xc0] sm:$0xff] }
 0x2ce   : > { %3090 = vmatpush1.msra.mxu1 %v2572_v0  ;;  %3493 = vmatprep.mubr.msk.f32.mxu1 %vm2329_vm3, %v5920_v12  ;;  %v2388_v0 = vld [vmem:[%s6736_s4 + $0xa8] sm:$0xff] }
 0x2cf   : > { %3020 = vmatprep.subr.mxu0 %v2558_v5  ;;  %3091 = vmatprep.subr.mxu1 %v2560_v37  ;;  %v2390_v5 = vld [vmem:[%s6736_s4 + $0xb8] sm:$0xff]  ;;  %v2376_v37 = vld [vmem:[%s6736_s4 + $0x48] sm:$0xff] }
 0x2d0   : > { %3021 = vmatpush1.msra.mxu0 %v2557_v55  ;;  %3092 = vmatpush1.msra.mxu1 %v2559_v42  ;;  %v2378_v55 = vld [vmem:[%s6736_s4 + $0x58] sm:$0xff]  ;;  %v2375_v42 = vld [vmem:[%s6736_s4 + $0x40] sm:$0xff] }
 0x2d1   : > { %3022 = vmatprep.subr.mxu0 %v2545_v60  ;;  %3093 = vmatprep.subr.mxu1 %v2547_v7  ;;  %v2377_v60 = vld [vmem:[%s6736_s4 + $0x50] sm:$0xff]  ;;  %v2688_v7 = vld [vmem:[%s6736_s4 + $0xa08] sm:$0xf] }
 0x2d2   : > { %3023 = vmatpush1.msra.mxu0 %v2544_v41  ;;  %3094 = vmatpush1.msra.mxu1 %v2546_v32  ;;  %v2690_v41 = vld [vmem:[%s6736_s4 + $0xa18] sm:$0xf]  ;;  %v2687_v32 = vld [vmem:[%s6736_s4 + $0xa00] sm:$0xf] }
 0x2d3   : > { %3024 = vmatprep.subr.mxu0 %v2532_v52  ;;  %3095 = vmatprep.subr.mxu1 %v2534_v48  ;;  %v2689_v52 = vld [vmem:[%s6736_s4 + $0xa10] sm:$0xf]  ;;  %v2675_v48 = vld [vmem:[%s6736_s4 + $0x9a0] sm:$0xff] }
 0x2d4   : > { %3025 = vmatpush1.msra.mxu0 %v2531_v13  ;;  %3096 = vmatpush1.msra.mxu1 %v2533_v8  ;;  %v2677_v13 = vld [vmem:[%s6736_s4 + $0x9b0] sm:$0xff]  ;;  %v2674_v8 = vld [vmem:[%s6736_s4 + $0x998] sm:$0xff] }
 0x2d5   : > { %3026 = vmatprep.subr.mxu0 %v2519_v27  ;;  %3097 = vmatprep.subr.mxu1 %v2521_v50  ;;  %v2676_v27 = vld [vmem:[%s6736_s4 + $0x9a8] sm:$0xff]  ;;  %v2662_v50 = vld [vmem:[%s6736_s4 + $0x938] sm:$0xff] }
 0x2d6   : > { %3027 = vmatpush1.msra.mxu0 %v2518_v6  ;;  %3098 = vmatpush1.msra.mxu1 %v2520_v28  ;;  %v2664_v6 = vld [vmem:[%s6736_s4 + $0x948] sm:$0xff]  ;;  %v2661_v28 = vld [vmem:[%s6736_s4 + $0x930] sm:$0xff] }
 0x2d7   : > { %3028 = vmatprep.subr.mxu0 %v2506_v43  ;;  %3099 = vmatprep.subr.mxu1 %v2508_v11  ;;  %v2663_v43 = vld [vmem:[%s6736_s4 + $0x940] sm:$0xff]  ;;  %v2649_v11 = vld [vmem:[%s6736_s4 + $0x8d0] sm:$0xff] }
 0x2d8   : > { %3029 = vmatpush1.msra.mxu0 %v2505_v22  ;;  %3100 = vmatpush1.msra.mxu1 %v2507_v29  ;;  %v2651_v22 = vld [vmem:[%s6736_s4 + $0x8e0] sm:$0xff]  ;;  %v2648_v29 = vld [vmem:[%s6736_s4 + $0x8c8] sm:$0xff] }
 0x2d9   : > { %3030 = vmatprep.subr.mxu0 %v2493_v19  ;;  %3101 = vmatprep.subr.mxu1 %v2495_v33  ;;  %v2650_v19 = vld [vmem:[%s6736_s4 + $0x8d8] sm:$0xff]  ;;  %v2636_v33 = vld [vmem:[%s6736_s4 + $0x868] sm:$0xff] }
 0x2da   : > { %3031 = vmatpush1.msra.mxu0 %v2492_v18  ;;  %3102 = vmatpush1.msra.mxu1 %v2494_v26  ;;  %v2638_v18 = vld [vmem:[%s6736_s4 + $0x878] sm:$0xff]  ;;  %v2635_v26 = vld [vmem:[%s6736_s4 + $0x860] sm:$0xff] }
 0x2db   : > { %3032 = vmatprep.subr.mxu0 %v2480_v47  ;;  %3103 = vmatprep.subr.mxu1 %v2482_v53  ;;  %v2637_v47 = vld [vmem:[%s6736_s4 + $0x870] sm:$0xff]  ;;  %v2623_v53 = vld [vmem:[%s6736_s4 + $0x800] sm:$0xff] }
 0x2dc   : > { %3033 = vmatpush1.msra.mxu0 %v2479_v14  ;;  %3104 = vmatpush1.msra.mxu1 %v2481_v20  ;;  %v2625_v14 = vld [vmem:[%s6736_s4 + $0x810] sm:$0xff]  ;;  %v2622_v20 = vld [vmem:[%s6736_s4 + $0x7f8] sm:$0xff] }
 0x2dd   : > { %3034 = vmatprep.subr.mxu0 %v2467_v15  ;;  %3105 = vmatprep.subr.mxu1 %v2469_v49  ;;  %v2624_v15 = vld [vmem:[%s6736_s4 + $0x808] sm:$0xff]  ;;  %v2610_v49 = vld [vmem:[%s6736_s4 + $0x798] sm:$0xff] }
 0x2de   : > { %3035 = vmatpush1.msra.mxu0 %v2466_v56  ;;  %3106 = vmatpush1.msra.mxu1 %v2468_v54  ;;  %v2612_v56 = vld [vmem:[%s6736_s4 + $0x7a8] sm:$0xff]  ;;  %v2609_v54 = vld [vmem:[%s6736_s4 + $0x790] sm:$0xff] }
 0x2df   : > { %3036 = vmatprep.subr.mxu0 %v2454_v44  ;;  %3107 = vmatprep.subr.mxu1 %v2456_v38  ;;  %v2611_v44 = vld [vmem:[%s6736_s4 + $0x7a0] sm:$0xff]  ;;  %v2597_v38 = vld [vmem:[%s6736_s4 + $0x730] sm:$0xff] }
 0x2e0   : > { %3037 = vmatpush1.msra.mxu0 %v2453_v46  ;;  %3108 = vmatpush1.msra.mxu1 %v2455_v61  ;;  %v2599_v46 = vld [vmem:[%s6736_s4 + $0x740] sm:$0xff]  ;;  %v2596_v61 = vld [vmem:[%s6736_s4 + $0x728] sm:$0xff] }
 0x2e1   : > { %3038 = vmatprep.subr.mxu0 %v2441_v23  ;;  %3109 = vmatprep.subr.mxu1 %v2443_v1  ;;  %v2598_v23 = vld [vmem:[%s6736_s4 + $0x738] sm:$0xff]  ;;  %v2584_v1 = vld [vmem:[%s6736_s4 + $0x6c8] sm:$0xff] }
 0x2e2   : > { %3039 = vmatpush1.msra.mxu0 %v2440_v16  ;;  %3110 = vmatpush1.msra.mxu1 %v2442_v35  ;;  %v2586_v16 = vld [vmem:[%s6736_s4 + $0x6d8] sm:$0xff]  ;;  %v2583_v35 = vld [vmem:[%s6736_s4 + $0x6c0] sm:$0xff] }
 0x2e3   : > { %3040 = vmatprep.subr.mxu0 %v2428_v24  ;;  %3111 = vmatprep.subr.mxu1 %v2430_v58  ;;  %v2585_v24 = vld [vmem:[%s6736_s4 + $0x6d0] sm:$0xff]  ;;  %v2574_v58 = vld [vmem:[%s6736_s4 + $0x678] sm:$0xff] }
 0x2e4   : > { %3041 = vmatpush1.msra.mxu0 %v2427_v59  ;;  %3112 = vmatpush1.msra.mxu1 %v2429_v34  ;;  %v6755_v59 = vmov 0.0   ;;  %v2561_v34 = vld [vmem:[%s6736_s4 + $0x610] sm:$0xff] }
 0x2e5   : > { %3042 = vmatprep.subr.mxu0 %v2415_v40  ;;  %3113 = vmatprep.subr.mxu1 %v2417_v45  ;;  %v2548_v40 = vld [vmem:[%s6736_s4 + $0x5a8] sm:$0xff]  ;;  %v2535_v45 = vld [vmem:[%s6736_s4 + $0x540] sm:$0xff] }
 0x2e6   : > { %3043 = vmatpush1.msra.mxu0 %v2414_v17  ;;  %3114 = vmatpush1.msra.mxu1 %v2416_v63  ;;  %v2509_v17 = vld [vmem:[%s6736_s4 + $0x470] sm:$0xff]  ;;  %v2496_v63 = vld [vmem:[%s6736_s4 + $0x408] sm:$0xff] }
 0x2e7   : > { %3044 = vmatprep.subr.mxu0 %v2402_v57  ;;  %3115 = vmatprep.subr.mxu1 %v2404_v62  ;;  %v2483_v57 = vld [vmem:[%s6736_s4 + $0x3a0] sm:$0xff]  ;;  %v2470_v62 = vld [vmem:[%s6736_s4 + $0x338] sm:$0xff] }
 0x2e8   : > { %3045 = vmatpush1.msra.mxu0 %v2401_v9  ;;  %3116 = vmatpush1.msra.mxu1 %v2403_v10  ;;  %v2457_v9 = vld [vmem:[%s6736_s4 + $0x2d0] sm:$0xff]  ;;  %v2444_v10 = vld [vmem:[%s6736_s4 + $0x268] sm:$0xff] }
 0x2e9   : > { %3046 = vmatprep.subr.mxu0 %v2389_v4  ;;  %3117 = vmatprep.subr.mxu1 %v2391_v39  ;;  %v2431_v4 = vld [vmem:[%s6736_s4 + $0x200] sm:$0xff]  ;;  %v2418_v39 = vld [vmem:[%s6736_s4 + $0x198] sm:$0xff] }
 0x2ea   : > { %3047 = vmatpush1.msra.mxu0 %v2388_v0  ;;  %3118 = vmatpush1.msra.mxu1 %v2390_v5  ;;  %v2405_v0 = vld [vmem:[%s6736_s4 + $0x130] sm:$0xff]  ;;  %v2392_v5 = vld [vmem:[%s6736_s4 + $0xc8] sm:$0xff] }
 0x2eb   : > { %3048 = vmatprep.subr.mxu0 %v2376_v37  ;;  %3119 = vmatprep.subr.mxu1 %v2378_v55  ;;  %v2379_v37 = vld [vmem:[%s6736_s4 + $0x60] sm:$0xff] }
 0x2ec   : > { %3049 = vmatpush1.msra.mxu0 %v2375_v42  ;;  %3120 = vmatpush1.msra.mxu1 %v2377_v60  ;;  %v2691_v55 = vld [vmem:[%s6736_s4 + $0xa20] sm:$0xf]  ;;  %v2678_v42 = vld [vmem:[%s6736_s4 + $0x9b8] sm:$0xff]  ;;  %v2665_v60 = vld [vmem:[%s6736_s4 + $0x950] sm:$0xff] }
 0x2ed   : > { %3488 = vmatprep.subr.msk.mxu0 %vm356_vm0, %v2688_v7  ;;  %3491 = vmatprep.subr.msk.mxu1 %vm356_vm0, %v2690_v41  ;;  %v2652_v7 = vld [vmem:[%s6736_s4 + $0x8e8] sm:$0xff]  ;;  %v2639_v41 = vld [vmem:[%s6736_s4 + $0x880] sm:$0xff] }
 0x2ee   : > { %3489 = vmatpush2.msk.msra.mxu0 %vm356_vm0, %v2687_v32  ;;  %3492 = vmatpush2.msk.msra.mxu1 %vm356_vm0, %v2689_v52  ;;  %v2626_v32 = vld [vmem:[%s6736_s4 + $0x818] sm:$0xff]  ;;  %v2613_v52 = vld [vmem:[%s6736_s4 + $0x7b0] sm:$0xff] }
 0x2ef   : > { %3066 = vmatprep.subr.mxu0 %v2675_v48  ;;  %3137 = vmatprep.subr.mxu1 %v2677_v13  ;;  %v2600_v48 = vld [vmem:[%s6736_s4 + $0x748] sm:$0xff]  ;;  %v2587_v13 = vld [vmem:[%s6736_s4 + $0x6e0] sm:$0xff] }
 0x2f0   : > { %3067 = vmatpush2.msra.mxu0 %v2674_v8  ;;  %3138 = vmatpush2.msra.mxu1 %v2676_v27  ;;  %v1122_v8 = vrot.slane %v4495_v51, 4  ;;  %v1131_v27 = vrot.slane %v4519_v2, 4 }
 0x2f1   : > { %3068 = vmatprep.subr.mxu0 %v2662_v50  ;;  %3139 = vmatprep.subr.mxu1 %v2664_v6  ;;  %v1140_v50 = vrot.slane %v4664_v3, 4  ;;  %v1149_v6 = vrot.slane %v4685_v25, 4 }
 0x2f2   : > { %3069 = vmatpush2.msra.mxu0 %v2661_v28  ;;  %3140 = vmatpush2.msra.mxu1 %v2663_v43  ;;  %v1123_v28 = vadd.f32 %v1122_v8, %v4495_v51 }
 0x2f3   : > { %3070 = vmatprep.subr.mxu0 %v2649_v11  ;;  %3141 = vmatprep.subr.mxu1 %v2651_v22  ;;  %v1141_v43 = vadd.f32 %v1140_v50, %v4664_v3  ;;  %v1132_v11 = vadd.f32 %v1131_v27, %v4519_v2  ;;  %v1150_v22 = vadd.f32 %v1149_v6, %v4685_v25 }
 0x2f4   : > { %3071 = vmatpush2.msra.mxu0 %v2648_v29  ;;  %3142 = vmatpush2.msra.mxu1 %v2650_v19  ;;  %v1124_v29 = vrot.slane %v1123_v28, 2 }
 0x2f5   : > { %3072 = vmatprep.subr.mxu0 %v2636_v33  ;;  %3143 = vmatprep.subr.mxu1 %v2638_v18  ;;  %v1142_v19 = vrot.slane %v1141_v43, 2  ;;  %v1133_v33 = vrot.slane %v1132_v11, 2 }
 0x2f6   : > { %3073 = vmatpush2.msra.mxu0 %v2635_v26  ;;  %3144 = vmatpush2.msra.mxu1 %v2637_v47  ;;  %v1125_v18 = vadd.f32 %v1124_v29, %v1123_v28 }
 0x2f7   : > { %3074 = vmatprep.subr.mxu0 %v2623_v53  ;;  %3145 = vmatprep.subr.mxu1 %v2625_v14  ;;  %v1143_v26 = vadd.f32 %v1142_v19, %v1141_v43  ;;  %v1134_v47 = vadd.f32 %v1133_v33, %v1132_v11  ;;  %v3653_v14 = vmov 1966171168  }
 0x2f8   : > { %3075 = vmatpush2.msra.mxu0 %v2622_v20  ;;  %3146 = vmatpush2.msra.mxu1 %v2624_v15  ;;  %v3261_v20 = vunpack.c.l.s4 %v3653_v14  ;;  %v3263_v15 = vlaneseq }
 0x2f9   : > { %3076 = vmatprep.subr.mxu0 %v2610_v49  ;;  %3147 = vmatprep.subr.mxu1 %v2612_v56  ;;  %v1126_v49 = vrot.slane %v1125_v18, 1  ;;  %v1144_v56 = vrot.slane %v1143_v26, 1  ;;  %v1135_v51 = vrot.slane %v1134_v47, 1 }
 0x2fa   : > { %3077 = vmatpush2.msra.mxu0 %v2609_v54  ;;  %3148 = vmatpush2.msra.mxu1 %v2611_v44  ;;  %v3262_v3 = vunpack.c.0.s8 %v3261_v20  ;;  %v3264_v2 = vshrl.u32 %v3263_v15, 7  ;;  %vm3349_vm8 = vcmp.lt.s32.totalorder %v3263_v15, 544 }
 0x2fb   : > { %3078 = vmatprep.subr.mxu0 %v2597_v38  ;;  %3149 = vmatprep.subr.mxu1 %v2599_v46  ;;  %v1127_v38 = vadd.f32 %v1126_v49, %v1125_v18  ;;  %v1145_v46 = vadd.f32 %v1144_v56, %v1143_v26 }
 0x2fc   : > { %3079 = vmatpush2.msra.mxu0 %v2596_v61  ;;  %3150 = vmatpush2.msra.mxu1 %v2598_v23  ;;  %v1136_v61 = vadd.f32 %v1135_v51, %v1134_v47  ;;  %v6757_v51 = vld [vmem:[#allocation5_spill] sm:$0xff] }
 0x2fd   : > { %3080 = vmatprep.subr.mxu0 %v2584_v1  ;;  %3151 = vmatprep.subr.mxu1 %v2586_v16  ;;  %v6657_v16 = vsub.s32 %v3262_v3, %v3264_v2  ;;  %v6758_v3 = vld [vmem:[#allocation6_spill] sm:$0xff] }
 0x2fe   : > { %3081 = vmatpush2.msra.mxu0 %v2583_v35  ;;  %3152 = vmatpush2.msra.mxu1 %v2585_v24  ;;  %v1203_v2 = vrot.slane %v6758_v3, 4 }
 0x2ff   : > { %3083 = vmatmul.mubr.f32.vlgmr.msra.gmra.mxu0 %v5922_v30  ;;  %3154 = vmatmul.mubr.f32.vlgmr.msra.gmra.mxu1 %v5922_v30 }
 0x300   : > { %3160 = vmatprep.subr.mxu0 %v6755_v59  ;;  %3495 = vmatprep.mubr.msk.f32.mxu0 %vm2329_vm3, %v5920_v12  ;;  %v2522_v12 = vld [vmem:[%s6736_s4 + $0x4d8] sm:$0xff] }
 0x301   : > { %3161 = vmatpush1.msra.mxu0 %v2574_v58 }
 0x302   : > { %3162 = vmatprep.subr.mxu0 %v6755_v59 }
 0x303   : > { %3163 = vmatpush1.msra.mxu0 %v2561_v34 }
 0x304   : > { %3164 = vmatprep.subr.mxu0 %v6755_v59 }
 0x305   : > { %3165 = vmatpush1.msra.mxu0 %v2548_v40 }
 0x306   : > { %3166 = vmatprep.subr.mxu0 %v6755_v59 }
 0x307   : > { %3167 = vmatpush1.msra.mxu0 %v2535_v45 }
 0x308   : > { %3168 = vmatprep.subr.mxu0 %v6755_v59 }
 0x309   : > { %3169 = vmatpush1.msra.mxu0 %v2522_v12 }
 0x30a   : > { %3170 = vmatprep.subr.mxu0 %v6755_v59 }
 0x30b   : > { %3171 = vmatpush1.msra.mxu0 %v2509_v17 }
 0x30c   : > { %3172 = vmatprep.subr.mxu0 %v6755_v59 }
 0x30d   : > { %3173 = vmatpush1.msra.mxu0 %v2496_v63 }
 0x30e   : > { %3174 = vmatprep.subr.mxu0 %v6755_v59 }
 0x30f   : > { %3175 = vmatpush1.msra.mxu0 %v2483_v57  ;;  %v1158_v57 = vrot.slane %v4714_v31, 4 }
 0x310   : > { %3176 = vmatprep.subr.mxu0 %v6755_v59 }
 0x311   : > { %3177 = vmatpush1.msra.mxu0 %v2470_v62  ;;  %v1167_v62 = vrot.slane %v4728_v21, 4 }
 0x312   : > { %3178 = vmatprep.subr.mxu0 %v6755_v59 }
 0x313   : > { %3179 = vmatpush1.msra.mxu0 %v2457_v9  ;;  %v1176_v9 = vrot.slane %v4905_v36, 4 }
 0x314   : > { %3180 = vmatprep.subr.mxu0 %v6755_v59 }
 0x315   : > { %3181 = vmatpush1.msra.mxu0 %v2444_v10  ;;  %v6756_v10 = vld [vmem:[#allocation8_spill] sm:$0xff] }
 0x316   : > { %3182 = vmatprep.subr.mxu0 %v6755_v59 }
 0x317   : > { %3183 = vmatpush1.msra.mxu0 %v2431_v4  ;;  %v1185_v4 = vrot.slane %v6756_v10, 4 }
 0x318   : > { %3184 = vmatprep.subr.mxu0 %v6755_v59 }
 0x319   : > { %3185 = vmatpush1.msra.mxu0 %v2418_v39  ;;  %v1159_v39 = vadd.f32 %v1158_v57, %v4714_v31 }
 0x31a   : > { %3186 = vmatprep.subr.mxu0 %v6755_v59 }
 0x31b   : > { %3187 = vmatpush1.msra.mxu0 %v2405_v0  ;;  %v1177_v0 = vadd.f32 %v1176_v9, %v4905_v36 }
 0x31c   : > { %3188 = vmatprep.subr.mxu0 %v6755_v59 }
 0x31d   : > { %3189 = vmatpush1.msra.mxu0 %v2392_v5  ;;  %v1168_v5 = vadd.f32 %v1167_v62, %v4728_v21 }
 0x31e   : > { %3190 = vmatprep.subr.mxu0 %v6755_v59 }
 0x31f   : > { %3191 = vmatpush1.msra.mxu0 %v2379_v37  ;;  %v1186_v37 = vadd.f32 %v1185_v4, %v6756_v10 }
 0x320   : > { %3206 = vmatprep.subr.mxu0 %v6755_v59 }
 0x321   : > { %3494 = vmatpush2.msk.msra.mxu0 %vm356_vm0, %v2691_v55  ;;  %v1160_v55 = vrot.slane %v1159_v39, 2 }
 0x322   : > { %3208 = vmatprep.subr.mxu0 %v6755_v59 }
 0x323   : > { %3209 = vmatpush2.msra.mxu0 %v2678_v42  ;;  %v1178_v42 = vrot.slane %v1177_v0, 2 }
 0x324   : > { %3210 = vmatprep.subr.mxu0 %v6755_v59 }
 0x325   : > { %3211 = vmatpush2.msra.mxu0 %v2665_v60  ;;  %v1169_v60 = vrot.slane %v1168_v5, 2 }
 0x326   : > { %3212 = vmatprep.subr.mxu0 %v6755_v59 }
 0x327   : > { %3213 = vmatpush2.msra.mxu0 %v2652_v7  ;;  %v1187_v7 = vrot.slane %v1186_v37, 2 }
 0x328   : > { %3214 = vmatprep.subr.mxu0 %v6755_v59 }
 0x329   : > { %3215 = vmatpush2.msra.mxu0 %v2639_v41  ;;  %v1161_v41 = vadd.f32 %v1160_v55, %v1159_v39 }
 0x32a   : > { %3216 = vmatprep.subr.mxu0 %v6755_v59 }
 0x32b   : > { %3217 = vmatpush2.msra.mxu0 %v2626_v32  ;;  %v1179_v32 = vadd.f32 %v1178_v42, %v1177_v0 }
 0x32c   : > { %3218 = vmatprep.subr.mxu0 %v6755_v59 }
 0x32d   : > { %3219 = vmatpush2.msra.mxu0 %v2613_v52  ;;  %v1170_v52 = vadd.f32 %v1169_v60, %v1168_v5  ;;  %v1180_v8 = vrot.slane %v1179_v32, 1 }
 0x32e   : > { %3220 = vmatprep.subr.mxu0 %v6755_v59 }
 0x32f   : > { %3221 = vmatpush2.msra.mxu0 %v2600_v48  ;;  %v1188_v48 = vadd.f32 %v1187_v7, %v1186_v37  ;;  %v1171_v27 = vrot.slane %v1170_v52, 1  ;;  %v1181_v21 = vadd.f32 %v1180_v8, %v1179_v32 }
 0x330   : > { %3222 = vmatprep.subr.mxu0 %v6755_v59 }
 0x331   : > { %3223 = vmatpush2.msra.mxu0 %v2587_v13  ;;  %v1162_v13 = vrot.slane %v1161_v41, 1  ;;  %v1189_v50 = vrot.slane %v1188_v48, 1  ;;  %v1172_v28 = vadd.f32 %v1171_v27, %v1170_v52 }
 0x332   : > { %3225 = vmatmul.mubr.f32.vlgmr.msra.gmra.mxu0 %v5922_v30  ;;  %v1151_v30 = vrot.slane %v1150_v22, 2 }
 0x333   : > { %v1163_v36 = vadd.f32 %v1162_v13, %v1161_v41  ;;  %v1190_v43 = vadd.f32 %v1189_v50, %v1188_v48  ;;  %v6761_v50 = vld [vmem:[#allocation7_spill] sm:$0xff] }
 0x334   : > { %v1152_v53 = vadd.f32 %v1151_v30, %v1150_v22 }
 0x336   : > { %v1153_v54 = vrot.slane %v1152_v53, 1 }
 0x338   : > { %v1154_v23 = vadd.f32 %v1153_v54, %v1152_v53  ;;  %v1194_v54 = vrot.slane %v6757_v51, 4 }
 0x358   : > { %v2800_v44 = vpop.f32.mrf.mxu0  ;;  %v2871_v25 = vpop.f32.mrf.mxu1 }
 0x359   : > { %v3230_v24 = vmul.f32 %v2800_v44, %v1127_v38  ;;  %v3232_v58 = vmul.f32 %v2871_v25, %v1145_v46  ;;  %v6759_v44 = vld [vmem:[#allocation9_spill] sm:$0xff]  ;;  %v6760_v38 = vld [vmem:[#allocation10_spill] sm:$0xff] }
 0x35a   : > { %v2802_v1 = vpop.f32.mrf.mxu0  ;;  %v2873_v35 = vpop.f32.mrf.mxu1  ;;  %v1212_v25 = vrot.slane %v6759_v44, 4  ;;  %v1221_v46 = vrot.slane %v6760_v38, 4 }
 0x35b   : > { %v3231_v59 = vmul.f32 %v2802_v1, %v1136_v61  ;;  %v3233_v34 = vmul.f32 %v2873_v35, %v1154_v23  ;;  %v1195_v61 = vadd.f32 %v1194_v54, %v6757_v51  ;;  %v1204_v1 = vadd.f32 %v1203_v2, %v6758_v3 }
 0x35c   : > { %v1213_v23 = vadd.f32 %v1212_v25, %v6759_v44  ;;  %v1222_v35 = vadd.f32 %v1221_v46, %v6760_v38 }
 0x35d   : > { %v3256_v40 = vcombine.low %v3230_v24, %v3231_v59  ;;  %v3257_v45 = vcombine.low %v3232_v58, %v3233_v34  ;;  %v1196_v24 = vrot.slane %v1195_v61, 2  ;;  %v1205_v59 = vrot.slane %v1204_v1, 2 }
 0x35e   : > { %v1214_v58 = vrot.slane %v1213_v23, 2  ;;  %v1223_v34 = vrot.slane %v1222_v35, 2 }
 0x35f   : > { %v3266_v12 = vrot.slane %v3256_v40, %v6657_v16  ;;  %v3273_v17 = vrot.slane %v3257_v45, %v6657_v16  ;;  %v1197_v40 = vadd.f32 %v1196_v24, %v1195_v61 }
 0x360   : > { %v1215_v45 = vadd.f32 %v1214_v58, %v1213_v23 }
 0x361   : > { %v3288_v63 = vcombine.low %v3266_v12, %v3273_v17  ;;  %v1206_v12 = vadd.f32 %v1205_v59, %v1204_v1  ;;  %v1224_v17 = vadd.f32 %v1223_v34, %v1222_v35 }
 0x362   : > { %v1216_v57 = vrot.slane %v1215_v45, 1 }
 0x363   : > { %v3296_v20 = vrot.slane %v3288_v63, %v6657_v16  ;;  %v1198_v63 = vrot.slane %v1197_v40, 1  ;;  %v1207_v62 = vrot.slane %v1206_v12, 1  ;;  %v1225_v9 = vrot.slane %v1224_v17, 1 }
 0x364   : > { %v1217_v0 = vadd.f32 %v1216_v57, %v1215_v45 }
 0x365   : > { %v1199_v39 = vadd.f32 %v1198_v63, %v1197_v40  ;;  %v1208_v5 = vadd.f32 %v1207_v62, %v1206_v12  ;;  %v1226_v37 = vadd.f32 %v1225_v9, %v1224_v17 }
 0x38b   : > { %v2942_v31 = vpop.f32.mrf.mxu0  ;;  %v3013_v6 = vpop.f32.mrf.mxu1 }
 0x38c   : > { %v3234_v29 = vmul.f32 %v2942_v31, %v1163_v36  ;;  %v3236_v19 = vmul.f32 %v3013_v6, %v1181_v21  ;;  %v1235_v31 = vrot.slane %v6761_v50, 4 }
 0x38d   : > { %v2944_v11 = vpop.f32.mrf.mxu0  ;;  %v3015_v22 = vpop.f32.mrf.mxu1 }
 0x38e   : > { %v3235_v33 = vmul.f32 %v2944_v11, %v1172_v28  ;;  %v3237_v30 = vmul.f32 %v3015_v22, %v1190_v43  ;;  %v1236_v6 = vadd.f32 %v1235_v31, %v6761_v50 }
 0x390   : > { %v3258_v18 = vcombine.low %v3234_v29, %v3235_v33  ;;  %v3259_v26 = vcombine.low %v3236_v19, %v3237_v30  ;;  %v1237_v36 = vrot.slane %v1236_v6, 2 }
 0x392   : > { %v3280_v47 = vrot.slane %v3258_v18, %v6657_v16  ;;  %v3287_v53 = vrot.slane %v3259_v26, %v6657_v16  ;;  %v1238_v21 = vadd.f32 %v1237_v36, %v1236_v6 }
 0x394   : > { %v3289_v14 = vcombine.low %v3280_v47, %v3287_v53  ;;  %v1239_v28 = vrot.slane %v1238_v21, 1 }
 0x396   : > { %v3303_v49 = vrot.slane %v3289_v14, %v6657_v16  ;;  %v1240_v43 = vadd.f32 %v1239_v28, %v1238_v21 }
 0x398   : > { %v3304_v56 = vcombine.low %v3296_v20, %v3303_v49 }
 0x39a   : > { %3346 = vst [vmem:[%s6676_s12] sm:$0xff] %v3304_v56 }
 0x3bf   : > { %v3084_v10 = vpop.f32.mrf.mxu0  ;;  %v3155_v4 = vpop.f32.mrf.mxu1 }
 0x3c0   : > { %v3238_v60 = vmul.f32 %v3084_v10, %v1199_v39  ;;  %v3240_v7 = vmul.f32 %v3155_v4, %v1217_v0 }
 0x3c1   : > { %v3086_v55 = vpop.f32.mrf.mxu0  ;;  %v3157_v42 = vpop.f32.mrf.mxu1 }
 0x3c2   : > { %v3239_v41 = vmul.f32 %v3086_v55, %v1208_v5  ;;  %v3241_v32 = vmul.f32 %v3157_v42, %v1226_v37 }
 0x3c4   : > { %v3305_v52 = vcombine.low %v3238_v60, %v3239_v41  ;;  %v3306_v48 = vcombine.low %v3240_v7, %v3241_v32 }
 0x3c6   : > { %v3313_v13 = vrot.slane %v3305_v52, %v6657_v16  ;;  %v3320_v8 = vrot.slane %v3306_v48, %v6657_v16 }
 0x3c8   : > { %v3328_v27 = vcombine.low %v3313_v13, %v3320_v8 }
 0x3ca   : > { %v3335_v33 = vrot.slane %v3328_v27, %v6657_v16 }
 0x3f2   : > { %v3226_v11 = vpop.f32.mrf.mxu0 }
 0x3f3   : > { %v3242_v22 = vmul.f32 %v3226_v11, %v1240_v43 }
 0x3f4   : > { %v3228_v29 = vpop.f32.mrf.mxu0 }
 0x3f5   : > { %v3327_v19 = vrot.slane %v3242_v22, %v6657_v16 }
 0x3f7   : > { %v3342_v30 = vrot.slane %v3327_v19, %v6657_v16 }
 0x3f9   : > { %v3343_v18 = vcombine.low %v3335_v33, %v3342_v30 }
 0x3fb   : > { %3351 = vst.msk [vmem:[%s6676_s12 + $0x8] sm:$0x1f] %vm3349_vm8, %v3343_v18 }
 0x3fc   : > { %3602 = shalt.err (!%p3599_p3)
}
 0x3fd   : > { %s3603_s28 = scalar_lea.hbm %s3365_s16, 208  ;;  %s3607_s10 = scalar_lea.hbm %s6738_s6, 416 }
 0x3fe   : > { %p3604_p4 = scmp.ne.s32.totalorder %s3365_s16, %s3603_s28  ;;  %p3608_p9 = scmp.lt.s32.totalorder %s3365_s16, %s6738_s6 }
 0x3ff   : > { %p3609_p10 = scmp.lt.s32.totalorder %s3607_s10, %s3603_s28 }
 0x400   : > { %p3605_p7 = pnand %p3604_p4, %p3728_p5 }
 0x401   : > { %p3610_p11 = por %p3609_p10, %p3608_p9 }
 0x402   : > { %p3606_p8 = pneg %p3605_p7 }
 0x404   : > { %p3611_p12 = pnand %p3610_p11, %p3606_p8 }
 0x406   : > { %3614 = shalt.err (!%p3611_p12)
}
 0x407   : > { %3537 = dma.vmem_to_hbm [thread:$0]  (%p3728_p5), %s3368_s14, 208, %s3365_s16, %s3353_s17  }
 0x408 PF: > { %p3543_p13 = scmp.ge.s32.totalorder %s3649_s24, 2  ;;  %s3379_s13 = sand.u32 1, %s3637_s21  }
 0x409   : > { %s3380_s26 = scalar_lea.sflag [#allocation3], %s3379_s13 }
 0x40a   : > { %p3540_p0 = pnand %p3543_p13, %p3732_p6 }
 0x40c   : > { %p3541_p1 = pneg %p3540_p0 }
 0x40e   : > { %3632 = dma.done.wait (%p3541_p1), %s3380_s26, 208  }
 0x40f   : > { %3634 = vsyncadd (%p3541_p1), %s3380_s26, 4294967088  ;;  %p16_p2 = scmp.ge.s32.totalorder %s3715_s27, 4   ;;  %s6762_s21 = smov %s3641_s22 }
 0x410   : > { %s6763_s22 = smov %s3645_s23  ;;  %s6764_s23 = smov %s3726_s30 }
 0x411   : > { %s6765_s24 = smov %s3715_s27  ;;  %18 = sbr.rel (!%p16_p2) target bundleno = 3 (0x3), region = 79 }
 0x416   :  { %3385 = vsyncpa [#allocation3], 1 }
 0x417   :  { %3387 = vsyncpa [#allocation3 + $0x1], 1 }

</bundles_post_ra>
